<compile_context>
chip_gen: v6e
topology: v6e:2x2x1
jax: 0.10.0
libtpu: 0.0.40
codegen_flags: <defaults>
</compile_context>

<pallas_src>
import functools

import jax
import jax.numpy as jnp
from jax.experimental import pallas as pl
from jax.experimental.pallas import tpu as pltpu


def _round_up(x, m):
    return ((x + m - 1) // m) * m


def _choose_tm(m, cap=256):
    """Row tile <= cap, multiple of 8, chosen to minimize M padding."""
    n_tiles = -(-m // cap)
    return _round_up(-(-m // n_tiles), 8)


def _padded_k(k):
    """Contraction-dim padding: multiple of 128; multiple of 512 if K is split."""
    kp = _round_up(k, 128)
    if kp > 1024:
        kp = _round_up(kp, 512)
    return kp


# ---------------------------------------------------------------------------
# Pallas kernel: tiled (M,K) @ (K,N) + bias (+ optional ReLU)
# ---------------------------------------------------------------------------
def _matmul_bias_kernel(x_ref, w_ref, b_ref, o_ref, acc_ref, *, apply_relu):
    k = pl.program_id(2)

    @pl.when(k == 0)
    def _init():
        acc_ref[...] = jnp.zeros_like(acc_ref)

    acc_ref[...] += jnp.dot(x_ref[...], w_ref[...],
                            preferred_element_type=jnp.float32)

    @pl.when(k == pl.num_programs(2) - 1)
    def _finalize():
        out = acc_ref[...] + b_ref[...]          # bias broadcast over rows
        if apply_relu:
            out = jnp.maximum(out, 0.0)
        o_ref[...] = out.astype(o_ref.dtype)


def matmul_bias(x, w_p, b_p, *, n_out, apply_relu):
    """x: (M, K) activations.  w_p: (Kp, Np) pre-padded weight, b_p: (1, Np)
    pre-padded bias (Kp, Np multiples of 128).  Returns (M, n_out) f32."""
    M, K = x.shape
    Kp, Np = w_p.shape
    assert Kp >= K and Kp % 128 == 0 and Np % 128 == 0

    tm = _choose_tm(M)
    Mp = _round_up(M, tm)
    tn = Np if Np <= 512 else (512 if Np % 512 == 0 else 128)
    tk = Kp if Kp <= 1024 else 512

    x = x.astype(jnp.float32)
    if (Mp, Kp) != (M, K):
        x = jnp.pad(x, ((0, Mp - M), (0, Kp - K)))   # zero K-pad keeps dot exact

    grid = (Mp // tm, Np // tn, Kp // tk)
    out = pl.pallas_call(
        functools.partial(_matmul_bias_kernel, apply_relu=apply_relu),
        out_shape=jax.ShapeDtypeStruct((Mp, Np), jnp.float32),
        grid=grid,
        in_specs=[
            pl.BlockSpec((tm, tk), lambda i, j, k: (i, k)),
            pl.BlockSpec((tk, tn), lambda i, j, k: (k, j)),
            pl.BlockSpec((1, tn), lambda i, j, k: (0, j)),
        ],
        out_specs=pl.BlockSpec((tm, tn), lambda i, j, k: (i, j)),
        scratch_shapes=[pltpu.VMEM((tm, tn), jnp.float32)],
        compiler_params=pltpu.CompilerParams(
            dimension_semantics=("parallel", "parallel", "arbitrary")),
    )(x, w_p, b_p)
    return out[:M, :n_out]


# ---------------------------------------------------------------------------
# Pallas kernel: fused fc4 (matmul+bias+ReLU) -> fc5 (matmul+bias)
# ---------------------------------------------------------------------------
def _fc_head_kernel(x_ref, w4_ref, b4_ref, w5_ref, b5_ref, o_ref, acc_ref):
    k = pl.program_id(1)

    @pl.when(k == 0)
    def _init():
        acc_ref[...] = jnp.zeros_like(acc_ref)

    acc_ref[...] += jnp.dot(x_ref[...], w4_ref[...],
                            preferred_element_type=jnp.float32)

    @pl.when(k == pl.num_programs(1) - 1)
    def _finalize():
        h = jnp.maximum(acc_ref[...] + b4_ref[...], 0.0)        # fc4 + ReLU
        out = jnp.dot(h, w5_ref[...],
                      preferred_element_type=jnp.float32) + b5_ref[...]
        o_ref[...] = out.astype(o_ref.dtype)


def fc_head(x, w4_p, b4_p, w5_p, b5_p, *, n_out):
    """Fused fc4(ReLU)+fc5.  x: (M, K).  w4_p: (K4p, N4p), w5_p: (N4p, N5p)."""
    M, K = x.shape
    K4p, N4p = w4_p.shape
    N4p2, N5p = w5_p.shape
    assert N4p2 == N4p and K4p % 128 == 0 and N4p % 128 == 0 and N5p % 128 == 0

    tm = _choose_tm(M)
    Mp = _round_up(M, tm)
    tk = K4p if K4p <= 1024 else 512

    x = x.astype(jnp.float32)
    if (Mp, K4p) != (M, K):
        x = jnp.pad(x, ((0, Mp - M), (0, K4p - K)))

    grid = (Mp // tm, K4p // tk)
    out = pl.pallas_call(
        _fc_head_kernel,
        out_shape=jax.ShapeDtypeStruct((Mp, N5p), jnp.float32),
        grid=grid,
        in_specs=[
            pl.BlockSpec((tm, tk), lambda i, k: (i, k)),
            pl.BlockSpec((tk, N4p), lambda i, k: (k, 0)),
            pl.BlockSpec((1, N4p), lambda i, k: (0, 0)),
            pl.BlockSpec((N4p, N5p), lambda i, k: (0, 0)),
            pl.BlockSpec((1, N5p), lambda i, k: (0, 0)),
        ],
        out_specs=pl.BlockSpec((tm, N5p), lambda i, k: (i, 0)),
        scratch_shapes=[pltpu.VMEM((tm, N4p), jnp.float32)],
        compiler_params=pltpu.CompilerParams(
            dimension_semantics=("parallel", "arbitrary")),
    )(x, w4_p, b4_p, w5_p, b5_p)
    return out[:M, :n_out]


# ---------------------------------------------------------------------------
# Conv via NHWC im2col + Pallas matmul (no NCHW<->NHWC bouncing between layers)
# ---------------------------------------------------------------------------
# TODO(synk): the im2col patch gather itself is still plain XLA ops between
# Pallas calls; fusing the gather into the kernel (shifted-matmul form) would
# remove the remaining intermediate HBM traffic.
def _im2col_nhwc(x, kh, kw, stride):
    """x: (B, H, W, C) -> (B*OH*OW, KH*KW*C), patch features in (KH, KW, C) order."""
    B, H, W, C = x.shape
    oh = (H - kh) // stride + 1
    ow = (W - kw) // stride + 1
    cols = []
    for i in range(kh):
        for j in range(kw):
            cols.append(x[:, i:i + stride * oh:stride, j:j + stride * ow:stride, :])
    p = jnp.stack(cols, axis=3)                          # (B, oh, ow, kh*kw, C)
    return p.reshape(B * oh * ow, kh * kw * C), oh, ow


def conv2d_relu(x, w_p, b_p, *, cout, kh, kw, stride):
    """x: NHWC.  w_p/b_p: pre-reordered+padded matmul weight/bias.  Returns NHWC."""
    B = x.shape[0]
    patches, oh, ow = _im2col_nhwc(x, kh, kw, stride)
    out = matmul_bias(patches, w_p, b_p, n_out=cout, apply_relu=True)
    return out.reshape(B, oh, ow, cout)


# ---------------------------------------------------------------------------
# Parameter init (PyTorch layout) + one-time preparation for the kernels
# ---------------------------------------------------------------------------
def _uniform(key, shape, fan_in):
    bound = 1.0 / jnp.sqrt(float(fan_in))
    return jax.random.uniform(key, shape, jnp.float32, -bound, bound)


def init_dqn_params(key, in_channels=4, num_actions=18):
    """PyTorch-layout parameters (conv: OIHW, linear: (out, in))."""
    ks = jax.random.split(key, 10)
    p = {}
    p["conv1_w"] = _uniform(ks[0], (32, in_channels, 8, 8), in_channels * 8 * 8)
    p["conv1_b"] = _uniform(ks[1], (32,), in_channels * 8 * 8)
    p["conv2_w"] = _uniform(ks[2], (64, 32, 4, 4), 32 * 4 * 4)
    p["conv2_b"] = _uniform(ks[3], (64,), 32 * 4 * 4)
    p["conv3_w"] = _uniform(ks[4], (64, 64, 3, 3), 64 * 3 * 3)
    p["conv3_b"] = _uniform(ks[5], (64,), 64 * 3 * 3)
    p["fc4_w"] = _uniform(ks[6], (512, 7 * 7 * 64), 7 * 7 * 64)
    p["fc4_b"] = _uniform(ks[7], (512,), 7 * 7 * 64)
    p["fc5_w"] = _uniform(ks[8], (num_actions, 512), 512)
    p["fc5_b"] = _uniform(ks[9], (num_actions,), 512)
    return p


def _pad_weight(wm, b):
    """wm: (K, N) matmul weight, b: (N,).  Zero-pad K/N to kernel-friendly sizes."""
    K, N = wm.shape
    Kp, Np = _padded_k(K), _round_up(N, 128)
    wm_p = jnp.zeros((Kp, Np), jnp.float32).at[:K, :N].set(wm.astype(jnp.float32))
    b_p = jnp.zeros((1, Np), jnp.float32).at[0, :N].set(b.astype(jnp.float32))
    return wm_p, b_p


def prepare_params(raw):
    """One-time (outside jit) reorder + pad of the torch-layout params:
      * conv OIHW -> (KH*KW*Cin, Cout) matching the NHWC im2col column order,
      * fc4 columns permuted CHW -> HWC so the NHWC flatten matches torch,
      * fc weights pre-transposed to (in, out),
      * K padded to 128 (512 when split), N padded to 128 (lane-dense stores).
    """
    p = {}

    def conv(name):
        w, b = raw[name + "_w"], raw[name + "_b"]
        cout, cin, kh, kw = w.shape
        wm = jnp.transpose(w, (2, 3, 1, 0)).reshape(kh * kw * cin, cout)
        p[name + "_w"], p[name + "_b"] = _pad_weight(wm, b)

    conv("conv1")
    conv("conv2")
    conv("conv3")

    w4 = raw["fc4_w"].reshape(512, 64, 7, 7)                        # (out, C, H, W)
    w4 = jnp.transpose(w4, (0, 2, 3, 1)).reshape(512, 7 * 7 * 64)   # cols -> (H, W, C)
    p["fc4_w"], p["fc4_b"] = _pad_weight(w4.T, raw["fc4_b"])
    p["fc5_w"], p["fc5_b"] = _pad_weight(raw["fc5_w"].T, raw["fc5_b"])
    return p


# ---------------------------------------------------------------------------
# Forward pass (matches torch DQN.forward semantics)
# ---------------------------------------------------------------------------
def make_dqn_forward(num_actions):
    @jax.jit
    def forward(params, x):
        # x: (B, C, 84, 84) NCHW (torch layout); transpose to NHWC exactly once.
        x = jnp.transpose(x, (0, 2, 3, 1))
        x = conv2d_relu(x, params["conv1_w"], params["conv1_b"],
                        cout=32, kh=8, kw=8, stride=4)               # (B, 20, 20, 32)
        x = conv2d_relu(x, params["conv2_w"], params["conv2_b"],
                        cout=64, kh=4, kw=4, stride=2)               # (B, 9, 9, 64)
        x = conv2d_relu(x, params["conv3_w"], params["conv3_b"],
                        cout=64, kh=3, kw=3, stride=1)               # (B, 7, 7, 64)
        B = x.shape[0]
        x = x.reshape(B, -1)                                         # (B, 3136), HWC order
        # fc4 (ReLU) + fc5 fused into a single Pallas kernel.
        return fc_head(x, params["fc4_w"], params["fc4_b"],
                       params["fc5_w"], params["fc5_b"],
                       n_out=num_actions)                            # (B, num_actions)
    return forward


if __name__ == "__main__":
    key = jax.random.PRNGKey(0)
    k_param, k_x = jax.random.split(key)

    in_channels, num_actions, batch = 4, 18, 2
    raw_params = init_dqn_params(k_param, in_channels, num_actions)
    params = prepare_params(raw_params)       # one-time reorder/pad, outside jit
    dqn_forward = make_dqn_forward(num_actions)

    # Spatial size must be 84x84 so conv3 output is 7x7 (fc4 expects 7*7*64).
    x = jax.random.normal(k_x, (batch, in_channels, 84, 84), jnp.float32)

    out = jax.block_until_ready(dqn_forward(params, x))
    assert out.shape == (batch, num_actions), out.shape
    assert out.dtype == jnp.float32
    assert bool(jnp.all(jnp.isfinite(out)))
    print("KERNEL_OK")
</pallas_src>

<mosaic_0001>
module attributes {stable_mosaic.version = 11 : i64} {
  func.func @_matmul_bias_kernel(%arg0: i32, %arg1: i32, %arg2: i32, %arg3: memref<200x256xf32, #tpu.memory_space<vmem>>, %arg4: memref<256x128xf32, #tpu.memory_space<vmem>>, %arg5: memref<1x128xf32, #tpu.memory_space<vmem>>, %arg6: memref<200x128xf32, #tpu.memory_space<vmem>>, %arg7: memref<200x128xf32, #tpu.memory_space<vmem>>) attributes {dimension_semantics = [#tpu.dimension_semantics<parallel>, #tpu.dimension_semantics<parallel>, #tpu.dimension_semantics<arbitrary>], iteration_bounds = array<i64: 4, 1, 1>, scalar_prefetch = 0 : i64, scratch_operands = 1 : i64, tpu.core_type = #tpu.core_type<tc>, window_params = [{transform_indices = @transform_0, window_bounds = array<i64: 200, 256>}, {transform_indices = @transform_1, window_bounds = array<i64: 256, 128>}, {transform_indices = @transform_2, window_bounds = array<i64: 1, 128>}, {transform_indices = @transform_3, window_bounds = array<i64: 200, 128>}]} {
    %c0_i32 = arith.constant 0 : i32
    %0 = arith.cmpi eq, %arg2, %c0_i32 : i32
    %1 = arith.extui %0 : i1 to i32
    %c0_i32_0 = arith.constant 0 : i32
    %2 = arith.cmpi ne, %1, %c0_i32_0 : i32
    scf.if %2 {
      %cst_10 = arith.constant 0.000000e+00 : f32
      %12 = vector.broadcast %cst_10 : f32 to vector<200x128xf32>
      %c0_11 = arith.constant 0 : index
      %c0_12 = arith.constant 0 : index
      %13 = vector.load %arg7[%c0_11, %c0_12] : memref<200x128xf32, #tpu.memory_space<vmem>>, vector<200x128xf32>
      tpu.vector_store %arg7[%c0_11, %c0_12], %12 {strides = array<i32>} : memref<200x128xf32, #tpu.memory_space<vmem>>, vector<200x128xf32>,
    } else {
    }
    %c0 = arith.constant 0 : index
    %c0_1 = arith.constant 0 : index
    %3 = vector.load %arg7[%c0, %c0_1] : memref<200x128xf32, #tpu.memory_space<vmem>>, vector<200x128xf32>
    %c0_2 = arith.constant 0 : index
    %c0_3 = arith.constant 0 : index
    %4 = vector.load %arg3[%c0_2, %c0_3] : memref<200x256xf32, #tpu.memory_space<vmem>>, vector<200x256xf32>
    %c0_4 = arith.constant 0 : index
    %c0_5 = arith.constant 0 : index
    %5 = vector.load %arg4[%c0_4, %c0_5] : memref<256x128xf32, #tpu.memory_space<vmem>>, vector<256x128xf32>
    %cst = arith.constant dense<0.000000e+00> : vector<200x128xf32>
    %6 = tpu.matmul %4, %5, %cst {dimension_numbers = #tpu.dot_dimension_numbers<[1], [0], [0], [1], [0, 0, 1, 1], [], []>} : vector<200x256xf32>, vector<256x128xf32>, vector<200x128xf32> -> vector<200x128xf32>
    %7 = arith.addf %3, %6 : vector<200x128xf32>
    %c0_6 = arith.constant 0 : index
    %c0_7 = arith.constant 0 : index
    %8 = vector.load %arg7[%c0_6, %c0_7] : memref<200x128xf32, #tpu.memory_space<vmem>>, vector<200x128xf32>
    tpu.vector_store %arg7[%c0_6, %c0_7], %7 {strides = array<i32>} : memref<200x128xf32, #tpu.memory_space<vmem>>, vector<200x128xf32>,
    %c0_i32_8 = arith.constant 0 : i32
    %9 = arith.cmpi eq, %arg2, %c0_i32_8 : i32
    %10 = arith.extui %9 : i1 to i32
    %c0_i32_9 = arith.constant 0 : i32
    %11 = arith.cmpi ne, %10, %c0_i32_9 : i32
    scf.if %11 {
      %c0_10 = arith.constant 0 : index
      %c0_11 = arith.constant 0 : index
      %12 = vector.load %arg7[%c0_10, %c0_11] : memref<200x128xf32, #tpu.memory_space<vmem>>, vector<200x128xf32>
      %c0_12 = arith.constant 0 : index
      %c0_13 = arith.constant 0 : index
      %13 = vector.load %arg5[%c0_12, %c0_13] : memref<1x128xf32, #tpu.memory_space<vmem>>, vector<1x128xf32>
      %14 = vector.broadcast %13 : vector<1x128xf32> to vector<200x128xf32>
      %15 = arith.addf %12, %14 : vector<200x128xf32>
      %cst_14 = arith.constant 0.000000e+00 : f32
      %16 = vector.broadcast %cst_14 : f32 to vector<200x128xf32>
      %17 = arith.maximumf %15, %16 : vector<200x128xf32>
      %c0_15 = arith.constant 0 : index
      %c0_16 = arith.constant 0 : index
      %18 = vector.load %arg6[%c0_15, %c0_16] : memref<200x128xf32, #tpu.memory_space<vmem>>, vector<200x128xf32>
      tpu.vector_store %arg6[%c0_15, %c0_16], %17 {strides = array<i32>} : memref<200x128xf32, #tpu.memory_space<vmem>>, vector<200x128xf32>,
    } else {
    }
    return
  }
  func.func @transform_0(%arg0: i32, %arg1: i32, %arg2: i32) -> (i32, i32) {
    %c0_i32 = arith.constant 0 : i32
    return %arg0, %arg2 : i32, i32
  }
  func.func @transform_1(%arg0: i32, %arg1: i32, %arg2: i32) -> (i32, i32) {
    %c0_i32 = arith.constant 0 : i32
    return %arg2, %arg1 : i32, i32
  }
  func.func @transform_2(%arg0: i32, %arg1: i32, %arg2: i32) -> (i32, i32) {
    %c0_i32 = arith.constant 0 : i32
    %c0_i32_0 = arith.constant 0 : i32
    return %c0_i32, %arg1 : i32, i32
  }
  func.func @transform_3(%arg0: i32, %arg1: i32, %arg2: i32) -> (i32, i32) {
    %c0_i32 = arith.constant 0 : i32
    return %arg0, %arg1 : i32, i32
  }
}

module attributes {stable_mosaic.version = 11 : i64} {
  func.func @_matmul_bias_kernel(%arg0: i32, %arg1: i32, %arg2: i32, %arg3: memref<168x512xf32, #tpu.memory_space<vmem>>, %arg4: memref<512x128xf32, #tpu.memory_space<vmem>>, %arg5: memref<1x128xf32, #tpu.memory_space<vmem>>, %arg6: memref<168x128xf32, #tpu.memory_space<vmem>>, %arg7: memref<168x128xf32, #tpu.memory_space<vmem>>) attributes {dimension_semantics = [#tpu.dimension_semantics<parallel>, #tpu.dimension_semantics<parallel>, #tpu.dimension_semantics<arbitrary>], iteration_bounds = array<i64: 1, 1, 1>, scalar_prefetch = 0 : i64, scratch_operands = 1 : i64, tpu.core_type = #tpu.core_type<tc>, window_params = [{transform_indices = @transform_0, window_bounds = array<i64: 168, 512>}, {transform_indices = @transform_1, window_bounds = array<i64: 512, 128>}, {transform_indices = @transform_2, window_bounds = array<i64: 1, 128>}, {transform_indices = @transform_3, window_bounds = array<i64: 168, 128>}]} {
    %c0_i32 = arith.constant 0 : i32
    %0 = arith.cmpi eq, %arg2, %c0_i32 : i32
    %1 = arith.extui %0 : i1 to i32
    %c0_i32_0 = arith.constant 0 : i32
    %2 = arith.cmpi ne, %1, %c0_i32_0 : i32
    scf.if %2 {
      %cst_10 = arith.constant 0.000000e+00 : f32
      %12 = vector.broadcast %cst_10 : f32 to vector<168x128xf32>
      %c0_11 = arith.constant 0 : index
      %c0_12 = arith.constant 0 : index
      %13 = vector.load %arg7[%c0_11, %c0_12] : memref<168x128xf32, #tpu.memory_space<vmem>>, vector<168x128xf32>
      tpu.vector_store %arg7[%c0_11, %c0_12], %12 {strides = array<i32>} : memref<168x128xf32, #tpu.memory_space<vmem>>, vector<168x128xf32>,
    } else {
    }
    %c0 = arith.constant 0 : index
    %c0_1 = arith.constant 0 : index
    %3 = vector.load %arg7[%c0, %c0_1] : memref<168x128xf32, #tpu.memory_space<vmem>>, vector<168x128xf32>
    %c0_2 = arith.constant 0 : index
    %c0_3 = arith.constant 0 : index
    %4 = vector.load %arg3[%c0_2, %c0_3] : memref<168x512xf32, #tpu.memory_space<vmem>>, vector<168x512xf32>
    %c0_4 = arith.constant 0 : index
    %c0_5 = arith.constant 0 : index
    %5 = vector.load %arg4[%c0_4, %c0_5] : memref<512x128xf32, #tpu.memory_space<vmem>>, vector<512x128xf32>
    %cst = arith.constant dense<0.000000e+00> : vector<168x128xf32>
    %6 = tpu.matmul %4, %5, %cst {dimension_numbers = #tpu.dot_dimension_numbers<[1], [0], [0], [1], [0, 0, 1, 1], [], []>} : vector<168x512xf32>, vector<512x128xf32>, vector<168x128xf32> -> vector<168x128xf32>
    %7 = arith.addf %3, %6 : vector<168x128xf32>
    %c0_6 = arith.constant 0 : index
    %c0_7 = arith.constant 0 : index
    %8 = vector.load %arg7[%c0_6, %c0_7] : memref<168x128xf32, #tpu.memory_space<vmem>>, vector<168x128xf32>
    tpu.vector_store %arg7[%c0_6, %c0_7], %7 {strides = array<i32>} : memref<168x128xf32, #tpu.memory_space<vmem>>, vector<168x128xf32>,
    %c0_i32_8 = arith.constant 0 : i32
    %9 = arith.cmpi eq, %arg2, %c0_i32_8 : i32
    %10 = arith.extui %9 : i1 to i32
    %c0_i32_9 = arith.constant 0 : i32
    %11 = arith.cmpi ne, %10, %c0_i32_9 : i32
    scf.if %11 {
      %c0_10 = arith.constant 0 : index
      %c0_11 = arith.constant 0 : index
      %12 = vector.load %arg7[%c0_10, %c0_11] : memref<168x128xf32, #tpu.memory_space<vmem>>, vector<168x128xf32>
      %c0_12 = arith.constant 0 : index
      %c0_13 = arith.constant 0 : index
      %13 = vector.load %arg5[%c0_12, %c0_13] : memref<1x128xf32, #tpu.memory_space<vmem>>, vector<1x128xf32>
      %14 = vector.broadcast %13 : vector<1x128xf32> to vector<168x128xf32>
      %15 = arith.addf %12, %14 : vector<168x128xf32>
      %cst_14 = arith.constant 0.000000e+00 : f32
      %16 = vector.broadcast %cst_14 : f32 to vector<168x128xf32>
      %17 = arith.maximumf %15, %16 : vector<168x128xf32>
      %c0_15 = arith.constant 0 : index
      %c0_16 = arith.constant 0 : index
      %18 = vector.load %arg6[%c0_15, %c0_16] : memref<168x128xf32, #tpu.memory_space<vmem>>, vector<168x128xf32>
      tpu.vector_store %arg6[%c0_15, %c0_16], %17 {strides = array<i32>} : memref<168x128xf32, #tpu.memory_space<vmem>>, vector<168x128xf32>,
    } else {
    }
    return
  }
  func.func @transform_0(%arg0: i32, %arg1: i32, %arg2: i32) -> (i32, i32) {
    %c0_i32 = arith.constant 0 : i32
    return %arg0, %arg2 : i32, i32
  }
  func.func @transform_1(%arg0: i32, %arg1: i32, %arg2: i32) -> (i32, i32) {
    %c0_i32 = arith.constant 0 : i32
    return %arg2, %arg1 : i32, i32
  }
  func.func @transform_2(%arg0: i32, %arg1: i32, %arg2: i32) -> (i32, i32) {
    %c0_i32 = arith.constant 0 : i32
    %c0_i32_0 = arith.constant 0 : i32
    return %c0_i32, %arg1 : i32, i32
  }
  func.func @transform_3(%arg0: i32, %arg1: i32, %arg2: i32) -> (i32, i32) {
    %c0_i32 = arith.constant 0 : i32
    return %arg0, %arg1 : i32, i32
  }
}

module attributes {stable_mosaic.version = 11 : i64} {
  func.func @_matmul_bias_kernel(%arg0: i32, %arg1: i32, %arg2: i32, %arg3: memref<104x640xf32, #tpu.memory_space<vmem>>, %arg4: memref<640x128xf32, #tpu.memory_space<vmem>>, %arg5: memref<1x128xf32, #tpu.memory_space<vmem>>, %arg6: memref<104x128xf32, #tpu.memory_space<vmem>>, %arg7: memref<104x128xf32, #tpu.memory_space<vmem>>) attributes {dimension_semantics = [#tpu.dimension_semantics<parallel>, #tpu.dimension_semantics<parallel>, #tpu.dimension_semantics<arbitrary>], iteration_bounds = array<i64: 1, 1, 1>, scalar_prefetch = 0 : i64, scratch_operands = 1 : i64, tpu.core_type = #tpu.core_type<tc>, window_params = [{transform_indices = @transform_0, window_bounds = array<i64: 104, 640>}, {transform_indices = @transform_1, window_bounds = array<i64: 640, 128>}, {transform_indices = @transform_2, window_bounds = array<i64: 1, 128>}, {transform_indices = @transform_3, window_bounds = array<i64: 104, 128>}]} {
    %c0_i32 = arith.constant 0 : i32
    %0 = arith.cmpi eq, %arg2, %c0_i32 : i32
    %1 = arith.extui %0 : i1 to i32
    %c0_i32_0 = arith.constant 0 : i32
    %2 = arith.cmpi ne, %1, %c0_i32_0 : i32
    scf.if %2 {
      %cst_10 = arith.constant 0.000000e+00 : f32
      %12 = vector.broadcast %cst_10 : f32 to vector<104x128xf32>
      %c0_11 = arith.constant 0 : index
      %c0_12 = arith.constant 0 : index
      %13 = vector.load %arg7[%c0_11, %c0_12] : memref<104x128xf32, #tpu.memory_space<vmem>>, vector<104x128xf32>
      tpu.vector_store %arg7[%c0_11, %c0_12], %12 {strides = array<i32>} : memref<104x128xf32, #tpu.memory_space<vmem>>, vector<104x128xf32>,
    } else {
    }
    %c0 = arith.constant 0 : index
    %c0_1 = arith.constant 0 : index
    %3 = vector.load %arg7[%c0, %c0_1] : memref<104x128xf32, #tpu.memory_space<vmem>>, vector<104x128xf32>
    %c0_2 = arith.constant 0 : index
    %c0_3 = arith.constant 0 : index
    %4 = vector.load %arg3[%c0_2, %c0_3] : memref<104x640xf32, #tpu.memory_space<vmem>>, vector<104x640xf32>
    %c0_4 = arith.constant 0 : index
    %c0_5 = arith.constant 0 : index
    %5 = vector.load %arg4[%c0_4, %c0_5] : memref<640x128xf32, #tpu.memory_space<vmem>>, vector<640x128xf32>
    %cst = arith.constant dense<0.000000e+00> : vector<104x128xf32>
    %6 = tpu.matmul %4, %5, %cst {dimension_numbers = #tpu.dot_dimension_numbers<[1], [0], [0], [1], [0, 0, 1, 1], [], []>} : vector<104x640xf32>, vector<640x128xf32>, vector<104x128xf32> -> vector<104x128xf32>
    %7 = arith.addf %3, %6 : vector<104x128xf32>
    %c0_6 = arith.constant 0 : index
    %c0_7 = arith.constant 0 : index
    %8 = vector.load %arg7[%c0_6, %c0_7] : memref<104x128xf32, #tpu.memory_space<vmem>>, vector<104x128xf32>
    tpu.vector_store %arg7[%c0_6, %c0_7], %7 {strides = array<i32>} : memref<104x128xf32, #tpu.memory_space<vmem>>, vector<104x128xf32>,
    %c0_i32_8 = arith.constant 0 : i32
    %9 = arith.cmpi eq, %arg2, %c0_i32_8 : i32
    %10 = arith.extui %9 : i1 to i32
    %c0_i32_9 = arith.constant 0 : i32
    %11 = arith.cmpi ne, %10, %c0_i32_9 : i32
    scf.if %11 {
      %c0_10 = arith.constant 0 : index
      %c0_11 = arith.constant 0 : index
      %12 = vector.load %arg7[%c0_10, %c0_11] : memref<104x128xf32, #tpu.memory_space<vmem>>, vector<104x128xf32>
      %c0_12 = arith.constant 0 : index
      %c0_13 = arith.constant 0 : index
      %13 = vector.load %arg5[%c0_12, %c0_13] : memref<1x128xf32, #tpu.memory_space<vmem>>, vector<1x128xf32>
      %14 = vector.broadcast %13 : vector<1x128xf32> to vector<104x128xf32>
      %15 = arith.addf %12, %14 : vector<104x128xf32>
      %cst_14 = arith.constant 0.000000e+00 : f32
      %16 = vector.broadcast %cst_14 : f32 to vector<104x128xf32>
      %17 = arith.maximumf %15, %16 : vector<104x128xf32>
      %c0_15 = arith.constant 0 : index
      %c0_16 = arith.constant 0 : index
      %18 = vector.load %arg6[%c0_15, %c0_16] : memref<104x128xf32, #tpu.memory_space<vmem>>, vector<104x128xf32>
      tpu.vector_store %arg6[%c0_15, %c0_16], %17 {strides = array<i32>} : memref<104x128xf32, #tpu.memory_space<vmem>>, vector<104x128xf32>,
    } else {
    }
    return
  }
  func.func @transform_0(%arg0: i32, %arg1: i32, %arg2: i32) -> (i32, i32) {
    %c0_i32 = arith.constant 0 : i32
    return %arg0, %arg2 : i32, i32
  }
  func.func @transform_1(%arg0: i32, %arg1: i32, %arg2: i32) -> (i32, i32) {
    %c0_i32 = arith.constant 0 : i32
    return %arg2, %arg1 : i32, i32
  }
  func.func @transform_2(%arg0: i32, %arg1: i32, %arg2: i32) -> (i32, i32) {
    %c0_i32 = arith.constant 0 : i32
    %c0_i32_0 = arith.constant 0 : i32
    return %c0_i32, %arg1 : i32, i32
  }
  func.func @transform_3(%arg0: i32, %arg1: i32, %arg2: i32) -> (i32, i32) {
    %c0_i32 = arith.constant 0 : i32
    return %arg0, %arg1 : i32, i32
  }
}

module attributes {stable_mosaic.version = 11 : i64} {
  func.func @_fc_head_kernel(%arg0: i32, %arg1: i32, %arg2: memref<8x512xf32, #tpu.memory_space<vmem>>, %arg3: memref<512x512xf32, #tpu.memory_space<vmem>>, %arg4: memref<1x512xf32, #tpu.memory_space<vmem>>, %arg5: memref<512x128xf32, #tpu.memory_space<vmem>>, %arg6: memref<1x128xf32, #tpu.memory_space<vmem>>, %arg7: memref<8x128xf32, #tpu.memory_space<vmem>>, %arg8: memref<8x512xf32, #tpu.memory_space<vmem>>) attributes {dimension_semantics = [#tpu.dimension_semantics<parallel>, #tpu.dimension_semantics<arbitrary>], iteration_bounds = array<i64: 1, 7>, scalar_prefetch = 0 : i64, scratch_operands = 1 : i64, tpu.core_type = #tpu.core_type<tc>, window_params = [{transform_indices = @transform_0, window_bounds = array<i64: 8, 512>}, {transform_indices = @transform_1, window_bounds = array<i64: 512, 512>}, {pipeline_mode = #tpu.pipeline_mode<synchronous>, transform_indices = @transform_2, window_bounds = array<i64: 1, 512>}, {pipeline_mode = #tpu.pipeline_mode<synchronous>, transform_indices = @transform_3, window_bounds = array<i64: 512, 128>}, {pipeline_mode = #tpu.pipeline_mode<synchronous>, transform_indices = @transform_4, window_bounds = array<i64: 1, 128>}, {transform_indices = @transform_5, window_bounds = array<i64: 8, 128>}]} {
    %c0_i32 = arith.constant 0 : i32
    %0 = arith.cmpi eq, %arg1, %c0_i32 : i32
    %1 = arith.extui %0 : i1 to i32
    %c0_i32_0 = arith.constant 0 : i32
    %2 = arith.cmpi ne, %1, %c0_i32_0 : i32
    scf.if %2 {
      %cst_9 = arith.constant 0.000000e+00 : f32
      %12 = vector.broadcast %cst_9 : f32 to vector<8x512xf32>
      %c0_10 = arith.constant 0 : index
      %c0_11 = arith.constant 0 : index
      %13 = vector.load %arg8[%c0_10, %c0_11] : memref<8x512xf32, #tpu.memory_space<vmem>>, vector<8x512xf32>
      tpu.vector_store %arg8[%c0_10, %c0_11], %12 {strides = array<i32>} : memref<8x512xf32, #tpu.memory_space<vmem>>, vector<8x512xf32>,
    } else {
    }
    %c0 = arith.constant 0 : index
    %c0_1 = arith.constant 0 : index
    %3 = vector.load %arg8[%c0, %c0_1] : memref<8x512xf32, #tpu.memory_space<vmem>>, vector<8x512xf32>
    %c0_2 = arith.constant 0 : index
    %c0_3 = arith.constant 0 : index
    %4 = vector.load %arg2[%c0_2, %c0_3] : memref<8x512xf32, #tpu.memory_space<vmem>>, vector<8x512xf32>
    %c0_4 = arith.constant 0 : index
    %c0_5 = arith.constant 0 : index
    %5 = vector.load %arg3[%c0_4, %c0_5] : memref<512x512xf32, #tpu.memory_space<vmem>>, vector<512x512xf32>
    %cst = arith.constant dense<0.000000e+00> : vector<8x512xf32>
    %6 = tpu.matmul %4, %5, %cst {dimension_numbers = #tpu.dot_dimension_numbers<[1], [0], [0], [1], [0, 0, 1, 1], [], []>} : vector<8x512xf32>, vector<512x512xf32>, vector<8x512xf32> -> vector<8x512xf32>
    %7 = arith.addf %3, %6 : vector<8x512xf32>
    %c0_6 = arith.constant 0 : index
    %c0_7 = arith.constant 0 : index
    %8 = vector.load %arg8[%c0_6, %c0_7] : memref<8x512xf32, #tpu.memory_space<vmem>>, vector<8x512xf32>
    tpu.vector_store %arg8[%c0_6, %c0_7], %7 {strides = array<i32>} : memref<8x512xf32, #tpu.memory_space<vmem>>, vector<8x512xf32>,
    %c6_i32 = arith.constant 6 : i32
    %9 = arith.cmpi eq, %arg1, %c6_i32 : i32
    %10 = arith.extui %9 : i1 to i32
    %c0_i32_8 = arith.constant 0 : i32
    %11 = arith.cmpi ne, %10, %c0_i32_8 : i32
    scf.if %11 {
      %c0_9 = arith.constant 0 : index
      %c0_10 = arith.constant 0 : index
      %12 = vector.load %arg8[%c0_9, %c0_10] : memref<8x512xf32, #tpu.memory_space<vmem>>, vector<8x512xf32>
      %c0_11 = arith.constant 0 : index
      %c0_12 = arith.constant 0 : index
      %13 = vector.load %arg4[%c0_11, %c0_12] : memref<1x512xf32, #tpu.memory_space<vmem>>, vector<1x512xf32>
      %14 = vector.broadcast %13 : vector<1x512xf32> to vector<8x512xf32>
      %15 = arith.addf %12, %14 : vector<8x512xf32>
      %cst_13 = arith.constant 0.000000e+00 : f32
      %16 = vector.broadcast %cst_13 : f32 to vector<8x512xf32>
      %17 = arith.maximumf %15, %16 : vector<8x512xf32>
      %c0_14 = arith.constant 0 : index
      %c0_15 = arith.constant 0 : index
      %18 = vector.load %arg5[%c0_14, %c0_15] : memref<512x128xf32, #tpu.memory_space<vmem>>, vector<512x128xf32>
      %cst_16 = arith.constant dense<0.000000e+00> : vector<8x128xf32>
      %19 = tpu.matmul %17, %18, %cst_16 {dimension_numbers = #tpu.dot_dimension_numbers<[1], [0], [0], [1], [0, 0, 1, 1], [], []>} : vector<8x512xf32>, vector<512x128xf32>, vector<8x128xf32> -> vector<8x128xf32>
      %c0_17 = arith.constant 0 : index
      %c0_18 = arith.constant 0 : index
      %20 = vector.load %arg6[%c0_17, %c0_18] : memref<1x128xf32, #tpu.memory_space<vmem>>, vector<1x128xf32>
      %21 = vector.broadcast %20 : vector<1x128xf32> to vector<8x128xf32>
      %22 = arith.addf %19, %21 : vector<8x128xf32>
      %c0_19 = arith.constant 0 : index
      %c0_20 = arith.constant 0 : index
      %23 = vector.load %arg7[%c0_19, %c0_20] : memref<8x128xf32, #tpu.memory_space<vmem>>, vector<8x128xf32>
      tpu.vector_store %arg7[%c0_19, %c0_20], %22 {strides = array<i32>} : memref<8x128xf32, #tpu.memory_space<vmem>>, vector<8x128xf32>,
    } else {
    }
    return
  }
  func.func @transform_0(%arg0: i32, %arg1: i32) -> (i32, i32) {
    %c0_i32 = arith.constant 0 : i32
    return %arg0, %arg1 : i32, i32
  }
  func.func @transform_1(%arg0: i32, %arg1: i32) -> (i32, i32) {
    %c0_i32 = arith.constant 0 : i32
    %c0_i32_0 = arith.constant 0 : i32
    return %arg1, %c0_i32 : i32, i32
  }
  func.func @transform_2(%arg0: i32, %arg1: i32) -> (i32, i32) {
    %c0_i32 = arith.constant 0 : i32
    %c0_i32_0 = arith.constant 0 : i32
    %c0_i32_1 = arith.constant 0 : i32
    return %c0_i32, %c0_i32_0 : i32, i32
  }
  func.func @transform_3(%arg0: i32, %arg1: i32) -> (i32, i32) {
    %c0_i32 = arith.constant 0 : i32
    %c0_i32_0 = arith.constant 0 : i32
    %c0_i32_1 = arith.constant 0 : i32
    return %c0_i32, %c0_i32_0 : i32, i32
  }
  func.func @transform_4(%arg0: i32, %arg1: i32) -> (i32, i32) {
    %c0_i32 = arith.constant 0 : i32
    %c0_i32_0 = arith.constant 0 : i32
    %c0_i32_1 = arith.constant 0 : i32
    return %c0_i32, %c0_i32_0 : i32, i32
  }
  func.func @transform_5(%arg0: i32, %arg1: i32) -> (i32, i32) {
    %c0_i32 = arith.constant 0 : i32
    %c0_i32_0 = arith.constant 0 : i32
    return %arg0, %c0_i32 : i32, i32
  }
}

</mosaic_0001>

<bundles_post_ra>
// kernel: forward.4
= control target key start
LH: loop header
LB: loop body
LE: loop exit
PB: predicated region body
PF: predicated region fallthrough
CT: control target
= control target key end

     0   :  { %s1015_s12 = smov 0   ;;  %s1017_s13 = smov 0   ;;  %s1324_s0 = inlined_call_operand.vmem [shape: f32[800,256], index: 0, kind: input, shape index: {}]   ;;  %s1325_s1 = inlined_call_operand.vmem [shape: f32[256,128], index: 1, kind: input, shape index: {}]   ;;  %s1326_s2 = inlined_call_operand.vmem [shape: f32[1,128], index: 2, kind: input, shape index: {}]   ;;  %s1327_s3 = inlined_call_operand.vmem [shape: f32[800,128], index: 3, kind: output, shape index: {}]  }
   0x1   :  { %s1019_s14 = smov 0  }
   0x2 LB: > { %s32_s15 = sadd.s32 1, %s988_s13  ;;  %p873_p0 = scmp.ge.s32.totalorder %s992_s14, 1  ;;  %s992_s14 = sphi %s1019_s14, %s13_s14   ;;  %s988_s13 = sphi %s1017_s13, %s1329_s13   ;;  %s984_s12 = sphi %s1015_s12, %s1328_s12  }
   0x3   : > { %p34_p1 = scmp.ge.s32.totalorder %s32_s15, 4  ;;  %p191_p2 = scmp.lt.s32.totalorder %s992_s14, 5 }
   0x5   : > { %s1331_s15 = smov (%p34_p1, %s32_s15), 0  ;;  %p192_p3 = pnand %p873_p0, %p191_p2 }
   0x6   : > { %s234_s10 = smul.u32 (!%p192_p3), 25, %s984_s12 }
   0x7   : > { %195 = sbr.rel (%p192_p3) target bundleno = 323 (0x143), region = 32 }
   0x8   : > { %p236_p4 = scmp.lt.s32.totalorder (!%p192_p3), %s234_s10, 99 }
   0xc   : > { %v386_v0 = vld [vmem:[%s1325_s1 + $0x78] sm:$0xff]  ;;  %v994_v1 = vmov 0.0   ;;  %v385_v2 = vld [vmem:[%s1325_s1 + $0x70] sm:$0xff]  ;;  %v384_v3 = vld [vmem:[%s1325_s1 + $0x68] sm:$0xff]  ;;  %s1333_s10 = smov (!%p236_p4, %s234_s10), 99 }
   0xd   : > { %403 = vmatprep.subr.mxu0 %v994_v1  ;;  %881 = vmatprep.subr.mxu1 %v994_v1  ;;  %v383_v4 = vld [vmem:[%s1325_s1 + $0x60] sm:$0xff]  ;;  %v382_v5 = vld [vmem:[%s1325_s1 + $0x58] sm:$0xff]  ;;  %v381_v6 = vld [vmem:[%s1325_s1 + $0x50] sm:$0xff]  ;;  %s880_s26 = sshll.u32 %s1333_s10, 4  ;;  %s876_s18 = sshll.u32 %s1333_s10, 3 }
   0xe   : > { %404 = vmatpush1.msra.mxu0 %v386_v0  ;;  %913 = vmatpush1.msra.mxu1 %v386_v0  ;;  %v380_v7 = vld [vmem:[%s1325_s1 + $0x48] sm:$0xff]  ;;  %v379_v8 = vld [vmem:[%s1325_s1 + $0x40] sm:$0xff]  ;;  %v378_v9 = vld [vmem:[%s1325_s1 + $0x38] sm:$0xff]  ;;  %s1190_s6 = scalar_lea.vmem %s1324_s0, %s880_s26  ;;  %s1264_s20 = scalar_lea.vmem %s1327_s3, %s876_s18 }
   0xf   : > { %405 = vmatprep.subr.mxu0 %v994_v1  ;;  %882 = vmatprep.subr.mxu1 %v994_v1  ;;  %v377_v10 = vld [vmem:[%s1325_s1 + $0x30] sm:$0xff]  ;;  %v376_v11 = vld [vmem:[%s1325_s1 + $0x28] sm:$0xff]  ;;  %v375_v12 = vld [vmem:[%s1325_s1 + $0x20] sm:$0xff] }
  0x10   : > { %406 = vmatpush1.msra.mxu0 %v385_v2  ;;  %914 = vmatpush1.msra.mxu1 %v385_v2  ;;  %v374_v13 = vld [vmem:[%s1325_s1 + $0x18] sm:$0xff]  ;;  %v373_v14 = vld [vmem:[%s1325_s1 + $0x10] sm:$0xff]  ;;  %v372_v15 = vld [vmem:[%s1325_s1 + $0x8] sm:$0xff] }
  0x11   : > { %407 = vmatprep.subr.mxu0 %v994_v1  ;;  %883 = vmatprep.subr.mxu1 %v994_v1  ;;  %v371_v16 = vld [vmem:[%s1325_s1] sm:$0xff]  ;;  %v402_v17 = vld [vmem:[%s1325_s1 + $0xf8] sm:$0xff]  ;;  %v401_v18 = vld [vmem:[%s1325_s1 + $0xf0] sm:$0xff] }
  0x12   : > { %408 = vmatpush1.msra.mxu0 %v384_v3  ;;  %915 = vmatpush1.msra.mxu1 %v384_v3  ;;  %v400_v19 = vld [vmem:[%s1325_s1 + $0xe8] sm:$0xff]  ;;  %v399_v20 = vld [vmem:[%s1325_s1 + $0xe0] sm:$0xff]  ;;  %v398_v21 = vld [vmem:[%s1325_s1 + $0xd8] sm:$0xff] }
  0x13   : > { %409 = vmatprep.subr.mxu0 %v994_v1  ;;  %884 = vmatprep.subr.mxu1 %v994_v1  ;;  %v397_v22 = vld [vmem:[%s1325_s1 + $0xd0] sm:$0xff]  ;;  %v396_v23 = vld [vmem:[%s1325_s1 + $0xc8] sm:$0xff]  ;;  %v395_v24 = vld [vmem:[%s1325_s1 + $0xc0] sm:$0xff] }
  0x14   : > { %410 = vmatpush1.msra.mxu0 %v383_v4  ;;  %916 = vmatpush1.msra.mxu1 %v383_v4  ;;  %v394_v25 = vld [vmem:[%s1325_s1 + $0xb8] sm:$0xff]  ;;  %v393_v26 = vld [vmem:[%s1325_s1 + $0xb0] sm:$0xff]  ;;  %v392_v27 = vld [vmem:[%s1325_s1 + $0xa8] sm:$0xff] }
  0x15   : > { %411 = vmatprep.subr.mxu0 %v994_v1  ;;  %885 = vmatprep.subr.mxu1 %v994_v1  ;;  %v391_v28 = vld [vmem:[%s1325_s1 + $0xa0] sm:$0xff]  ;;  %v390_v29 = vld [vmem:[%s1325_s1 + $0x98] sm:$0xff]  ;;  %v389_v30 = vld [vmem:[%s1325_s1 + $0x90] sm:$0xff] }
  0x16   : > { %412 = vmatpush1.msra.mxu0 %v382_v5  ;;  %917 = vmatpush1.msra.mxu1 %v382_v5  ;;  %v388_v31 = vld [vmem:[%s1325_s1 + $0x88] sm:$0xff]  ;;  %v387_v33 = vld [vmem:[%s1325_s1 + $0x80] sm:$0xff]  ;;  %v348_v35 = vld [vmem:[%s1190_s6 + $0xd8] sm:$0xff] }
  0x17   : > { %413 = vmatprep.subr.mxu0 %v994_v1  ;;  %886 = vmatprep.subr.mxu1 %v994_v1  ;;  %v322_v32 = vld [vmem:[%s1190_s6 + $0x8] sm:$0xff]  ;;  %v321_v34 = vld [vmem:[%s1190_s6] sm:$0xff]  ;;  %v324_v36 = vld [vmem:[%s1190_s6 + $0x18] sm:$0xff] }
  0x18   : > { %414 = vmatpush1.msra.mxu0 %v381_v6  ;;  %918 = vmatpush1.msra.mxu1 %v381_v6  ;;  %v347_v37 = vld [vmem:[%s1190_s6 + $0xd0] sm:$0xff]  ;;  %v350_v38 = vld [vmem:[%s1190_s6 + $0xe8] sm:$0xff]  ;;  %v349_v41 = vld [vmem:[%s1190_s6 + $0xe0] sm:$0xff] }
  0x19   : > { %415 = vmatprep.subr.mxu0 %v994_v1  ;;  %887 = vmatprep.subr.mxu1 %v994_v1  ;;  %v323_v39 = vld [vmem:[%s1190_s6 + $0x10] sm:$0xff]  ;;  %v326_v40 = vld [vmem:[%s1190_s6 + $0x28] sm:$0xff]  ;;  %v352_v42 = vld [vmem:[%s1190_s6 + $0xf8] sm:$0xff] }
  0x1a   : > { %416 = vmatpush1.msra.mxu0 %v380_v7  ;;  %919 = vmatpush1.msra.mxu1 %v380_v7  ;;  %v325_v43 = vld [vmem:[%s1190_s6 + $0x20] sm:$0xff]  ;;  %v328_v44 = vld [vmem:[%s1190_s6 + $0x38] sm:$0xff]  ;;  %v351_v45 = vld [vmem:[%s1190_s6 + $0xf0] sm:$0xff] }
  0x1b   : > { %417 = vmatprep.subr.mxu0 %v994_v1  ;;  %888 = vmatprep.subr.mxu1 %v994_v1  ;;  %v354_v46 = vld [vmem:[%s1190_s6 + $0x108] sm:$0xff]  ;;  %v327_v47 = vld [vmem:[%s1190_s6 + $0x30] sm:$0xff]  ;;  %v353_v49 = vld [vmem:[%s1190_s6 + $0x100] sm:$0xff] }
  0x1c   : > { %418 = vmatpush1.msra.mxu0 %v379_v8  ;;  %920 = vmatpush1.msra.mxu1 %v379_v8  ;;  %v330_v48 = vld [vmem:[%s1190_s6 + $0x48] sm:$0xff]  ;;  %v356_v50 = vld [vmem:[%s1190_s6 + $0x118] sm:$0xff]  ;;  %v329_v51 = vld [vmem:[%s1190_s6 + $0x40] sm:$0xff] }
  0x1d   : > { %419 = vmatprep.subr.mxu0 %v994_v1  ;;  %889 = vmatprep.subr.mxu1 %v994_v1  ;;  %v332_v52 = vld [vmem:[%s1190_s6 + $0x58] sm:$0xff]  ;;  %v355_v53 = vld [vmem:[%s1190_s6 + $0x110] sm:$0xff]  ;;  %v358_v54 = vld [vmem:[%s1190_s6 + $0x128] sm:$0xff] }
  0x1e   : > { %420 = vmatpush1.msra.mxu0 %v378_v9  ;;  %921 = vmatpush1.msra.mxu1 %v378_v9  ;;  %v331_v55 = vld [vmem:[%s1190_s6 + $0x50] sm:$0xff]  ;;  %v334_v56 = vld [vmem:[%s1190_s6 + $0x68] sm:$0xff]  ;;  %v357_v57 = vld [vmem:[%s1190_s6 + $0x120] sm:$0xff] }
  0x1f   : > { %421 = vmatprep.subr.mxu0 %v994_v1  ;;  %890 = vmatprep.subr.mxu1 %v994_v1  ;;  %v360_v58 = vld [vmem:[%s1190_s6 + $0x138] sm:$0xff]  ;;  %v333_v59 = vld [vmem:[%s1190_s6 + $0x60] sm:$0xff]  ;;  %v359_v61 = vld [vmem:[%s1190_s6 + $0x130] sm:$0xff] }
  0x20   : > { %422 = vmatpush1.msra.mxu0 %v377_v10  ;;  %922 = vmatpush1.msra.mxu1 %v377_v10  ;;  %v336_v60 = vld [vmem:[%s1190_s6 + $0x78] sm:$0xff]  ;;  %v362_v62 = vld [vmem:[%s1190_s6 + $0x148] sm:$0xff]  ;;  %v335_v63 = vld [vmem:[%s1190_s6 + $0x70] sm:$0xff] }
  0x21   : > { %423 = vmatprep.subr.mxu0 %v994_v1  ;;  %891 = vmatprep.subr.mxu1 %v994_v1  ;;  %v338_v0 = vld [vmem:[%s1190_s6 + $0x88] sm:$0xff]  ;;  %v364_v2 = vld [vmem:[%s1190_s6 + $0x158] sm:$0xff]  ;;  %v337_v3 = vld [vmem:[%s1190_s6 + $0x80] sm:$0xff] }
  0x22   : > { %424 = vmatpush1.msra.mxu0 %v376_v11  ;;  %923 = vmatpush1.msra.mxu1 %v376_v11  ;;  %v340_v4 = vld [vmem:[%s1190_s6 + $0x98] sm:$0xff]  ;;  %v363_v5 = vld [vmem:[%s1190_s6 + $0x150] sm:$0xff]  ;;  %v366_v6 = vld [vmem:[%s1190_s6 + $0x168] sm:$0xff] }
  0x23   : > { %425 = vmatprep.subr.mxu0 %v994_v1  ;;  %892 = vmatprep.subr.mxu1 %v994_v1  ;;  %v339_v7 = vld [vmem:[%s1190_s6 + $0x90] sm:$0xff]  ;;  %v342_v8 = vld [vmem:[%s1190_s6 + $0xa8] sm:$0xff]  ;;  %v365_v9 = vld [vmem:[%s1190_s6 + $0x160] sm:$0xff] }
  0x24   : > { %426 = vmatpush1.msra.mxu0 %v375_v12  ;;  %924 = vmatpush1.msra.mxu1 %v375_v12  ;;  %v368_v10 = vld [vmem:[%s1190_s6 + $0x178] sm:$0xff]  ;;  %v341_v11 = vld [vmem:[%s1190_s6 + $0xa0] sm:$0xff] }
  0x25   : > { %427 = vmatprep.subr.mxu0 %v994_v1  ;;  %893 = vmatprep.subr.mxu1 %v994_v1  ;;  %v344_v12 = vld [vmem:[%s1190_s6 + $0xb8] sm:$0xff] }
  0x26   : > { %428 = vmatpush1.msra.mxu0 %v374_v13  ;;  %925 = vmatpush1.msra.mxu1 %v374_v13  ;;  %v367_v13 = vld [vmem:[%s1190_s6 + $0x170] sm:$0xff] }
  0x27   : > { %429 = vmatprep.subr.mxu0 %v994_v1  ;;  %894 = vmatprep.subr.mxu1 %v994_v1 }
  0x28   : > { %430 = vmatpush1.msra.mxu0 %v373_v14  ;;  %926 = vmatpush1.msra.mxu1 %v373_v14  ;;  %v370_v14 = vld [vmem:[%s1190_s6 + $0x188] sm:$0xff] }
  0x29   : > { %431 = vmatprep.subr.mxu0 %v994_v1  ;;  %895 = vmatprep.subr.mxu1 %v994_v1 }
  0x2a   : > { %432 = vmatpush1.msra.mxu0 %v372_v15  ;;  %927 = vmatpush1.msra.mxu1 %v372_v15  ;;  %v343_v15 = vld [vmem:[%s1190_s6 + $0xb0] sm:$0xff] }
  0x2b   : > { %433 = vmatprep.subr.mxu0 %v994_v1  ;;  %896 = vmatprep.subr.mxu1 %v994_v1 }
  0x2c   : > { %434 = vmatpush1.msra.mxu0 %v371_v16  ;;  %928 = vmatpush1.msra.mxu1 %v371_v16  ;;  %v346_v16 = vld [vmem:[%s1190_s6 + $0xc8] sm:$0xff] }
  0x2d   : > { %435 = vmatprep.subr.mxu0 %v994_v1  ;;  %897 = vmatprep.subr.mxu1 %v994_v1 }
  0x2e   : > { %436 = vmatpush2.msra.mxu0 %v402_v17  ;;  %929 = vmatpush2.msra.mxu1 %v402_v17  ;;  %v369_v17 = vld [vmem:[%s1190_s6 + $0x180] sm:$0xff] }
  0x2f   : > { %437 = vmatprep.subr.mxu0 %v994_v1  ;;  %898 = vmatprep.subr.mxu1 %v994_v1 }
  0x30   : > { %438 = vmatpush2.msra.mxu0 %v401_v18  ;;  %930 = vmatpush2.msra.mxu1 %v401_v18  ;;  %v345_v18 = vld [vmem:[%s1190_s6 + $0xc0] sm:$0xff] }
  0x31   : > { %439 = vmatprep.subr.mxu0 %v994_v1  ;;  %899 = vmatprep.subr.mxu1 %v994_v1 }
  0x32   : > { %440 = vmatpush2.msra.mxu0 %v400_v19  ;;  %931 = vmatpush2.msra.mxu1 %v400_v19  ;;  %v1257_v19 = vld [vmem:[%s1326_s2] ss:$0 sm:$0xff] }
  0x33   : > { %441 = vmatprep.subr.mxu0 %v994_v1  ;;  %900 = vmatprep.subr.mxu1 %v994_v1 }
  0x34   : > { %442 = vmatpush2.msra.mxu0 %v399_v20  ;;  %932 = vmatpush2.msra.mxu1 %v399_v20 }
  0x35   : > { %443 = vmatprep.subr.mxu0 %v994_v1  ;;  %901 = vmatprep.subr.mxu1 %v994_v1 }
  0x36   : > { %444 = vmatpush2.msra.mxu0 %v398_v21  ;;  %933 = vmatpush2.msra.mxu1 %v398_v21 }
  0x37   : > { %445 = vmatprep.subr.mxu0 %v994_v1  ;;  %902 = vmatprep.subr.mxu1 %v994_v1 }
  0x38   : > { %446 = vmatpush2.msra.mxu0 %v397_v22  ;;  %934 = vmatpush2.msra.mxu1 %v397_v22 }
  0x39   : > { %447 = vmatprep.subr.mxu0 %v994_v1  ;;  %903 = vmatprep.subr.mxu1 %v994_v1 }
  0x3a   : > { %448 = vmatpush2.msra.mxu0 %v396_v23  ;;  %935 = vmatpush2.msra.mxu1 %v396_v23 }
  0x3b   : > { %449 = vmatprep.subr.mxu0 %v994_v1  ;;  %904 = vmatprep.subr.mxu1 %v994_v1 }
  0x3c   : > { %450 = vmatpush2.msra.mxu0 %v395_v24  ;;  %936 = vmatpush2.msra.mxu1 %v395_v24 }
  0x3d   : > { %451 = vmatprep.subr.mxu0 %v994_v1  ;;  %905 = vmatprep.subr.mxu1 %v994_v1 }
  0x3e   : > { %452 = vmatpush2.msra.mxu0 %v394_v25  ;;  %937 = vmatpush2.msra.mxu1 %v394_v25 }
  0x3f   : > { %453 = vmatprep.subr.mxu0 %v994_v1  ;;  %906 = vmatprep.subr.mxu1 %v994_v1 }
  0x40   : > { %454 = vmatpush2.msra.mxu0 %v393_v26  ;;  %938 = vmatpush2.msra.mxu1 %v393_v26 }
  0x41   : > { %455 = vmatprep.subr.mxu0 %v994_v1  ;;  %907 = vmatprep.subr.mxu1 %v994_v1 }
  0x42   : > { %456 = vmatpush2.msra.mxu0 %v392_v27  ;;  %939 = vmatpush2.msra.mxu1 %v392_v27 }
  0x43   : > { %457 = vmatprep.subr.mxu0 %v994_v1  ;;  %908 = vmatprep.subr.mxu1 %v994_v1 }
  0x44   : > { %458 = vmatpush2.msra.mxu0 %v391_v28  ;;  %940 = vmatpush2.msra.mxu1 %v391_v28 }
  0x45   : > { %459 = vmatprep.subr.mxu0 %v994_v1  ;;  %909 = vmatprep.subr.mxu1 %v994_v1 }
  0x46   : > { %460 = vmatpush2.msra.mxu0 %v390_v29  ;;  %941 = vmatpush2.msra.mxu1 %v390_v29 }
  0x47   : > { %461 = vmatprep.subr.mxu0 %v994_v1  ;;  %910 = vmatprep.subr.mxu1 %v994_v1 }
  0x48   : > { %462 = vmatpush2.msra.mxu0 %v389_v30  ;;  %942 = vmatpush2.msra.mxu1 %v389_v30 }
  0x49   : > { %463 = vmatprep.subr.mxu0 %v994_v1  ;;  %911 = vmatprep.subr.mxu1 %v994_v1 }
  0x4a   : > { %464 = vmatpush2.msra.mxu0 %v388_v31  ;;  %943 = vmatpush2.msra.mxu1 %v388_v31 }
  0x4b   : > { %465 = vmatprep.subr.mxu0 %v994_v1  ;;  %467 = vmatprep.mubr.f32.mxu0 %v322_v32 }
  0x4c   : > { %466 = vmatpush2.msra.mxu0 %v387_v33  ;;  %912 = vmatprep.subr.mxu1 %v994_v1  ;;  %v361_v1 = vld [vmem:[%s1190_s6 + $0x140] sm:$0xff] }
  0x4d   : > { %468 = vmatmul.mubr.f32.vlgmr.msra.gmra.mxu0 %v321_v34  ;;  %944 = vmatpush2.msra.mxu1 %v387_v33 }
  0x4e   : > { %532 = vmatprep.mubr.f32.mxu1 %v348_v35  ;;  %472 = vmatprep.mubr.f32.mxu0 %v324_v36 }
  0x4f   : > { %533 = vmatmul.mubr.f32.vlgmr.msra.gmra.mxu1 %v347_v37 }
  0x50   : > { %537 = vmatprep.mubr.f32.mxu1 %v350_v38 }
  0x51   : > { %473 = vmatmul.mubr.f32.gmra.mxu0 %v323_v39 }
  0x52   : > { %477 = vmatprep.mubr.f32.mxu0 %v326_v40 }
  0x53   : > { %538 = vmatmul.mubr.f32.gmra.mxu1 %v349_v41 }
  0x54   : > { %542 = vmatprep.mubr.f32.mxu1 %v352_v42 }
  0x55   : > { %478 = vmatmul.mubr.f32.gmra.mxu0 %v325_v43 }
  0x56   : > { %482 = vmatprep.mubr.f32.mxu0 %v328_v44 }
  0x57   : > { %543 = vmatmul.mubr.f32.gmra.mxu1 %v351_v45 }
  0x58   : > { %547 = vmatprep.mubr.f32.mxu1 %v354_v46 }
  0x59   : > { %483 = vmatmul.mubr.f32.gmra.mxu0 %v327_v47 }
  0x5a   : > { %487 = vmatprep.mubr.f32.mxu0 %v330_v48 }
  0x5b   : > { %548 = vmatmul.mubr.f32.gmra.mxu1 %v353_v49 }
  0x5c   : > { %552 = vmatprep.mubr.f32.mxu1 %v356_v50 }
  0x5d   : > { %488 = vmatmul.mubr.f32.gmra.mxu0 %v329_v51 }
  0x5e   : > { %492 = vmatprep.mubr.f32.mxu0 %v332_v52 }
  0x5f   : > { %553 = vmatmul.mubr.f32.gmra.mxu1 %v355_v53 }
  0x60   : > { %557 = vmatprep.mubr.f32.mxu1 %v358_v54 }
  0x61   : > { %493 = vmatmul.mubr.f32.gmra.mxu0 %v331_v55 }
  0x62   : > { %497 = vmatprep.mubr.f32.mxu0 %v334_v56 }
  0x63   : > { %558 = vmatmul.mubr.f32.gmra.mxu1 %v357_v57 }
  0x64   : > { %562 = vmatprep.mubr.f32.mxu1 %v360_v58 }
  0x65   : > { %498 = vmatmul.mubr.f32.gmra.mxu0 %v333_v59 }
  0x66   : > { %502 = vmatprep.mubr.f32.mxu0 %v336_v60 }
  0x67   : > { %563 = vmatmul.mubr.f32.gmra.mxu1 %v359_v61 }
  0x68   : > { %567 = vmatprep.mubr.f32.mxu1 %v362_v62 }
  0x69   : > { %503 = vmatmul.mubr.f32.gmra.mxu0 %v335_v63 }
  0x6a   : > { %507 = vmatprep.mubr.f32.mxu0 %v338_v0 }
  0x6b   : > { %568 = vmatmul.mubr.f32.gmra.mxu1 %v361_v1 }
  0x6c   : > { %572 = vmatprep.mubr.f32.mxu1 %v364_v2 }
  0x6d   : > { %508 = vmatmul.mubr.f32.gmra.mxu0 %v337_v3 }
  0x6e   : > { %512 = vmatprep.mubr.f32.mxu0 %v340_v4 }
  0x6f   : > { %573 = vmatmul.mubr.f32.gmra.mxu1 %v363_v5 }
  0x70   : > { %577 = vmatprep.mubr.f32.mxu1 %v366_v6 }
  0x71   : > { %513 = vmatmul.mubr.f32.gmra.mxu0 %v339_v7 }
  0x72   : > { %517 = vmatprep.mubr.f32.mxu0 %v342_v8 }
  0x73   : > { %578 = vmatmul.mubr.f32.gmra.mxu1 %v365_v9 }
  0x74   : > { %582 = vmatprep.mubr.f32.mxu1 %v368_v10 }
  0x75   : > { %518 = vmatmul.mubr.f32.gmra.mxu0 %v341_v11 }
  0x76   : > { %522 = vmatprep.mubr.f32.mxu0 %v344_v12 }
  0x77   : > { %583 = vmatmul.mubr.f32.gmra.mxu1 %v367_v13 }
  0x78   : > { %587 = vmatprep.mubr.f32.mxu1 %v370_v14 }
  0x79   : > { %523 = vmatmul.mubr.f32.gmra.mxu0 %v343_v15 }
  0x7a   : > { %527 = vmatprep.mubr.f32.mxu0 %v346_v16 }
  0x7b   : > { %588 = vmatmul.mubr.f32.gmra.mxu1 %v369_v17 }
  0x7d   : > { %528 = vmatmul.mubr.f32.gmra.mxu0 %v345_v18 }
 0x10d   : > { %v469_v20 = vpop.f32.mrf.mxu0 }
 0x10e   : > { %v678_v21 = vadd.f32 %v1257_v19, %v469_v20 }
 0x10f   : > { %v471_v22 = vpop.f32.mrf.mxu0  ;;  %v534_v23 = vpop.f32.mrf.mxu1 }
 0x110   : > { %v703_v24 = vmax.f32 %v678_v21, 0.0  ;;  %v691_v25 = vadd.f32 %v1257_v19, %v534_v23 }
 0x111   : > { %v474_v26 = vpop.f32.mrf.mxu0  ;;  %v536_v27 = vpop.f32.mrf.mxu1 }
 0x112   : > { %728 = vst [vmem:[%s1264_s20] sm:$0xff] %v703_v24  ;;  %v716_v28 = vmax.f32 %v691_v25, 0.0  ;;  %v679_v29 = vadd.f32 %v1257_v19, %v474_v26 }
 0x113   : > { %v476_v30 = vpop.f32.mrf.mxu0  ;;  %v539_v31 = vpop.f32.mrf.mxu1 }
 0x114   : > { %741 = vst [vmem:[%s1264_s20 + $0x68] sm:$0xff] %v716_v28  ;;  %v704_v32 = vmax.f32 %v679_v29, 0.0  ;;  %v692_v33 = vadd.f32 %v1257_v19, %v539_v31 }
 0x115   : > { %v479_v34 = vpop.f32.mrf.mxu0  ;;  %v541_v35 = vpop.f32.mrf.mxu1 }
 0x116   : > { %729 = vst [vmem:[%s1264_s20 + $0x8] sm:$0xff] %v704_v32  ;;  %v717_v36 = vmax.f32 %v692_v33, 0.0  ;;  %v680_v37 = vadd.f32 %v1257_v19, %v479_v34 }
 0x117   : > { %v481_v38 = vpop.f32.mrf.mxu0  ;;  %v544_v39 = vpop.f32.mrf.mxu1 }
 0x118   : > { %742 = vst [vmem:[%s1264_s20 + $0x70] sm:$0xff] %v717_v36  ;;  %v705_v40 = vmax.f32 %v680_v37, 0.0  ;;  %v693_v41 = vadd.f32 %v1257_v19, %v544_v39 }
 0x119   : > { %v484_v42 = vpop.f32.mrf.mxu0  ;;  %v546_v43 = vpop.f32.mrf.mxu1 }
 0x11a   : > { %730 = vst [vmem:[%s1264_s20 + $0x10] sm:$0xff] %v705_v40  ;;  %v718_v44 = vmax.f32 %v693_v41, 0.0  ;;  %v681_v45 = vadd.f32 %v1257_v19, %v484_v42 }
 0x11b   : > { %v486_v46 = vpop.f32.mrf.mxu0  ;;  %v549_v47 = vpop.f32.mrf.mxu1 }
 0x11c   : > { %743 = vst [vmem:[%s1264_s20 + $0x78] sm:$0xff] %v718_v44  ;;  %v706_v48 = vmax.f32 %v681_v45, 0.0  ;;  %v694_v49 = vadd.f32 %v1257_v19, %v549_v47 }
 0x11d   : > { %v489_v50 = vpop.f32.mrf.mxu0  ;;  %v551_v51 = vpop.f32.mrf.mxu1 }
 0x11e   : > { %731 = vst [vmem:[%s1264_s20 + $0x18] sm:$0xff] %v706_v48  ;;  %v719_v52 = vmax.f32 %v694_v49, 0.0  ;;  %v682_v53 = vadd.f32 %v1257_v19, %v489_v50 }
 0x11f   : > { %v491_v54 = vpop.f32.mrf.mxu0  ;;  %v554_v55 = vpop.f32.mrf.mxu1 }
 0x120   : > { %744 = vst [vmem:[%s1264_s20 + $0x80] sm:$0xff] %v719_v52  ;;  %v707_v56 = vmax.f32 %v682_v53, 0.0  ;;  %v695_v57 = vadd.f32 %v1257_v19, %v554_v55 }
 0x121   : > { %v494_v58 = vpop.f32.mrf.mxu0  ;;  %v556_v59 = vpop.f32.mrf.mxu1 }
 0x122   : > { %732 = vst [vmem:[%s1264_s20 + $0x20] sm:$0xff] %v707_v56  ;;  %v720_v60 = vmax.f32 %v695_v57, 0.0  ;;  %v683_v61 = vadd.f32 %v1257_v19, %v494_v58 }
 0x123   : > { %v496_v62 = vpop.f32.mrf.mxu0  ;;  %v559_v63 = vpop.f32.mrf.mxu1 }
 0x124   : > { %745 = vst [vmem:[%s1264_s20 + $0x88] sm:$0xff] %v720_v60  ;;  %v708_v0 = vmax.f32 %v683_v61, 0.0  ;;  %v696_v1 = vadd.f32 %v1257_v19, %v559_v63 }
 0x125   : > { %v499_v2 = vpop.f32.mrf.mxu0  ;;  %v561_v3 = vpop.f32.mrf.mxu1 }
 0x126   : > { %733 = vst [vmem:[%s1264_s20 + $0x28] sm:$0xff] %v708_v0  ;;  %v721_v4 = vmax.f32 %v696_v1, 0.0  ;;  %v684_v5 = vadd.f32 %v1257_v19, %v499_v2 }
 0x127   : > { %v501_v6 = vpop.f32.mrf.mxu0  ;;  %v564_v7 = vpop.f32.mrf.mxu1 }
 0x128   : > { %746 = vst [vmem:[%s1264_s20 + $0x90] sm:$0xff] %v721_v4  ;;  %v709_v8 = vmax.f32 %v684_v5, 0.0  ;;  %v697_v9 = vadd.f32 %v1257_v19, %v564_v7 }
 0x129   : > { %v504_v10 = vpop.f32.mrf.mxu0  ;;  %v566_v11 = vpop.f32.mrf.mxu1 }
 0x12a   : > { %734 = vst [vmem:[%s1264_s20 + $0x30] sm:$0xff] %v709_v8  ;;  %v722_v12 = vmax.f32 %v697_v9, 0.0  ;;  %v685_v13 = vadd.f32 %v1257_v19, %v504_v10 }
 0x12b   : > { %v506_v14 = vpop.f32.mrf.mxu0  ;;  %v569_v15 = vpop.f32.mrf.mxu1 }
 0x12c   : > { %747 = vst [vmem:[%s1264_s20 + $0x98] sm:$0xff] %v722_v12  ;;  %v710_v16 = vmax.f32 %v685_v13, 0.0  ;;  %v698_v17 = vadd.f32 %v1257_v19, %v569_v15 }
 0x12d   : > { %v509_v18 = vpop.f32.mrf.mxu0  ;;  %v571_v20 = vpop.f32.mrf.mxu1 }
 0x12e   : > { %735 = vst [vmem:[%s1264_s20 + $0x38] sm:$0xff] %v710_v16  ;;  %v723_v21 = vmax.f32 %v698_v17, 0.0  ;;  %v686_v22 = vadd.f32 %v1257_v19, %v509_v18 }
 0x12f   : > { %v511_v23 = vpop.f32.mrf.mxu0  ;;  %v574_v24 = vpop.f32.mrf.mxu1 }
 0x130   : > { %748 = vst [vmem:[%s1264_s20 + $0xa0] sm:$0xff] %v723_v21  ;;  %v711_v25 = vmax.f32 %v686_v22, 0.0  ;;  %v699_v26 = vadd.f32 %v1257_v19, %v574_v24 }
 0x131   : > { %v514_v27 = vpop.f32.mrf.mxu0  ;;  %v576_v28 = vpop.f32.mrf.mxu1 }
 0x132   : > { %736 = vst [vmem:[%s1264_s20 + $0x40] sm:$0xff] %v711_v25  ;;  %v724_v29 = vmax.f32 %v699_v26, 0.0  ;;  %v687_v30 = vadd.f32 %v1257_v19, %v514_v27 }
 0x133   : > { %v516_v31 = vpop.f32.mrf.mxu0  ;;  %v579_v32 = vpop.f32.mrf.mxu1 }
 0x134   : > { %749 = vst [vmem:[%s1264_s20 + $0xa8] sm:$0xff] %v724_v29  ;;  %v712_v33 = vmax.f32 %v687_v30, 0.0  ;;  %v700_v34 = vadd.f32 %v1257_v19, %v579_v32 }
 0x135   : > { %v519_v35 = vpop.f32.mrf.mxu0  ;;  %v581_v36 = vpop.f32.mrf.mxu1 }
 0x136   : > { %737 = vst [vmem:[%s1264_s20 + $0x48] sm:$0xff] %v712_v33  ;;  %v725_v37 = vmax.f32 %v700_v34, 0.0  ;;  %v688_v38 = vadd.f32 %v1257_v19, %v519_v35 }
 0x137   : > { %v521_v39 = vpop.f32.mrf.mxu0  ;;  %v584_v40 = vpop.f32.mrf.mxu1 }
 0x138   : > { %750 = vst [vmem:[%s1264_s20 + $0xb0] sm:$0xff] %v725_v37  ;;  %v713_v41 = vmax.f32 %v688_v38, 0.0  ;;  %v701_v42 = vadd.f32 %v1257_v19, %v584_v40 }
 0x139   : > { %v524_v43 = vpop.f32.mrf.mxu0  ;;  %v586_v44 = vpop.f32.mrf.mxu1 }
 0x13a   : > { %738 = vst [vmem:[%s1264_s20 + $0x50] sm:$0xff] %v713_v41  ;;  %v726_v45 = vmax.f32 %v701_v42, 0.0  ;;  %v689_v46 = vadd.f32 %v1257_v19, %v524_v43 }
 0x13b   : > { %v526_v47 = vpop.f32.mrf.mxu0  ;;  %v589_v48 = vpop.f32.mrf.mxu1 }
 0x13c   : > { %751 = vst [vmem:[%s1264_s20 + $0xb8] sm:$0xff] %v726_v45  ;;  %v714_v49 = vmax.f32 %v689_v46, 0.0  ;;  %v702_v50 = vadd.f32 %v1257_v19, %v589_v48 }
 0x13d   : > { %v529_v51 = vpop.f32.mrf.mxu0  ;;  %v591_v52 = vpop.f32.mrf.mxu1 }
 0x13e   : > { %739 = vst [vmem:[%s1264_s20 + $0x58] sm:$0xff] %v714_v49  ;;  %v727_v53 = vmax.f32 %v702_v50, 0.0  ;;  %v690_v54 = vadd.f32 %v1257_v19, %v529_v51 }
 0x13f   : > { %v531_v55 = vpop.f32.mrf.mxu0 }
 0x140   : > { %752 = vst [vmem:[%s1264_s20 + $0xc0] sm:$0xff] %v727_v53  ;;  %v715_v56 = vmax.f32 %v690_v54, 0.0 }
 0x142   : > { %740 = vst [vmem:[%s1264_s20 + $0x60] sm:$0xff] %v715_v56 }
 0x143 PF: > { %s13_s14 = sadd.s32 1, %s992_s14   ;;  %s1328_s12 = smov %s988_s13 }
 0x144   : > { %p10_p5 = scmp.ge.s32.totalorder %s13_s14, 6   ;;  %s1329_s13 = smov %s1331_s15 }
 0x146   :  { %12 = sbr.rel (!%p10_p5) target bundleno = 2 (0x2), region = 76 }

// kernel: forward.5
= control target key start
LH: loop header
LB: loop body
LE: loop exit
PB: predicated region body
PF: predicated region fallthrough
CT: control target
= control target key end

     0   :  { %v690_v0 = vmov 0.0   ;;  %s1308_s1 = inlined_call_operand.vmem [shape: f32[512,128], index: 1, kind: input, shape index: {}]   ;;  %s1309_s0 = inlined_call_operand.vmem [shape: f32[168,512], index: 0, kind: input, shape index: {}]   ;;  %s1310_s2 = inlined_call_operand.vmem [shape: f32[1,128], index: 2, kind: input, shape index: {}]   ;;  %s1311_s3 = inlined_call_operand.vmem [shape: f32[168,128], index: 3, kind: output, shape index: {}]  }
   0x1   :  { %208 = vmatprep.subr.mxu0 %v690_v0  ;;  %378 = vmatprep.subr.mxu1 %v690_v0  ;;  %v159_v1 = vld [vmem:[%s1308_s1 + $0x78] sm:$0xff]  ;;  %v158_v3 = vld [vmem:[%s1308_s1 + $0x70] sm:$0xff]  ;;  %v157_v5 = vld [vmem:[%s1308_s1 + $0x68] sm:$0xff] }
   0x2   :  { %v191_v2 = vld [vmem:[%s1308_s1 + $0x178] sm:$0xff]  ;;  %209 = vmatpush1.msra.mxu0 %v159_v1  ;;  %v190_v4 = vld [vmem:[%s1308_s1 + $0x170] sm:$0xff]  ;;  %v189_v6 = vld [vmem:[%s1308_s1 + $0x168] sm:$0xff] }
   0x3   :  { %379 = vmatpush1.msra.mxu1 %v191_v2  ;;  %210 = vmatprep.subr.mxu0 %v690_v0  ;;  %v156_v7 = vld [vmem:[%s1308_s1 + $0x60] sm:$0xff]  ;;  %v155_v9 = vld [vmem:[%s1308_s1 + $0x58] sm:$0xff]  ;;  %v154_v11 = vld [vmem:[%s1308_s1 + $0x50] sm:$0xff] }
   0x4   :  { %380 = vmatprep.subr.mxu1 %v690_v0  ;;  %211 = vmatpush1.msra.mxu0 %v158_v3  ;;  %v188_v8 = vld [vmem:[%s1308_s1 + $0x160] sm:$0xff]  ;;  %v187_v10 = vld [vmem:[%s1308_s1 + $0x158] sm:$0xff]  ;;  %v186_v12 = vld [vmem:[%s1308_s1 + $0x150] sm:$0xff] }
   0x5   :  { %381 = vmatpush1.msra.mxu1 %v190_v4  ;;  %212 = vmatprep.subr.mxu0 %v690_v0  ;;  %v153_v13 = vld [vmem:[%s1308_s1 + $0x48] sm:$0xff]  ;;  %v152_v15 = vld [vmem:[%s1308_s1 + $0x40] sm:$0xff]  ;;  %v151_v17 = vld [vmem:[%s1308_s1 + $0x38] sm:$0xff] }
   0x6   :  { %382 = vmatprep.subr.mxu1 %v690_v0  ;;  %213 = vmatpush1.msra.mxu0 %v157_v5  ;;  %v185_v14 = vld [vmem:[%s1308_s1 + $0x148] sm:$0xff]  ;;  %v184_v16 = vld [vmem:[%s1308_s1 + $0x140] sm:$0xff]  ;;  %v183_v18 = vld [vmem:[%s1308_s1 + $0x138] sm:$0xff] }
   0x7   :  { %383 = vmatpush1.msra.mxu1 %v189_v6  ;;  %214 = vmatprep.subr.mxu0 %v690_v0  ;;  %v150_v19 = vld [vmem:[%s1308_s1 + $0x30] sm:$0xff]  ;;  %v149_v21 = vld [vmem:[%s1308_s1 + $0x28] sm:$0xff]  ;;  %v148_v23 = vld [vmem:[%s1308_s1 + $0x20] sm:$0xff] }
   0x8   :  { %384 = vmatprep.subr.mxu1 %v690_v0  ;;  %215 = vmatpush1.msra.mxu0 %v156_v7  ;;  %v182_v20 = vld [vmem:[%s1308_s1 + $0x130] sm:$0xff]  ;;  %v181_v22 = vld [vmem:[%s1308_s1 + $0x128] sm:$0xff]  ;;  %v180_v24 = vld [vmem:[%s1308_s1 + $0x120] sm:$0xff] }
   0x9   :  { %385 = vmatpush1.msra.mxu1 %v188_v8  ;;  %216 = vmatprep.subr.mxu0 %v690_v0  ;;  %v147_v25 = vld [vmem:[%s1308_s1 + $0x18] sm:$0xff]  ;;  %v146_v27 = vld [vmem:[%s1308_s1 + $0x10] sm:$0xff]  ;;  %v145_v29 = vld [vmem:[%s1308_s1 + $0x8] sm:$0xff] }
   0xa   :  { %386 = vmatprep.subr.mxu1 %v690_v0  ;;  %217 = vmatpush1.msra.mxu0 %v155_v9  ;;  %v179_v26 = vld [vmem:[%s1308_s1 + $0x118] sm:$0xff]  ;;  %v178_v28 = vld [vmem:[%s1308_s1 + $0x110] sm:$0xff]  ;;  %v177_v30 = vld [vmem:[%s1308_s1 + $0x108] sm:$0xff] }
   0xb   :  { %387 = vmatpush1.msra.mxu1 %v187_v10  ;;  %218 = vmatprep.subr.mxu0 %v690_v0  ;;  %v144_v31 = vld [vmem:[%s1308_s1] sm:$0xff]  ;;  %v175_v33 = vld [vmem:[%s1308_s1 + $0xf8] sm:$0xff]  ;;  %v174_v35 = vld [vmem:[%s1308_s1 + $0xf0] sm:$0xff] }
   0xc   :  { %388 = vmatprep.subr.mxu1 %v690_v0  ;;  %219 = vmatpush1.msra.mxu0 %v154_v11  ;;  %v176_v32 = vld [vmem:[%s1308_s1 + $0x100] sm:$0xff]  ;;  %v207_v34 = vld [vmem:[%s1308_s1 + $0x1f8] sm:$0xff]  ;;  %v206_v36 = vld [vmem:[%s1308_s1 + $0x1f0] sm:$0xff] }
   0xd   :  { %389 = vmatpush1.msra.mxu1 %v186_v12  ;;  %220 = vmatprep.subr.mxu0 %v690_v0  ;;  %v173_v37 = vld [vmem:[%s1308_s1 + $0xe8] sm:$0xff]  ;;  %v172_v39 = vld [vmem:[%s1308_s1 + $0xe0] sm:$0xff]  ;;  %v171_v41 = vld [vmem:[%s1308_s1 + $0xd8] sm:$0xff] }
   0xe   :  { %390 = vmatprep.subr.mxu1 %v690_v0  ;;  %221 = vmatpush1.msra.mxu0 %v153_v13  ;;  %v205_v38 = vld [vmem:[%s1308_s1 + $0x1e8] sm:$0xff]  ;;  %v204_v40 = vld [vmem:[%s1308_s1 + $0x1e0] sm:$0xff]  ;;  %v203_v42 = vld [vmem:[%s1308_s1 + $0x1d8] sm:$0xff] }
   0xf   :  { %391 = vmatpush1.msra.mxu1 %v185_v14  ;;  %222 = vmatprep.subr.mxu0 %v690_v0  ;;  %v170_v43 = vld [vmem:[%s1308_s1 + $0xd0] sm:$0xff]  ;;  %v169_v45 = vld [vmem:[%s1308_s1 + $0xc8] sm:$0xff]  ;;  %v168_v47 = vld [vmem:[%s1308_s1 + $0xc0] sm:$0xff] }
  0x10   :  { %392 = vmatprep.subr.mxu1 %v690_v0  ;;  %223 = vmatpush1.msra.mxu0 %v152_v15  ;;  %v202_v44 = vld [vmem:[%s1308_s1 + $0x1d0] sm:$0xff]  ;;  %v201_v46 = vld [vmem:[%s1308_s1 + $0x1c8] sm:$0xff]  ;;  %v200_v48 = vld [vmem:[%s1308_s1 + $0x1c0] sm:$0xff] }
  0x11   :  { %393 = vmatpush1.msra.mxu1 %v184_v16  ;;  %224 = vmatprep.subr.mxu0 %v690_v0  ;;  %v167_v49 = vld [vmem:[%s1308_s1 + $0xb8] sm:$0xff]  ;;  %v166_v51 = vld [vmem:[%s1308_s1 + $0xb0] sm:$0xff]  ;;  %v165_v53 = vld [vmem:[%s1308_s1 + $0xa8] sm:$0xff] }
  0x12   :  { %394 = vmatprep.subr.mxu1 %v690_v0  ;;  %225 = vmatpush1.msra.mxu0 %v151_v17  ;;  %v199_v50 = vld [vmem:[%s1308_s1 + $0x1b8] sm:$0xff]  ;;  %v198_v52 = vld [vmem:[%s1308_s1 + $0x1b0] sm:$0xff]  ;;  %v197_v54 = vld [vmem:[%s1308_s1 + $0x1a8] sm:$0xff] }
  0x13   :  { %395 = vmatpush1.msra.mxu1 %v183_v18  ;;  %226 = vmatprep.subr.mxu0 %v690_v0  ;;  %v164_v55 = vld [vmem:[%s1308_s1 + $0xa0] sm:$0xff]  ;;  %v163_v57 = vld [vmem:[%s1308_s1 + $0x98] sm:$0xff]  ;;  %v162_v59 = vld [vmem:[%s1308_s1 + $0x90] sm:$0xff] }
  0x14   :  { %396 = vmatprep.subr.mxu1 %v690_v0  ;;  %227 = vmatpush1.msra.mxu0 %v150_v19  ;;  %v196_v56 = vld [vmem:[%s1308_s1 + $0x1a0] sm:$0xff]  ;;  %v195_v58 = vld [vmem:[%s1308_s1 + $0x198] sm:$0xff]  ;;  %v194_v60 = vld [vmem:[%s1308_s1 + $0x190] sm:$0xff] }
  0x15   :  { %397 = vmatpush1.msra.mxu1 %v182_v20  ;;  %228 = vmatprep.subr.mxu0 %v690_v0  ;;  %v161_v61 = vld [vmem:[%s1308_s1 + $0x88] sm:$0xff]  ;;  %v160_v63 = vld [vmem:[%s1308_s1 + $0x80] sm:$0xff]  ;;  %v63_v3 = vld [vmem:[%s1309_s0 + $0x18] sm:$0xff] }
  0x16   :  { %398 = vmatprep.subr.mxu1 %v690_v0  ;;  %229 = vmatpush1.msra.mxu0 %v149_v21  ;;  %v193_v62 = vld [vmem:[%s1308_s1 + $0x188] sm:$0xff]  ;;  %v192_v2 = vld [vmem:[%s1308_s1 + $0x180] sm:$0xff]  ;;  %v62_v5 = vld [vmem:[%s1309_s0 + $0x10] sm:$0xff] }
  0x17   :  { %399 = vmatpush1.msra.mxu1 %v181_v22  ;;  %230 = vmatprep.subr.mxu0 %v690_v0  ;;  %v61_v1 = vld [vmem:[%s1309_s0 + $0x8] sm:$0xff]  ;;  %v60_v4 = vld [vmem:[%s1309_s0] sm:$0xff]  ;;  %v67_v7 = vld [vmem:[%s1309_s0 + $0x38] sm:$0xff] }
  0x18   :  { %400 = vmatprep.subr.mxu1 %v690_v0  ;;  %231 = vmatpush1.msra.mxu0 %v148_v23  ;;  %v65_v6 = vld [vmem:[%s1309_s0 + $0x28] sm:$0xff]  ;;  %v66_v8 = vld [vmem:[%s1309_s0 + $0x30] sm:$0xff]  ;;  %v71_v10 = vld [vmem:[%s1309_s0 + $0x58] sm:$0xff] }
  0x19   :  { %401 = vmatpush1.msra.mxu1 %v180_v24  ;;  %232 = vmatprep.subr.mxu0 %v690_v0  ;;  %v69_v9 = vld [vmem:[%s1309_s0 + $0x48] sm:$0xff]  ;;  %v68_v11 = vld [vmem:[%s1309_s0 + $0x40] sm:$0xff]  ;;  %v70_v12 = vld [vmem:[%s1309_s0 + $0x50] sm:$0xff] }
  0x1a   :  { %402 = vmatprep.subr.mxu1 %v690_v0  ;;  %233 = vmatpush1.msra.mxu0 %v147_v25  ;;  %v73_v13 = vld [vmem:[%s1309_s0 + $0x68] sm:$0xff]  ;;  %v75_v14 = vld [vmem:[%s1309_s0 + $0x78] sm:$0xff]  ;;  %v72_v15 = vld [vmem:[%s1309_s0 + $0x60] sm:$0xff] }
  0x1b   :  { %403 = vmatpush1.msra.mxu1 %v179_v26  ;;  %234 = vmatprep.subr.mxu0 %v690_v0  ;;  %v74_v16 = vld [vmem:[%s1309_s0 + $0x70] sm:$0xff]  ;;  %v77_v17 = vld [vmem:[%s1309_s0 + $0x88] sm:$0xff]  ;;  %v79_v18 = vld [vmem:[%s1309_s0 + $0x98] sm:$0xff] }
  0x1c   :  { %404 = vmatprep.subr.mxu1 %v690_v0  ;;  %235 = vmatpush1.msra.mxu0 %v146_v27  ;;  %v76_v19 = vld [vmem:[%s1309_s0 + $0x80] sm:$0xff]  ;;  %v78_v20 = vld [vmem:[%s1309_s0 + $0x90] sm:$0xff]  ;;  %v81_v21 = vld [vmem:[%s1309_s0 + $0xa8] sm:$0xff] }
  0x1d   :  { %405 = vmatpush1.msra.mxu1 %v178_v28  ;;  %236 = vmatprep.subr.mxu0 %v690_v0  ;;  %v83_v22 = vld [vmem:[%s1309_s0 + $0xb8] sm:$0xff]  ;;  %v80_v23 = vld [vmem:[%s1309_s0 + $0xa0] sm:$0xff]  ;;  %v82_v24 = vld [vmem:[%s1309_s0 + $0xb0] sm:$0xff] }
  0x1e   :  { %406 = vmatprep.subr.mxu1 %v690_v0  ;;  %237 = vmatpush1.msra.mxu0 %v145_v29  ;;  %v85_v25 = vld [vmem:[%s1309_s0 + $0xc8] sm:$0xff]  ;;  %v87_v26 = vld [vmem:[%s1309_s0 + $0xd8] sm:$0xff]  ;;  %v84_v27 = vld [vmem:[%s1309_s0 + $0xc0] sm:$0xff] }
  0x1f   :  { %407 = vmatpush1.msra.mxu1 %v177_v30  ;;  %238 = vmatprep.subr.mxu0 %v690_v0  ;;  %v86_v28 = vld [vmem:[%s1309_s0 + $0xd0] sm:$0xff]  ;;  %v89_v29 = vld [vmem:[%s1309_s0 + $0xe8] sm:$0xff]  ;;  %v91_v30 = vld [vmem:[%s1309_s0 + $0xf8] sm:$0xff] }
  0x20   :  { %408 = vmatprep.subr.mxu1 %v690_v0  ;;  %239 = vmatpush1.msra.mxu0 %v144_v31  ;;  %v88_v31 = vld [vmem:[%s1309_s0 + $0xe0] sm:$0xff] }
  0x21   :  { %409 = vmatpush1.msra.mxu1 %v176_v32  ;;  %240 = vmatprep.subr.mxu0 %v690_v0  ;;  %v90_v32 = vld [vmem:[%s1309_s0 + $0xf0] sm:$0xff] }
  0x22   :  { %410 = vmatprep.subr.mxu1 %v690_v0  ;;  %241 = vmatpush2.msra.mxu0 %v175_v33  ;;  %v93_v33 = vld [vmem:[%s1309_s0 + $0x108] sm:$0xff] }
  0x23   :  { %411 = vmatpush2.msra.mxu1 %v207_v34  ;;  %242 = vmatprep.subr.mxu0 %v690_v0  ;;  %v95_v34 = vld [vmem:[%s1309_s0 + $0x118] sm:$0xff] }
  0x24   :  { %412 = vmatprep.subr.mxu1 %v690_v0  ;;  %243 = vmatpush2.msra.mxu0 %v174_v35  ;;  %v92_v35 = vld [vmem:[%s1309_s0 + $0x100] sm:$0xff] }
  0x25   :  { %413 = vmatpush2.msra.mxu1 %v206_v36  ;;  %244 = vmatprep.subr.mxu0 %v690_v0  ;;  %v94_v36 = vld [vmem:[%s1309_s0 + $0x110] sm:$0xff] }
  0x26   :  { %414 = vmatprep.subr.mxu1 %v690_v0  ;;  %245 = vmatpush2.msra.mxu0 %v173_v37  ;;  %v97_v37 = vld [vmem:[%s1309_s0 + $0x128] sm:$0xff] }
  0x27   :  { %415 = vmatpush2.msra.mxu1 %v205_v38  ;;  %246 = vmatprep.subr.mxu0 %v690_v0  ;;  %v99_v38 = vld [vmem:[%s1309_s0 + $0x138] sm:$0xff] }
  0x28   :  { %416 = vmatprep.subr.mxu1 %v690_v0  ;;  %247 = vmatpush2.msra.mxu0 %v172_v39  ;;  %v96_v39 = vld [vmem:[%s1309_s0 + $0x120] sm:$0xff] }
  0x29   :  { %417 = vmatpush2.msra.mxu1 %v204_v40  ;;  %248 = vmatprep.subr.mxu0 %v690_v0  ;;  %v98_v40 = vld [vmem:[%s1309_s0 + $0x130] sm:$0xff] }
  0x2a   :  { %418 = vmatprep.subr.mxu1 %v690_v0  ;;  %249 = vmatpush2.msra.mxu0 %v171_v41  ;;  %v101_v41 = vld [vmem:[%s1309_s0 + $0x148] sm:$0xff] }
  0x2b   :  { %419 = vmatpush2.msra.mxu1 %v203_v42  ;;  %250 = vmatprep.subr.mxu0 %v690_v0  ;;  %v103_v42 = vld [vmem:[%s1309_s0 + $0x158] sm:$0xff] }
  0x2c   :  { %420 = vmatprep.subr.mxu1 %v690_v0  ;;  %251 = vmatpush2.msra.mxu0 %v170_v43  ;;  %v100_v43 = vld [vmem:[%s1309_s0 + $0x140] sm:$0xff] }
  0x2d   :  { %421 = vmatpush2.msra.mxu1 %v202_v44  ;;  %252 = vmatprep.subr.mxu0 %v690_v0  ;;  %v102_v44 = vld [vmem:[%s1309_s0 + $0x150] sm:$0xff] }
  0x2e   :  { %422 = vmatprep.subr.mxu1 %v690_v0  ;;  %253 = vmatpush2.msra.mxu0 %v169_v45  ;;  %v105_v45 = vld [vmem:[%s1309_s0 + $0x168] sm:$0xff] }
  0x2f   :  { %423 = vmatpush2.msra.mxu1 %v201_v46  ;;  %254 = vmatprep.subr.mxu0 %v690_v0  ;;  %v107_v46 = vld [vmem:[%s1309_s0 + $0x178] sm:$0xff] }
  0x30   :  { %424 = vmatprep.subr.mxu1 %v690_v0  ;;  %255 = vmatpush2.msra.mxu0 %v168_v47  ;;  %v104_v47 = vld [vmem:[%s1309_s0 + $0x160] sm:$0xff] }
  0x31   :  { %425 = vmatpush2.msra.mxu1 %v200_v48  ;;  %256 = vmatprep.subr.mxu0 %v690_v0  ;;  %v106_v48 = vld [vmem:[%s1309_s0 + $0x170] sm:$0xff] }
  0x32   :  { %426 = vmatprep.subr.mxu1 %v690_v0  ;;  %257 = vmatpush2.msra.mxu0 %v167_v49  ;;  %v109_v49 = vld [vmem:[%s1309_s0 + $0x188] sm:$0xff] }
  0x33   :  { %427 = vmatpush2.msra.mxu1 %v199_v50  ;;  %258 = vmatprep.subr.mxu0 %v690_v0  ;;  %v111_v50 = vld [vmem:[%s1309_s0 + $0x198] sm:$0xff] }
  0x34   :  { %428 = vmatprep.subr.mxu1 %v690_v0  ;;  %259 = vmatpush2.msra.mxu0 %v166_v51  ;;  %v108_v51 = vld [vmem:[%s1309_s0 + $0x180] sm:$0xff] }
  0x35   :  { %429 = vmatpush2.msra.mxu1 %v198_v52  ;;  %260 = vmatprep.subr.mxu0 %v690_v0  ;;  %v110_v52 = vld [vmem:[%s1309_s0 + $0x190] sm:$0xff] }
  0x36   :  { %430 = vmatprep.subr.mxu1 %v690_v0  ;;  %261 = vmatpush2.msra.mxu0 %v165_v53  ;;  %v113_v53 = vld [vmem:[%s1309_s0 + $0x1a8] sm:$0xff] }
  0x37   :  { %431 = vmatpush2.msra.mxu1 %v197_v54  ;;  %262 = vmatprep.subr.mxu0 %v690_v0  ;;  %v115_v54 = vld [vmem:[%s1309_s0 + $0x1b8] sm:$0xff] }
  0x38   :  { %432 = vmatprep.subr.mxu1 %v690_v0  ;;  %263 = vmatpush2.msra.mxu0 %v164_v55  ;;  %v112_v55 = vld [vmem:[%s1309_s0 + $0x1a0] sm:$0xff] }
  0x39   :  { %433 = vmatpush2.msra.mxu1 %v196_v56  ;;  %264 = vmatprep.subr.mxu0 %v690_v0  ;;  %v114_v56 = vld [vmem:[%s1309_s0 + $0x1b0] sm:$0xff] }
  0x3a   :  { %434 = vmatprep.subr.mxu1 %v690_v0  ;;  %265 = vmatpush2.msra.mxu0 %v163_v57  ;;  %v117_v57 = vld [vmem:[%s1309_s0 + $0x1c8] sm:$0xff] }
  0x3b   :  { %435 = vmatpush2.msra.mxu1 %v195_v58  ;;  %266 = vmatprep.subr.mxu0 %v690_v0  ;;  %v119_v58 = vld [vmem:[%s1309_s0 + $0x1d8] sm:$0xff] }
  0x3c   :  { %436 = vmatprep.subr.mxu1 %v690_v0  ;;  %267 = vmatpush2.msra.mxu0 %v162_v59  ;;  %v116_v59 = vld [vmem:[%s1309_s0 + $0x1c0] sm:$0xff] }
  0x3d   :  { %437 = vmatpush2.msra.mxu1 %v194_v60  ;;  %268 = vmatprep.subr.mxu0 %v690_v0  ;;  %v118_v60 = vld [vmem:[%s1309_s0 + $0x1d0] sm:$0xff] }
  0x3e   :  { %438 = vmatprep.subr.mxu1 %v690_v0  ;;  %269 = vmatpush2.msra.mxu0 %v161_v61  ;;  %v121_v61 = vld [vmem:[%s1309_s0 + $0x1e8] sm:$0xff] }
  0x3f   :  { %439 = vmatpush2.msra.mxu1 %v193_v62  ;;  %270 = vmatprep.subr.mxu0 %v690_v0  ;;  %v123_v62 = vld [vmem:[%s1309_s0 + $0x1f8] sm:$0xff] }
  0x40   :  { %440 = vmatprep.subr.mxu1 %v690_v0  ;;  %271 = vmatpush2.msra.mxu0 %v160_v63  ;;  %v64_v0 = vld [vmem:[%s1309_s0 + $0x20] sm:$0xff] }
  0x41   :  { %272 = vmatprep.mubr.f32.mxu0 %v61_v1  ;;  %441 = vmatpush2.msra.mxu1 %v192_v2  ;;  %v120_v63 = vld [vmem:[%s1309_s0 + $0x1e0] sm:$0xff]  ;;  %v122_v1 = vld [vmem:[%s1309_s0 + $0x1f0] sm:$0xff]  ;;  %v125_v2 = vld [vmem:[%s1309_s0 + $0x208] sm:$0xff] }
  0x42   :  { %442 = vmatprep.mubr.f32.mxu1 %v63_v3  ;;  %273 = vmatmul.mubr.f32.vlgmr.msra.gmra.mxu0 %v60_v4  ;;  %v127_v3 = vld [vmem:[%s1309_s0 + $0x218] sm:$0xff]  ;;  %v124_v4 = vld [vmem:[%s1309_s0 + $0x200] sm:$0xff] }
  0x43   :  { %443 = vmatmul.mubr.f32.vlgmr.msra.gmra.mxu1 %v62_v5  ;;  %277 = vmatprep.mubr.f32.mxu0 %v65_v6  ;;  %v126_v5 = vld [vmem:[%s1309_s0 + $0x210] sm:$0xff]  ;;  %v129_v6 = vld [vmem:[%s1309_s0 + $0x228] sm:$0xff] }
  0x44   :  { %447 = vmatprep.mubr.f32.mxu1 %v67_v7  ;;  %v131_v7 = vld [vmem:[%s1309_s0 + $0x238] sm:$0xff] }
  0x46   :  { %278 = vmatmul.mubr.f32.gmra.mxu0 %v64_v0  ;;  %v128_v0 = vld [vmem:[%s1309_s0 + $0x220] sm:$0xff] }
  0x47   :  { %448 = vmatmul.mubr.f32.gmra.mxu1 %v66_v8  ;;  %282 = vmatprep.mubr.f32.mxu0 %v69_v9  ;;  %v130_v8 = vld [vmem:[%s1309_s0 + $0x230] sm:$0xff]  ;;  %v133_v9 = vld [vmem:[%s1309_s0 + $0x248] sm:$0xff] }
  0x48   :  { %452 = vmatprep.mubr.f32.mxu1 %v71_v10  ;;  %v135_v10 = vld [vmem:[%s1309_s0 + $0x258] sm:$0xff] }
  0x4a   :  { %283 = vmatmul.mubr.f32.gmra.mxu0 %v68_v11  ;;  %v132_v11 = vld [vmem:[%s1309_s0 + $0x240] sm:$0xff] }
  0x4b   :  { %453 = vmatmul.mubr.f32.gmra.mxu1 %v70_v12  ;;  %287 = vmatprep.mubr.f32.mxu0 %v73_v13  ;;  %v134_v12 = vld [vmem:[%s1309_s0 + $0x250] sm:$0xff]  ;;  %v137_v13 = vld [vmem:[%s1309_s0 + $0x268] sm:$0xff] }
  0x4c   :  { %457 = vmatprep.mubr.f32.mxu1 %v75_v14  ;;  %v139_v14 = vld [vmem:[%s1309_s0 + $0x278] sm:$0xff] }
  0x4e   :  { %288 = vmatmul.mubr.f32.gmra.mxu0 %v72_v15  ;;  %v136_v15 = vld [vmem:[%s1309_s0 + $0x260] sm:$0xff] }
  0x4f   :  { %458 = vmatmul.mubr.f32.gmra.mxu1 %v74_v16  ;;  %292 = vmatprep.mubr.f32.mxu0 %v77_v17  ;;  %v138_v16 = vld [vmem:[%s1309_s0 + $0x270] sm:$0xff]  ;;  %v141_v17 = vld [vmem:[%s1309_s0 + $0x288] sm:$0xff] }
  0x50   :  { %462 = vmatprep.mubr.f32.mxu1 %v79_v18  ;;  %v143_v18 = vld [vmem:[%s1309_s0 + $0x298] sm:$0xff] }
  0x52   :  { %293 = vmatmul.mubr.f32.gmra.mxu0 %v76_v19  ;;  %v140_v19 = vld [vmem:[%s1309_s0 + $0x280] sm:$0xff] }
  0x53   :  { %463 = vmatmul.mubr.f32.gmra.mxu1 %v78_v20  ;;  %297 = vmatprep.mubr.f32.mxu0 %v81_v21  ;;  %v142_v20 = vld [vmem:[%s1309_s0 + $0x290] sm:$0xff] }
  0x54   :  { %467 = vmatprep.mubr.f32.mxu1 %v83_v22 }
  0x56   :  { %298 = vmatmul.mubr.f32.gmra.mxu0 %v80_v23  ;;  %v1222_v23 = vld [vmem:[%s1310_s2] ss:$0 sm:$0xff] }
  0x57   :  { %468 = vmatmul.mubr.f32.gmra.mxu1 %v82_v24  ;;  %302 = vmatprep.mubr.f32.mxu0 %v85_v25 }
  0x58   :  { %472 = vmatprep.mubr.f32.mxu1 %v87_v26 }
  0x5a   :  { %303 = vmatmul.mubr.f32.gmra.mxu0 %v84_v27 }
  0x5b   :  { %473 = vmatmul.mubr.f32.gmra.mxu1 %v86_v28  ;;  %307 = vmatprep.mubr.f32.mxu0 %v89_v29 }
  0x5c   :  { %477 = vmatprep.mubr.f32.mxu1 %v91_v30 }
  0x5e   :  { %308 = vmatmul.mubr.f32.gmra.mxu0 %v88_v31 }
  0x5f   :  { %478 = vmatmul.mubr.f32.gmra.mxu1 %v90_v32  ;;  %312 = vmatprep.mubr.f32.mxu0 %v93_v33 }
  0x60   :  { %482 = vmatprep.mubr.f32.mxu1 %v95_v34 }
  0x62   :  { %313 = vmatmul.mubr.f32.gmra.mxu0 %v92_v35 }
  0x63   :  { %483 = vmatmul.mubr.f32.gmra.mxu1 %v94_v36  ;;  %317 = vmatprep.mubr.f32.mxu0 %v97_v37 }
  0x64   :  { %487 = vmatprep.mubr.f32.mxu1 %v99_v38 }
  0x66   :  { %318 = vmatmul.mubr.f32.gmra.mxu0 %v96_v39 }
  0x67   :  { %488 = vmatmul.mubr.f32.gmra.mxu1 %v98_v40  ;;  %322 = vmatprep.mubr.f32.mxu0 %v101_v41 }
  0x68   :  { %492 = vmatprep.mubr.f32.mxu1 %v103_v42 }
  0x6a   :  { %323 = vmatmul.mubr.f32.gmra.mxu0 %v100_v43 }
  0x6b   :  { %493 = vmatmul.mubr.f32.gmra.mxu1 %v102_v44  ;;  %327 = vmatprep.mubr.f32.mxu0 %v105_v45 }
  0x6c   :  { %497 = vmatprep.mubr.f32.mxu1 %v107_v46 }
  0x6e   :  { %328 = vmatmul.mubr.f32.gmra.mxu0 %v104_v47 }
  0x6f   :  { %498 = vmatmul.mubr.f32.gmra.mxu1 %v106_v48  ;;  %332 = vmatprep.mubr.f32.mxu0 %v109_v49 }
  0x70   :  { %502 = vmatprep.mubr.f32.mxu1 %v111_v50 }
  0x72   :  { %333 = vmatmul.mubr.f32.gmra.mxu0 %v108_v51 }
  0x73   :  { %503 = vmatmul.mubr.f32.gmra.mxu1 %v110_v52  ;;  %337 = vmatprep.mubr.f32.mxu0 %v113_v53 }
  0x74   :  { %507 = vmatprep.mubr.f32.mxu1 %v115_v54 }
  0x76   :  { %338 = vmatmul.mubr.f32.gmra.mxu0 %v112_v55 }
  0x77   :  { %508 = vmatmul.mubr.f32.gmra.mxu1 %v114_v56  ;;  %342 = vmatprep.mubr.f32.mxu0 %v117_v57 }
  0x78   :  { %512 = vmatprep.mubr.f32.mxu1 %v119_v58 }
  0x7a   :  { %343 = vmatmul.mubr.f32.gmra.mxu0 %v116_v59 }
  0x7b   :  { %513 = vmatmul.mubr.f32.gmra.mxu1 %v118_v60  ;;  %347 = vmatprep.mubr.f32.mxu0 %v121_v61 }
  0x7c   :  { %517 = vmatprep.mubr.f32.mxu1 %v123_v62 }
  0x7e   :  { %348 = vmatmul.mubr.f32.gmra.mxu0 %v120_v63 }
  0x7f   :  { %518 = vmatmul.mubr.f32.gmra.mxu1 %v122_v1  ;;  %352 = vmatprep.mubr.f32.mxu0 %v125_v2 }
  0x80   :  { %522 = vmatprep.mubr.f32.mxu1 %v127_v3 }
  0x82   :  { %353 = vmatmul.mubr.f32.gmra.mxu0 %v124_v4 }
  0x83   :  { %523 = vmatmul.mubr.f32.gmra.mxu1 %v126_v5  ;;  %357 = vmatprep.mubr.f32.mxu0 %v129_v6 }
  0x84   :  { %527 = vmatprep.mubr.f32.mxu1 %v131_v7 }
  0x86   :  { %358 = vmatmul.mubr.f32.gmra.mxu0 %v128_v0 }
  0x87   :  { %528 = vmatmul.mubr.f32.gmra.mxu1 %v130_v8  ;;  %362 = vmatprep.mubr.f32.mxu0 %v133_v9 }
  0x88   :  { %532 = vmatprep.mubr.f32.mxu1 %v135_v10 }
  0x8a   :  { %363 = vmatmul.mubr.f32.gmra.mxu0 %v132_v11 }
  0x8b   :  { %533 = vmatmul.mubr.f32.gmra.mxu1 %v134_v12  ;;  %367 = vmatprep.mubr.f32.mxu0 %v137_v13 }
  0x8c   :  { %537 = vmatprep.mubr.f32.mxu1 %v139_v14 }
  0x8e   :  { %368 = vmatmul.mubr.f32.gmra.mxu0 %v136_v15 }
  0x8f   :  { %538 = vmatmul.mubr.f32.gmra.mxu1 %v138_v16  ;;  %372 = vmatprep.mubr.f32.mxu0 %v141_v17 }
  0x90   :  { %542 = vmatprep.mubr.f32.mxu1 %v143_v18 }
  0x92   :  { %373 = vmatmul.mubr.f32.gmra.mxu0 %v140_v19 }
  0x93   :  { %543 = vmatmul.mubr.f32.gmra.mxu1 %v142_v20 }
 0x102   :  { %v274_v21 = vpop.f32.mrf.mxu0 }
 0x103   :  { %v444_v22 = vpop.f32.mrf.mxu1 }
 0x104   :  { %v445_v24 = vadd.f32 %v444_v22, %v274_v21  ;;  %v276_v25 = vpop.f32.mrf.mxu0 }
 0x105   :  { %v446_v26 = vpop.f32.mrf.mxu1 }
 0x106   :  { %v621_v27 = vadd.f32 %v1222_v23, %v445_v24  ;;  %v279_v28 = vpop.f32.mrf.mxu0 }
 0x107   :  { %v449_v29 = vpop.f32.mrf.mxu1 }
 0x108   :  { %v642_v30 = vmax.f32 %v621_v27, 0.0  ;;  %v450_v31 = vadd.f32 %v449_v29, %v279_v28  ;;  %v281_v32 = vpop.f32.mrf.mxu0 }
 0x109   :  { %v451_v33 = vpop.f32.mrf.mxu1 }
 0x10a   :  { %663 = vst [vmem:[%s1311_s3] sm:$0xff] %v642_v30  ;;  %v622_v34 = vadd.f32 %v1222_v23, %v450_v31  ;;  %v284_v35 = vpop.f32.mrf.mxu0 }
 0x10b   :  { %v454_v36 = vpop.f32.mrf.mxu1 }
 0x10c   :  { %v643_v37 = vmax.f32 %v622_v34, 0.0  ;;  %v455_v38 = vadd.f32 %v454_v36, %v284_v35  ;;  %v286_v39 = vpop.f32.mrf.mxu0 }
 0x10d   :  { %v456_v40 = vpop.f32.mrf.mxu1 }
 0x10e   :  { %664 = vst [vmem:[%s1311_s3 + $0x8] sm:$0xff] %v643_v37  ;;  %v623_v41 = vadd.f32 %v1222_v23, %v455_v38  ;;  %v289_v42 = vpop.f32.mrf.mxu0 }
 0x10f   :  { %v459_v43 = vpop.f32.mrf.mxu1 }
 0x110   :  { %v644_v44 = vmax.f32 %v623_v41, 0.0  ;;  %v460_v45 = vadd.f32 %v459_v43, %v289_v42  ;;  %v291_v46 = vpop.f32.mrf.mxu0 }
 0x111   :  { %v461_v47 = vpop.f32.mrf.mxu1 }
 0x112   :  { %665 = vst [vmem:[%s1311_s3 + $0x10] sm:$0xff] %v644_v44  ;;  %v624_v48 = vadd.f32 %v1222_v23, %v460_v45  ;;  %v294_v49 = vpop.f32.mrf.mxu0 }
 0x113   :  { %v464_v50 = vpop.f32.mrf.mxu1 }
 0x114   :  { %v645_v51 = vmax.f32 %v624_v48, 0.0  ;;  %v465_v52 = vadd.f32 %v464_v50, %v294_v49  ;;  %v296_v53 = vpop.f32.mrf.mxu0 }
 0x115   :  { %v466_v54 = vpop.f32.mrf.mxu1 }
 0x116   :  { %666 = vst [vmem:[%s1311_s3 + $0x18] sm:$0xff] %v645_v51  ;;  %v625_v55 = vadd.f32 %v1222_v23, %v465_v52  ;;  %v299_v56 = vpop.f32.mrf.mxu0 }
 0x117   :  { %v469_v57 = vpop.f32.mrf.mxu1 }
 0x118   :  { %v646_v58 = vmax.f32 %v625_v55, 0.0  ;;  %v470_v59 = vadd.f32 %v469_v57, %v299_v56  ;;  %v301_v60 = vpop.f32.mrf.mxu0 }
 0x119   :  { %v471_v61 = vpop.f32.mrf.mxu1 }
 0x11a   :  { %667 = vst [vmem:[%s1311_s3 + $0x20] sm:$0xff] %v646_v58  ;;  %v626_v62 = vadd.f32 %v1222_v23, %v470_v59  ;;  %v304_v63 = vpop.f32.mrf.mxu0 }
 0x11b   :  { %v474_v1 = vpop.f32.mrf.mxu1 }
 0x11c   :  { %v647_v2 = vmax.f32 %v626_v62, 0.0  ;;  %v475_v3 = vadd.f32 %v474_v1, %v304_v63  ;;  %v306_v4 = vpop.f32.mrf.mxu0 }
 0x11d   :  { %v476_v5 = vpop.f32.mrf.mxu1 }
 0x11e   :  { %668 = vst [vmem:[%s1311_s3 + $0x28] sm:$0xff] %v647_v2  ;;  %v627_v6 = vadd.f32 %v1222_v23, %v475_v3  ;;  %v309_v7 = vpop.f32.mrf.mxu0 }
 0x11f   :  { %v479_v0 = vpop.f32.mrf.mxu1 }
 0x120   :  { %v648_v8 = vmax.f32 %v627_v6, 0.0  ;;  %v480_v9 = vadd.f32 %v479_v0, %v309_v7  ;;  %v311_v10 = vpop.f32.mrf.mxu0 }
 0x121   :  { %v481_v11 = vpop.f32.mrf.mxu1 }
 0x122   :  { %669 = vst [vmem:[%s1311_s3 + $0x30] sm:$0xff] %v648_v8  ;;  %v628_v12 = vadd.f32 %v1222_v23, %v480_v9  ;;  %v314_v13 = vpop.f32.mrf.mxu0 }
 0x123   :  { %v484_v14 = vpop.f32.mrf.mxu1 }
 0x124   :  { %v649_v15 = vmax.f32 %v628_v12, 0.0  ;;  %v485_v16 = vadd.f32 %v484_v14, %v314_v13  ;;  %v316_v17 = vpop.f32.mrf.mxu0 }
 0x125   :  { %v486_v18 = vpop.f32.mrf.mxu1 }
 0x126   :  { %670 = vst [vmem:[%s1311_s3 + $0x38] sm:$0xff] %v649_v15  ;;  %v629_v19 = vadd.f32 %v1222_v23, %v485_v16  ;;  %v319_v20 = vpop.f32.mrf.mxu0 }
 0x127   :  { %v489_v21 = vpop.f32.mrf.mxu1 }
 0x128   :  { %v650_v22 = vmax.f32 %v629_v19, 0.0  ;;  %v490_v24 = vadd.f32 %v489_v21, %v319_v20  ;;  %v321_v25 = vpop.f32.mrf.mxu0 }
 0x129   :  { %v491_v26 = vpop.f32.mrf.mxu1 }
 0x12a   :  { %671 = vst [vmem:[%s1311_s3 + $0x40] sm:$0xff] %v650_v22  ;;  %v630_v27 = vadd.f32 %v1222_v23, %v490_v24  ;;  %v324_v28 = vpop.f32.mrf.mxu0 }
 0x12b   :  { %v494_v29 = vpop.f32.mrf.mxu1 }
 0x12c   :  { %v651_v30 = vmax.f32 %v630_v27, 0.0  ;;  %v495_v31 = vadd.f32 %v494_v29, %v324_v28  ;;  %v326_v32 = vpop.f32.mrf.mxu0 }
 0x12d   :  { %v496_v33 = vpop.f32.mrf.mxu1 }
 0x12e   :  { %672 = vst [vmem:[%s1311_s3 + $0x48] sm:$0xff] %v651_v30  ;;  %v631_v34 = vadd.f32 %v1222_v23, %v495_v31  ;;  %v329_v35 = vpop.f32.mrf.mxu0 }
 0x12f   :  { %v499_v36 = vpop.f32.mrf.mxu1 }
 0x130   :  { %v652_v37 = vmax.f32 %v631_v34, 0.0  ;;  %v500_v38 = vadd.f32 %v499_v36, %v329_v35  ;;  %v331_v39 = vpop.f32.mrf.mxu0 }
 0x131   :  { %v501_v40 = vpop.f32.mrf.mxu1 }
 0x132   :  { %673 = vst [vmem:[%s1311_s3 + $0x50] sm:$0xff] %v652_v37  ;;  %v632_v41 = vadd.f32 %v1222_v23, %v500_v38  ;;  %v334_v42 = vpop.f32.mrf.mxu0 }
 0x133   :  { %v504_v43 = vpop.f32.mrf.mxu1 }
 0x134   :  { %v653_v44 = vmax.f32 %v632_v41, 0.0  ;;  %v505_v45 = vadd.f32 %v504_v43, %v334_v42  ;;  %v336_v46 = vpop.f32.mrf.mxu0 }
 0x135   :  { %v506_v47 = vpop.f32.mrf.mxu1 }
 0x136   :  { %674 = vst [vmem:[%s1311_s3 + $0x58] sm:$0xff] %v653_v44  ;;  %v633_v48 = vadd.f32 %v1222_v23, %v505_v45  ;;  %v339_v49 = vpop.f32.mrf.mxu0 }
 0x137   :  { %v509_v50 = vpop.f32.mrf.mxu1 }
 0x138   :  { %v654_v51 = vmax.f32 %v633_v48, 0.0  ;;  %v510_v52 = vadd.f32 %v509_v50, %v339_v49  ;;  %v341_v53 = vpop.f32.mrf.mxu0 }
 0x139   :  { %v511_v54 = vpop.f32.mrf.mxu1 }
 0x13a   :  { %675 = vst [vmem:[%s1311_s3 + $0x60] sm:$0xff] %v654_v51  ;;  %v634_v55 = vadd.f32 %v1222_v23, %v510_v52  ;;  %v344_v56 = vpop.f32.mrf.mxu0 }
 0x13b   :  { %v514_v57 = vpop.f32.mrf.mxu1 }
 0x13c   :  { %v655_v58 = vmax.f32 %v634_v55, 0.0  ;;  %v515_v59 = vadd.f32 %v514_v57, %v344_v56  ;;  %v346_v60 = vpop.f32.mrf.mxu0 }
 0x13d   :  { %v516_v61 = vpop.f32.mrf.mxu1 }
 0x13e   :  { %676 = vst [vmem:[%s1311_s3 + $0x68] sm:$0xff] %v655_v58  ;;  %v635_v62 = vadd.f32 %v1222_v23, %v515_v59  ;;  %v349_v63 = vpop.f32.mrf.mxu0 }
 0x13f   :  { %v519_v1 = vpop.f32.mrf.mxu1 }
 0x140   :  { %v656_v2 = vmax.f32 %v635_v62, 0.0  ;;  %v520_v3 = vadd.f32 %v519_v1, %v349_v63  ;;  %v351_v4 = vpop.f32.mrf.mxu0 }
 0x141   :  { %v521_v5 = vpop.f32.mrf.mxu1 }
 0x142   :  { %677 = vst [vmem:[%s1311_s3 + $0x70] sm:$0xff] %v656_v2  ;;  %v636_v6 = vadd.f32 %v1222_v23, %v520_v3  ;;  %v354_v7 = vpop.f32.mrf.mxu0 }
 0x143   :  { %v524_v0 = vpop.f32.mrf.mxu1 }
 0x144   :  { %v657_v8 = vmax.f32 %v636_v6, 0.0  ;;  %v525_v9 = vadd.f32 %v524_v0, %v354_v7  ;;  %v356_v10 = vpop.f32.mrf.mxu0 }
 0x145   :  { %v526_v11 = vpop.f32.mrf.mxu1 }
 0x146   :  { %678 = vst [vmem:[%s1311_s3 + $0x78] sm:$0xff] %v657_v8  ;;  %v637_v12 = vadd.f32 %v1222_v23, %v525_v9  ;;  %v359_v13 = vpop.f32.mrf.mxu0 }
 0x147   :  { %v529_v14 = vpop.f32.mrf.mxu1 }
 0x148   :  { %v658_v15 = vmax.f32 %v637_v12, 0.0  ;;  %v530_v16 = vadd.f32 %v529_v14, %v359_v13  ;;  %v361_v17 = vpop.f32.mrf.mxu0 }
 0x149   :  { %v531_v18 = vpop.f32.mrf.mxu1 }
 0x14a   :  { %679 = vst [vmem:[%s1311_s3 + $0x80] sm:$0xff] %v658_v15  ;;  %v638_v19 = vadd.f32 %v1222_v23, %v530_v16  ;;  %v364_v20 = vpop.f32.mrf.mxu0 }
 0x14b   :  { %v534_v21 = vpop.f32.mrf.mxu1 }
 0x14c   :  { %v659_v22 = vmax.f32 %v638_v19, 0.0  ;;  %v535_v24 = vadd.f32 %v534_v21, %v364_v20  ;;  %v366_v25 = vpop.f32.mrf.mxu0 }
 0x14d   :  { %v536_v26 = vpop.f32.mrf.mxu1 }
 0x14e   :  { %680 = vst [vmem:[%s1311_s3 + $0x88] sm:$0xff] %v659_v22  ;;  %v639_v27 = vadd.f32 %v1222_v23, %v535_v24  ;;  %v369_v28 = vpop.f32.mrf.mxu0 }
 0x14f   :  { %v539_v29 = vpop.f32.mrf.mxu1 }
 0x150   :  { %v660_v30 = vmax.f32 %v639_v27, 0.0  ;;  %v540_v31 = vadd.f32 %v539_v29, %v369_v28  ;;  %v371_v32 = vpop.f32.mrf.mxu0 }
 0x151   :  { %v541_v33 = vpop.f32.mrf.mxu1 }
 0x152   :  { %681 = vst [vmem:[%s1311_s3 + $0x90] sm:$0xff] %v660_v30  ;;  %v640_v34 = vadd.f32 %v1222_v23, %v540_v31  ;;  %v374_v35 = vpop.f32.mrf.mxu0 }
 0x153   :  { %v544_v36 = vpop.f32.mrf.mxu1 }
 0x154   :  { %v661_v37 = vmax.f32 %v640_v34, 0.0  ;;  %v545_v38 = vadd.f32 %v544_v36, %v374_v35  ;;  %v376_v39 = vpop.f32.mrf.mxu0 }
 0x155   :  { %v546_v40 = vpop.f32.mrf.mxu1 }
 0x156   :  { %682 = vst [vmem:[%s1311_s3 + $0x98] sm:$0xff] %v661_v37  ;;  %v641_v41 = vadd.f32 %v1222_v23, %v545_v38 }
 0x158   :  { %v662_v42 = vmax.f32 %v641_v41, 0.0 }
 0x15a   :  { %683 = vst [vmem:[%s1311_s3 + $0xa0] sm:$0xff] %v662_v42 }

// kernel: forward.6
= control target key start
LH: loop header
LB: loop body
LE: loop exit
PB: predicated region body
PF: predicated region fallthrough
CT: control target
= control target key end

     0   :  { %vm949_vm0 = vmmov 0   ;;  %s1580_s1 = inlined_call_operand.vmem [shape: f32[640,128], index: 1, kind: input, shape index: {}]   ;;  %s1581_s0 = inlined_call_operand.vmem [shape: f32[104,640], index: 0, kind: input, shape index: {}]   ;;  %s1582_s2 = inlined_call_operand.vmem [shape: f32[1,128], index: 2, kind: input, shape index: {}]   ;;  %s1583_s3 = inlined_call_operand.vmem [shape: f32[104,128], index: 3, kind: output, shape index: {}]  }
   0x1   :  { %v140_v0 = vld [vmem:[%s1580_s1 + $0xf8] sm:$0xff]  ;;  %v139_v4 = vld [vmem:[%s1580_s1 + $0xf0] sm:$0xff]  ;;  %v138_v8 = vld [vmem:[%s1580_s1 + $0xe8] sm:$0xff] }
   0x2   :  { %v172_v1 = vld [vmem:[%s1580_s1 + $0x1f8] sm:$0xff]  ;;  %672 = vmatprep.subr.mxu0 %v140_v0  ;;  %v171_v5 = vld [vmem:[%s1580_s1 + $0x1f0] sm:$0xff]  ;;  %v170_v9 = vld [vmem:[%s1580_s1 + $0x1e8] sm:$0xff] }
   0x3   :  { %v124_v2 = vld [vmem:[%s1580_s1 + $0x78] sm:$0xff]  ;;  %743 = vmatprep.subr.mxu1 %v172_v1  ;;  %v123_v6 = vld [vmem:[%s1580_s1 + $0x70] sm:$0xff]  ;;  %v122_v10 = vld [vmem:[%s1580_s1 + $0x68] sm:$0xff] }
   0x4   :  { %v156_v3 = vld [vmem:[%s1580_s1 + $0x178] sm:$0xff]  ;;  %673 = vmatpush3.msra.mxu0 %v124_v2  ;;  %v155_v7 = vld [vmem:[%s1580_s1 + $0x170] sm:$0xff]  ;;  %v154_v11 = vld [vmem:[%s1580_s1 + $0x168] sm:$0xff] }
   0x5   :  { %744 = vmatpush3.msra.mxu1 %v156_v3  ;;  %674 = vmatprep.subr.mxu0 %v139_v4  ;;  %v137_v12 = vld [vmem:[%s1580_s1 + $0xe0] sm:$0xff]  ;;  %v136_v16 = vld [vmem:[%s1580_s1 + $0xd8] sm:$0xff]  ;;  %v135_v20 = vld [vmem:[%s1580_s1 + $0xd0] sm:$0xff] }
   0x6   :  { %745 = vmatprep.subr.mxu1 %v171_v5  ;;  %675 = vmatpush3.msra.mxu0 %v123_v6  ;;  %v169_v13 = vld [vmem:[%s1580_s1 + $0x1e0] sm:$0xff]  ;;  %v168_v17 = vld [vmem:[%s1580_s1 + $0x1d8] sm:$0xff]  ;;  %v167_v21 = vld [vmem:[%s1580_s1 + $0x1d0] sm:$0xff] }
   0x7   :  { %746 = vmatpush3.msra.mxu1 %v155_v7  ;;  %676 = vmatprep.subr.mxu0 %v138_v8  ;;  %v121_v14 = vld [vmem:[%s1580_s1 + $0x60] sm:$0xff]  ;;  %v120_v18 = vld [vmem:[%s1580_s1 + $0x58] sm:$0xff]  ;;  %v119_v22 = vld [vmem:[%s1580_s1 + $0x50] sm:$0xff]  ;;  %v948_v7 = vmov 0.0  }
   0x8   :  { %747 = vmatprep.subr.mxu1 %v170_v9  ;;  %v153_v15 = vld [vmem:[%s1580_s1 + $0x160] sm:$0xff]  ;;  %677 = vmatpush3.msra.mxu0 %v122_v10  ;;  %v152_v19 = vld [vmem:[%s1580_s1 + $0x158] sm:$0xff]  ;;  %v151_v23 = vld [vmem:[%s1580_s1 + $0x150] sm:$0xff] }
   0x9   :  { %748 = vmatpush3.msra.mxu1 %v154_v11  ;;  %678 = vmatprep.subr.mxu0 %v137_v12  ;;  %v134_v24 = vld [vmem:[%s1580_s1 + $0xc8] sm:$0xff]  ;;  %v133_v28 = vld [vmem:[%s1580_s1 + $0xc0] sm:$0xff]  ;;  %v132_v32 = vld [vmem:[%s1580_s1 + $0xb8] sm:$0xff] }
   0xa   :  { %749 = vmatprep.subr.mxu1 %v169_v13  ;;  %679 = vmatpush3.msra.mxu0 %v121_v14  ;;  %v166_v25 = vld [vmem:[%s1580_s1 + $0x1c8] sm:$0xff]  ;;  %v165_v29 = vld [vmem:[%s1580_s1 + $0x1c0] sm:$0xff]  ;;  %v164_v33 = vld [vmem:[%s1580_s1 + $0x1b8] sm:$0xff] }
   0xb   :  { %750 = vmatpush3.msra.mxu1 %v153_v15  ;;  %680 = vmatprep.subr.mxu0 %v136_v16  ;;  %v118_v26 = vld [vmem:[%s1580_s1 + $0x48] sm:$0xff]  ;;  %v117_v30 = vld [vmem:[%s1580_s1 + $0x40] sm:$0xff]  ;;  %v116_v34 = vld [vmem:[%s1580_s1 + $0x38] sm:$0xff] }
   0xc   :  { %751 = vmatprep.subr.mxu1 %v168_v17  ;;  %681 = vmatpush3.msra.mxu0 %v120_v18  ;;  %v150_v27 = vld [vmem:[%s1580_s1 + $0x148] sm:$0xff]  ;;  %v149_v31 = vld [vmem:[%s1580_s1 + $0x140] sm:$0xff]  ;;  %v148_v35 = vld [vmem:[%s1580_s1 + $0x138] sm:$0xff] }
   0xd   :  { %752 = vmatpush3.msra.mxu1 %v152_v19  ;;  %682 = vmatprep.subr.mxu0 %v135_v20  ;;  %v131_v36 = vld [vmem:[%s1580_s1 + $0xb0] sm:$0xff]  ;;  %v130_v40 = vld [vmem:[%s1580_s1 + $0xa8] sm:$0xff]  ;;  %v129_v44 = vld [vmem:[%s1580_s1 + $0xa0] sm:$0xff] }
   0xe   :  { %753 = vmatprep.subr.mxu1 %v167_v21  ;;  %683 = vmatpush3.msra.mxu0 %v119_v22  ;;  %v163_v37 = vld [vmem:[%s1580_s1 + $0x1b0] sm:$0xff]  ;;  %v162_v41 = vld [vmem:[%s1580_s1 + $0x1a8] sm:$0xff]  ;;  %v161_v45 = vld [vmem:[%s1580_s1 + $0x1a0] sm:$0xff] }
   0xf   :  { %754 = vmatpush3.msra.mxu1 %v151_v23  ;;  %684 = vmatprep.subr.mxu0 %v134_v24  ;;  %v115_v38 = vld [vmem:[%s1580_s1 + $0x30] sm:$0xff]  ;;  %v114_v42 = vld [vmem:[%s1580_s1 + $0x28] sm:$0xff]  ;;  %v113_v46 = vld [vmem:[%s1580_s1 + $0x20] sm:$0xff] }
  0x10   :  { %755 = vmatprep.subr.mxu1 %v166_v25  ;;  %685 = vmatpush3.msra.mxu0 %v118_v26  ;;  %v147_v39 = vld [vmem:[%s1580_s1 + $0x130] sm:$0xff]  ;;  %v146_v43 = vld [vmem:[%s1580_s1 + $0x128] sm:$0xff]  ;;  %v145_v47 = vld [vmem:[%s1580_s1 + $0x120] sm:$0xff] }
  0x11   :  { %756 = vmatpush3.msra.mxu1 %v150_v27  ;;  %686 = vmatprep.subr.mxu0 %v133_v28  ;;  %v128_v48 = vld [vmem:[%s1580_s1 + $0x98] sm:$0xff]  ;;  %v127_v52 = vld [vmem:[%s1580_s1 + $0x90] sm:$0xff]  ;;  %v126_v56 = vld [vmem:[%s1580_s1 + $0x88] sm:$0xff] }
  0x12   :  { %757 = vmatprep.subr.mxu1 %v165_v29  ;;  %687 = vmatpush3.msra.mxu0 %v117_v30  ;;  %v160_v49 = vld [vmem:[%s1580_s1 + $0x198] sm:$0xff]  ;;  %v159_v53 = vld [vmem:[%s1580_s1 + $0x190] sm:$0xff]  ;;  %v158_v57 = vld [vmem:[%s1580_s1 + $0x188] sm:$0xff] }
  0x13   :  { %758 = vmatpush3.msra.mxu1 %v149_v31  ;;  %688 = vmatprep.subr.mxu0 %v132_v32  ;;  %v112_v50 = vld [vmem:[%s1580_s1 + $0x18] sm:$0xff]  ;;  %v111_v54 = vld [vmem:[%s1580_s1 + $0x10] sm:$0xff]  ;;  %v110_v58 = vld [vmem:[%s1580_s1 + $0x8] sm:$0xff] }
  0x14   :  { %759 = vmatprep.subr.mxu1 %v164_v33  ;;  %689 = vmatpush3.msra.mxu0 %v116_v34  ;;  %v144_v51 = vld [vmem:[%s1580_s1 + $0x118] sm:$0xff]  ;;  %v143_v55 = vld [vmem:[%s1580_s1 + $0x110] sm:$0xff]  ;;  %v142_v59 = vld [vmem:[%s1580_s1 + $0x108] sm:$0xff] }
  0x15   :  { %760 = vmatpush3.msra.mxu1 %v148_v35  ;;  %690 = vmatprep.subr.mxu0 %v131_v36  ;;  %v125_v60 = vld [vmem:[%s1580_s1 + $0x80] sm:$0xff]  ;;  %v45_v63 = vld [vmem:[%s1581_s0 + $0x8] sm:$0xff]  ;;  %v47_v1 = vld [vmem:[%s1581_s0 + $0x18] sm:$0xff] }
  0x16   :  { %761 = vmatprep.subr.mxu1 %v163_v37  ;;  %691 = vmatpush3.msra.mxu0 %v115_v38  ;;  %v157_v61 = vld [vmem:[%s1580_s1 + $0x180] sm:$0xff]  ;;  %v46_v3 = vld [vmem:[%s1581_s0 + $0x10] sm:$0xff]  ;;  %v188_v5 = vld [vmem:[%s1580_s1 + $0x278] sm:$0xff] }
  0x17   :  { %762 = vmatpush3.msra.mxu1 %v147_v39  ;;  %692 = vmatprep.subr.mxu0 %v130_v40  ;;  %v109_v62 = vld [vmem:[%s1580_s1] sm:$0xff]  ;;  %v50_v4 = vld [vmem:[%s1581_s0 + $0x30] sm:$0xff]  ;;  %v49_v8 = vld [vmem:[%s1581_s0 + $0x28] sm:$0xff] }
  0x18   :  { %763 = vmatprep.subr.mxu1 %v162_v41  ;;  %693 = vmatpush3.msra.mxu0 %v114_v42  ;;  %v141_v0 = vld [vmem:[%s1580_s1 + $0x100] sm:$0xff]  ;;  %v51_v9 = vld [vmem:[%s1581_s0 + $0x38] sm:$0xff]  ;;  %v187_v10 = vld [vmem:[%s1580_s1 + $0x270] sm:$0xff] }
  0x19   :  { %764 = vmatpush3.msra.mxu1 %v146_v43  ;;  %694 = vmatprep.subr.mxu0 %v129_v44  ;;  %v44_v2 = vld [vmem:[%s1581_s0] sm:$0xff]  ;;  %v55_v11 = vld [vmem:[%s1581_s0 + $0x58] sm:$0xff]  ;;  %v57_v12 = vld [vmem:[%s1581_s0 + $0x68] sm:$0xff] }
  0x1a   :  { %765 = vmatprep.subr.mxu1 %v161_v45  ;;  %695 = vmatpush3.msra.mxu0 %v113_v46  ;;  %v52_v6 = vld [vmem:[%s1581_s0 + $0x40] sm:$0xff]  ;;  %v54_v13 = vld [vmem:[%s1581_s0 + $0x50] sm:$0xff]  ;;  %v186_v15 = vld [vmem:[%s1580_s1 + $0x268] sm:$0xff] }
  0x1b   :  { %766 = vmatpush3.msra.mxu1 %v145_v47  ;;  %696 = vmatprep.subr.mxu0 %v128_v48  ;;  %v56_v14 = vld [vmem:[%s1581_s0 + $0x60] sm:$0xff]  ;;  %v62_v17 = vld [vmem:[%s1581_s0 + $0x90] sm:$0xff]  ;;  %v61_v19 = vld [vmem:[%s1581_s0 + $0x88] sm:$0xff] }
  0x1c   :  { %767 = vmatprep.subr.mxu1 %v160_v49  ;;  %697 = vmatpush3.msra.mxu0 %v112_v50  ;;  %v60_v16 = vld [vmem:[%s1581_s0 + $0x80] sm:$0xff]  ;;  %v59_v20 = vld [vmem:[%s1581_s0 + $0x78] sm:$0xff]  ;;  %v65_v22 = vld [vmem:[%s1581_s0 + $0xa8] sm:$0xff] }
  0x1d   :  { %768 = vmatpush3.msra.mxu1 %v144_v51  ;;  %698 = vmatprep.subr.mxu0 %v127_v52  ;;  %v185_v18 = vld [vmem:[%s1580_s1 + $0x260] sm:$0xff]  ;;  %v184_v21 = vld [vmem:[%s1580_s1 + $0x258] sm:$0xff]  ;;  %v66_v25 = vld [vmem:[%s1581_s0 + $0xb0] sm:$0xff] }
  0x1e   :  { %769 = vmatprep.subr.mxu1 %v159_v53  ;;  %699 = vmatpush3.msra.mxu0 %v111_v54  ;;  %v67_v23 = vld [vmem:[%s1581_s0 + $0xb8] sm:$0xff]  ;;  %v64_v24 = vld [vmem:[%s1581_s0 + $0xa0] sm:$0xff]  ;;  %v183_v26 = vld [vmem:[%s1580_s1 + $0x250] sm:$0xff] }
  0x1f   :  { %770 = vmatpush3.msra.mxu1 %v143_v55  ;;  %700 = vmatprep.subr.mxu0 %v126_v56  ;;  %v70_v27 = vld [vmem:[%s1581_s0 + $0xd0] sm:$0xff]  ;;  %v72_v28 = vld [vmem:[%s1581_s0 + $0xe0] sm:$0xff]  ;;  %v69_v29 = vld [vmem:[%s1581_s0 + $0xc8] sm:$0xff] }
  0x20   :  { %771 = vmatprep.subr.mxu1 %v158_v57  ;;  %701 = vmatpush3.msra.mxu0 %v110_v58  ;;  %v71_v30 = vld [vmem:[%s1581_s0 + $0xd8] sm:$0xff]  ;;  %v182_v31 = vld [vmem:[%s1580_s1 + $0x248] sm:$0xff]  ;;  %v74_v34 = vld [vmem:[%s1581_s0 + $0xf0] sm:$0xff] }
  0x21   :  { %772 = vmatpush3.msra.mxu1 %v142_v59  ;;  %702 = vmatprep.subr.mxu0 %v125_v60  ;;  %v75_v32 = vld [vmem:[%s1581_s0 + $0xf8] sm:$0xff]  ;;  %v77_v33 = vld [vmem:[%s1581_s0 + $0x108] sm:$0xff]  ;;  %v76_v35 = vld [vmem:[%s1581_s0 + $0x100] sm:$0xff] }
  0x22   :  { %773 = vmatprep.subr.mxu1 %v157_v61  ;;  %703 = vmatpush3.msra.mxu0 %v109_v62  ;;  %v181_v36 = vld [vmem:[%s1580_s1 + $0x240] sm:$0xff]  ;;  %v82_v38 = vld [vmem:[%s1581_s0 + $0x130] sm:$0xff]  ;;  %v180_v39 = vld [vmem:[%s1580_s1 + $0x238] sm:$0xff] }
  0x23   :  { %253 = vmatprep.mubr.f32.mxu0 %v45_v63  ;;  %774 = vmatpush3.msra.mxu1 %v141_v0  ;;  %v80_v37 = vld [vmem:[%s1581_s0 + $0x120] sm:$0xff]  ;;  %v81_v40 = vld [vmem:[%s1581_s0 + $0x128] sm:$0xff]  ;;  %v79_v41 = vld [vmem:[%s1581_s0 + $0x118] sm:$0xff] }
  0x24   :  { %383 = vmatprep.mubr.f32.mxu1 %v47_v1  ;;  %254 = vmatmul.mubr.f32.vlgmr.msra.gmra.mxu0 %v44_v2  ;;  %v85_v42 = vld [vmem:[%s1581_s0 + $0x148] sm:$0xff]  ;;  %v87_v43 = vld [vmem:[%s1581_s0 + $0x158] sm:$0xff]  ;;  %v179_v44 = vld [vmem:[%s1580_s1 + $0x230] sm:$0xff] }
  0x25   :  { %384 = vmatmul.mubr.f32.vlgmr.msra.gmra.mxu1 %v46_v3  ;;  %843 = vmatprep.subr.mxu0 %v948_v7  ;;  %v84_v45 = vld [vmem:[%s1581_s0 + $0x140] sm:$0xff]  ;;  %v86_v46 = vld [vmem:[%s1581_s0 + $0x150] sm:$0xff]  ;;  %v178_v47 = vld [vmem:[%s1580_s1 + $0x228] sm:$0xff] }
  0x26   :  { %258 = vmatprep.mubr.f32.mxu0 %v50_v4  ;;  %844 = vmatpush3.msra.mxu0 %v188_v5  ;;  %v90_v48 = vld [vmem:[%s1581_s0 + $0x170] sm:$0xff]  ;;  %v92_v49 = vld [vmem:[%s1581_s0 + $0x180] sm:$0xff]  ;;  %v89_v50 = vld [vmem:[%s1581_s0 + $0x168] sm:$0xff] }
  0x27   :  { %388 = vmatprep.mubr.f32.mxu1 %v52_v6  ;;  %914 = vmatprep.subr.mxu1 %v948_v7  ;;  %v91_v51 = vld [vmem:[%s1581_s0 + $0x178] sm:$0xff]  ;;  %v177_v52 = vld [vmem:[%s1580_s1 + $0x220] sm:$0xff]  ;;  %v97_v54 = vld [vmem:[%s1581_s0 + $0x1a8] sm:$0xff] }
  0x28   :  { %845 = vmatprep.subr.mxu0 %v948_v7  ;;  %259 = vmatmul.mubr.f32.gmra.mxu0 %v49_v8  ;;  %v95_v53 = vld [vmem:[%s1581_s0 + $0x198] sm:$0xff]  ;;  %v94_v55 = vld [vmem:[%s1581_s0 + $0x190] sm:$0xff]  ;;  %v96_v56 = vld [vmem:[%s1581_s0 + $0x1a0] sm:$0xff] }
  0x29   :  { %389 = vmatmul.mubr.f32.gmra.mxu1 %v51_v9  ;;  %846 = vmatpush3.msra.mxu0 %v187_v10  ;;  %v176_v57 = vld [vmem:[%s1580_s1 + $0x218] sm:$0xff]  ;;  %v100_v58 = vld [vmem:[%s1581_s0 + $0x1c0] sm:$0xff]  ;;  %v102_v59 = vld [vmem:[%s1581_s0 + $0x1d0] sm:$0xff] }
  0x2a   :  { %930 = vmatpush3.msra.mxu1 %v188_v5  ;;  %263 = vmatprep.mubr.f32.mxu0 %v55_v11  ;;  %v99_v60 = vld [vmem:[%s1581_s0 + $0x1b8] sm:$0xff]  ;;  %v101_v61 = vld [vmem:[%s1581_s0 + $0x1c8] sm:$0xff]  ;;  %v175_v62 = vld [vmem:[%s1580_s1 + $0x210] sm:$0xff] }
  0x2b   :  { %393 = vmatprep.mubr.f32.mxu1 %v57_v12  ;;  %847 = vmatprep.subr.mxu0 %v948_v7  ;;  %v105_v63 = vld [vmem:[%s1581_s0 + $0x1e8] sm:$0xff]  ;;  %v107_v0 = vld [vmem:[%s1581_s0 + $0x1f8] sm:$0xff]  ;;  %v104_v2 = vld [vmem:[%s1581_s0 + $0x1e0] sm:$0xff] }
  0x2c   :  { %915 = vmatprep.subr.mxu1 %v948_v7  ;;  %264 = vmatmul.mubr.f32.gmra.mxu0 %v54_v13  ;;  %v174_v1 = vld [vmem:[%s1580_s1 + $0x208] sm:$0xff]  ;;  %v106_v3 = vld [vmem:[%s1581_s0 + $0x1f0] sm:$0xff]  ;;  %v173_v4 = vld [vmem:[%s1580_s1 + $0x200] sm:$0xff] }
  0x2d   :  { %394 = vmatmul.mubr.f32.gmra.mxu1 %v56_v14  ;;  %848 = vmatpush3.msra.mxu0 %v186_v15  ;;  %v48_v5 = vld [vmem:[%s1581_s0 + $0x20] sm:$0xff]  ;;  %v83_v6 = vld [vmem:[%s1581_s0 + $0x138] sm:$0xff]  ;;  %v53_v8 = vld [vmem:[%s1581_s0 + $0x48] sm:$0xff] }
  0x2e   :  { %931 = vmatpush3.msra.mxu1 %v187_v10  ;;  %849 = vmatprep.subr.mxu0 %v948_v7  ;;  %v88_v9 = vld [vmem:[%s1581_s0 + $0x160] sm:$0xff]  ;;  %v58_v10 = vld [vmem:[%s1581_s0 + $0x70] sm:$0xff]  ;;  %v93_v11 = vld [vmem:[%s1581_s0 + $0x188] sm:$0xff] }
  0x2f   :  { %268 = vmatprep.mubr.f32.mxu0 %v60_v16  ;;  %398 = vmatprep.mubr.f32.mxu1 %v62_v17  ;;  %v63_v12 = vld [vmem:[%s1581_s0 + $0x98] sm:$0xff]  ;;  %v98_v13 = vld [vmem:[%s1581_s0 + $0x1b0] sm:$0xff]  ;;  %v68_v14 = vld [vmem:[%s1581_s0 + $0xc0] sm:$0xff] }
  0x30   :  { %916 = vmatprep.subr.mxu1 %v948_v7  ;;  %850 = vmatpush3.msra.mxu0 %v185_v18  ;;  %v73_v16 = vld [vmem:[%s1581_s0 + $0xe8] sm:$0xff]  ;;  %v108_v17 = vld [vmem:[%s1581_s0 + $0x200] sm:$0xff] }
  0x31   :  { %399 = vmatmul.mubr.f32.gmra.mxu1 %v61_v19  ;;  %269 = vmatmul.mubr.f32.gmra.mxu0 %v59_v20 }
  0x32   :  { %932 = vmatpush3.msra.mxu1 %v186_v15  ;;  %851 = vmatprep.subr.mxu0 %v948_v7  ;;  %v103_v15 = vld [vmem:[%s1581_s0 + $0x1d8] sm:$0xff] }
  0x33   :  { %917 = vmatprep.subr.mxu1 %v948_v7  ;;  %852 = vmatpush3.msra.mxu0 %v184_v21 }
  0x34   :  { %273 = vmatprep.mubr.f32.mxu0 %v65_v22  ;;  %403 = vmatprep.mubr.f32.mxu1 %v67_v23 }
  0x35   :  { %933 = vmatpush3.msra.mxu1 %v185_v18  ;;  %274 = vmatmul.mubr.f32.gmra.mxu0 %v64_v24  ;;  %v78_v18 = vld [vmem:[%s1581_s0 + $0x110] sm:$0xff] }
  0x36   :  { %404 = vmatmul.mubr.f32.gmra.mxu1 %v66_v25  ;;  %918 = vmatprep.subr.mxu1 %v948_v7 }
  0x37   :  { %853 = vmatprep.subr.mxu0 %v948_v7  ;;  %934 = vmatpush3.msra.mxu1 %v184_v21 }
  0x38   :  { %854 = vmatpush3.msra.mxu0 %v183_v26  ;;  %278 = vmatprep.mubr.f32.mxu0 %v70_v27 }
  0x39   :  { %408 = vmatprep.mubr.f32.mxu1 %v72_v28  ;;  %279 = vmatmul.mubr.f32.gmra.mxu0 %v69_v29 }
  0x3a   :  { %409 = vmatmul.mubr.f32.gmra.mxu1 %v71_v30  ;;  %855 = vmatprep.subr.mxu0 %v948_v7 }
  0x3b   :  { %919 = vmatprep.subr.mxu1 %v948_v7  ;;  %856 = vmatpush3.msra.mxu0 %v182_v31 }
  0x3c   :  { %935 = vmatpush3.msra.mxu1 %v183_v26  ;;  %283 = vmatprep.mubr.f32.mxu0 %v75_v32 }
  0x3d   :  { %413 = vmatprep.mubr.f32.mxu1 %v77_v33  ;;  %857 = vmatprep.subr.mxu0 %v948_v7 }
  0x3e   :  { %284 = vmatmul.mubr.f32.gmra.mxu0 %v74_v34  ;;  %414 = vmatmul.mubr.f32.gmra.mxu1 %v76_v35 }
  0x3f   :  { %920 = vmatprep.subr.mxu1 %v948_v7  ;;  %858 = vmatpush3.msra.mxu0 %v181_v36 }
  0x40   :  { %936 = vmatpush3.msra.mxu1 %v182_v31  ;;  %859 = vmatprep.subr.mxu0 %v948_v7 }
  0x41   :  { %288 = vmatprep.mubr.f32.mxu0 %v80_v37  ;;  %418 = vmatprep.mubr.f32.mxu1 %v82_v38 }
  0x42   :  { %921 = vmatprep.subr.mxu1 %v948_v7  ;;  %860 = vmatpush3.msra.mxu0 %v180_v39 }
  0x43   :  { %419 = vmatmul.mubr.f32.gmra.mxu1 %v81_v40  ;;  %289 = vmatmul.mubr.f32.gmra.mxu0 %v79_v41 }
  0x44   :  { %937 = vmatpush3.msra.mxu1 %v181_v36  ;;  %861 = vmatprep.subr.mxu0 %v948_v7 }
  0x45   :  { %922 = vmatprep.subr.mxu1 %v948_v7  ;;  %293 = vmatprep.mubr.f32.mxu0 %v85_v42 }
  0x46   :  { %423 = vmatprep.mubr.f32.mxu1 %v87_v43  ;;  %938 = vmatpush3.msra.mxu1 %v180_v39 }
  0x47   :  { %862 = vmatpush3.msra.mxu0 %v179_v44  ;;  %424 = vmatmul.mubr.f32.gmra.mxu1 %v86_v46 }
  0x48   :  { %294 = vmatmul.mubr.f32.gmra.mxu0 %v84_v45  ;;  %863 = vmatprep.subr.mxu0 %v948_v7 }
  0x49   :  { %923 = vmatprep.subr.mxu1 %v948_v7  ;;  %864 = vmatpush3.msra.mxu0 %v178_v47 }
  0x4a   :  { %298 = vmatprep.mubr.f32.mxu0 %v90_v48  ;;  %428 = vmatprep.mubr.f32.mxu1 %v92_v49 }
  0x4b   :  { %939 = vmatpush3.msra.mxu1 %v179_v44  ;;  %865 = vmatprep.subr.mxu0 %v948_v7 }
  0x4c   :  { %299 = vmatmul.mubr.f32.gmra.mxu0 %v89_v50  ;;  %429 = vmatmul.mubr.f32.gmra.mxu1 %v91_v51 }
  0x4d   :  { %924 = vmatprep.subr.mxu1 %v948_v7  ;;  %866 = vmatpush3.msra.mxu0 %v177_v52 }
  0x4e   :  { %940 = vmatpush3.msra.mxu1 %v178_v47  ;;  %303 = vmatprep.mubr.f32.mxu0 %v95_v53 }
  0x4f   :  { %433 = vmatprep.mubr.f32.mxu1 %v97_v54  ;;  %867 = vmatprep.subr.mxu0 %v948_v7 }
  0x50   :  { %304 = vmatmul.mubr.f32.gmra.mxu0 %v94_v55  ;;  %434 = vmatmul.mubr.f32.gmra.mxu1 %v96_v56 }
  0x51   :  { %925 = vmatprep.subr.mxu1 %v948_v7  ;;  %868 = vmatpush3.msra.mxu0 %v176_v57 }
  0x52   :  { %941 = vmatpush3.msra.mxu1 %v177_v52  ;;  %308 = vmatprep.mubr.f32.mxu0 %v100_v58 }
  0x53   :  { %438 = vmatprep.mubr.f32.mxu1 %v102_v59  ;;  %926 = vmatprep.subr.mxu1 %v948_v7 }
  0x54   :  { %869 = vmatprep.subr.mxu0 %v948_v7  ;;  %309 = vmatmul.mubr.f32.gmra.mxu0 %v99_v60 }
  0x55   :  { %439 = vmatmul.mubr.f32.gmra.mxu1 %v101_v61  ;;  %870 = vmatpush3.msra.mxu0 %v175_v62 }
  0x56   :  { %942 = vmatpush3.msra.mxu1 %v176_v57  ;;  %871 = vmatprep.subr.mxu0 %v948_v7 }
  0x57   :  { %927 = vmatprep.subr.mxu1 %v948_v7  ;;  %313 = vmatprep.mubr.f32.mxu0 %v105_v63 }
  0x58   :  { %443 = vmatprep.mubr.f32.mxu1 %v107_v0  ;;  %943 = vmatpush3.msra.mxu1 %v175_v62 }
  0x59   :  { %872 = vmatpush3.msra.mxu0 %v174_v1  ;;  %444 = vmatmul.mubr.f32.gmra.mxu1 %v106_v3 }
  0x5a   :  { %314 = vmatmul.mubr.f32.gmra.mxu0 %v104_v2  ;;  %928 = vmatprep.subr.mxu1 %v948_v7 }
  0x5b   :  { %873 = vmatprep.subr.mxu0 %v948_v7  ;;  %944 = vmatpush3.msra.mxu1 %v174_v1 }
  0x5c   :  { %874 = vmatpush3.msra.mxu0 %v173_v4  ;;  %929 = vmatprep.subr.mxu1 %v948_v7 }
  0x5d   :  { %875 = vmatprep.mubr.msk.f32.mxu0 %vm949_vm0, %v948_v7  ;;  %945 = vmatpush3.msra.mxu1 %v173_v4 }
  0x5e   :  { %896 = vmatprep.mubr.msk.f32.mxu1 %vm949_vm0, %v948_v7  ;;  %876 = vmatmul.mubr.f32.vlgmr.msra.gmra.mxu0 %v48_v5 }
  0x5f   :  { %897 = vmatmul.mubr.f32.vlgmr.msra.gmra.mxu1 %v83_v6  ;;  %878 = vmatprep.mubr.msk.f32.mxu0 %vm949_vm0, %v948_v7 }
  0x60   :  { %899 = vmatprep.mubr.msk.f32.mxu1 %vm949_vm0, %v948_v7 }
  0x62   :  { %879 = vmatmul.mubr.f32.gmra.mxu0 %v53_v8 }
  0x63   :  { %900 = vmatmul.mubr.f32.gmra.mxu1 %v88_v9  ;;  %881 = vmatprep.mubr.msk.f32.mxu0 %vm949_vm0, %v948_v7 }
  0x64   :  { %902 = vmatprep.mubr.msk.f32.mxu1 %vm949_vm0, %v948_v7 }
  0x66   :  { %882 = vmatmul.mubr.f32.gmra.mxu0 %v58_v10 }
  0x67   :  { %903 = vmatmul.mubr.f32.gmra.mxu1 %v93_v11  ;;  %884 = vmatprep.mubr.msk.f32.mxu0 %vm949_vm0, %v948_v7 }
  0x68   :  { %905 = vmatprep.mubr.msk.f32.mxu1 %vm949_vm0, %v948_v7 }
  0x6a   :  { %885 = vmatmul.mubr.f32.gmra.mxu0 %v63_v12 }
  0x6b   :  { %906 = vmatmul.mubr.f32.gmra.mxu1 %v98_v13  ;;  %887 = vmatprep.mubr.msk.f32.mxu0 %vm949_vm0, %v948_v7 }
  0x6c   :  { %908 = vmatprep.mubr.msk.f32.mxu1 %vm949_vm0, %v948_v7 }
  0x6e   :  { %888 = vmatmul.mubr.f32.gmra.mxu0 %v68_v14 }
  0x6f   :  { %909 = vmatmul.mubr.f32.gmra.mxu1 %v103_v15  ;;  %890 = vmatprep.mubr.msk.f32.mxu0 %vm949_vm0, %v948_v7 }
  0x70   :  { %911 = vmatprep.mubr.msk.f32.mxu1 %vm949_vm0, %v948_v7 }
  0x72   :  { %891 = vmatmul.mubr.f32.gmra.mxu0 %v73_v16 }
  0x73   :  { %912 = vmatmul.mubr.f32.gmra.mxu1 %v108_v17  ;;  %893 = vmatprep.mubr.msk.f32.mxu0 %vm949_vm0, %v948_v7 }
  0x76   :  { %894 = vmatmul.mubr.f32.gmra.mxu0 %v78_v18  ;;  %v1506_v18 = vld [vmem:[%s1582_s2] ss:$0 sm:$0xff] }
  0xe4   :  { %v704_v19 = vpop.f32.mrf.mxu0 }
  0xe5   :  { %v775_v20 = vpop.f32.mrf.mxu1 }
  0xe6   :  { %v705_v21 = vpop.f32.mrf.mxu0 }
  0xe7   :  { %v776_v22 = vpop.f32.mrf.mxu1  ;;  %v706_v2 = vadd.f32 %v705_v21, %v704_v19 }
  0xe8   :  { %v707_v23 = vpop.f32.mrf.mxu0  ;;  %v777_v3 = vadd.f32 %v776_v22, %v775_v20 }
  0xe9   :  { %v778_v24 = vpop.f32.mrf.mxu1 }
  0xea   :  { %v708_v25 = vpop.f32.mrf.mxu0  ;;  %v386_v12 = vadd.f32 %v777_v3, %v706_v2 }
  0xeb   :  { %v779_v26 = vpop.f32.mrf.mxu1  ;;  %v709_v11 = vadd.f32 %v708_v25, %v707_v23 }
  0xec   :  { %v710_v27 = vpop.f32.mrf.mxu0  ;;  %v780_v13 = vadd.f32 %v779_v26, %v778_v24 }
  0xed   :  { %v781_v28 = vpop.f32.mrf.mxu1 }
  0xee   :  { %v711_v29 = vpop.f32.mrf.mxu0  ;;  %v391_v26 = vadd.f32 %v780_v13, %v709_v11 }
  0xef   :  { %v782_v30 = vpop.f32.mrf.mxu1  ;;  %v712_v22 = vadd.f32 %v711_v29, %v710_v27 }
  0xf1   :  { %v1463_v31 = vpop.f32.mrf.mxu1  ;;  %v1465_v7 = vpop.f32.mrf.mxu0 }
  0xf3   :  { %v1467_v32 = vpop.f32.mrf.mxu1  ;;  %v1469_v33 = vpop.f32.mrf.mxu0 }
  0xf4   :  { %v715_v27 = vadd.f32 %v1469_v33, %v1465_v7 }
  0xf5   :  { %v1471_v34 = vpop.f32.mrf.mxu0 }
  0xf6   :  { %v1473_v35 = vpop.f32.mrf.mxu1 }
  0xf7   :  { %v1475_v36 = vpop.f32.mrf.mxu0 }
  0xf8   :  { %v1477_v37 = vpop.f32.mrf.mxu1 }
  0xf9   :  { %v1479_v38 = vpop.f32.mrf.mxu0 }
  0xfa   :  { %v1481_v39 = vpop.f32.mrf.mxu1 }
  0xfb   :  { %v1483_v40 = vpop.f32.mrf.mxu0 }
  0xfc   :  { %v1485_v41 = vpop.f32.mrf.mxu1 }
  0xfe   :  { %v1487_v42 = vpop.f32.mrf.mxu0  ;;  %v1489_v43 = vpop.f32.mrf.mxu1 }
 0x100   :  { %v1491_v44 = vpop.f32.mrf.mxu0  ;;  %v1493_v45 = vpop.f32.mrf.mxu1 }
 0x103   :  { %v796_v46 = vpop.f32.mrf.mxu1  ;;  %v725_v47 = vpop.f32.mrf.mxu0 }
 0x105   :  { %v797_v48 = vpop.f32.mrf.mxu1  ;;  %v726_v49 = vpop.f32.mrf.mxu0 }
 0x106   :  { %v727_v4 = vadd.f32 %v726_v49, %v725_v47  ;;  %v798_v5 = vadd.f32 %v797_v48, %v796_v46  ;;  %v783_v46 = vadd.f32 %v782_v30, %v781_v28  ;;  %v786_v28 = vadd.f32 %v1467_v32, %v1463_v31 }
 0x107   :  { %v799_v51 = vpop.f32.mrf.mxu1 }
 0x108   :  { %v728_v50 = vpop.f32.mrf.mxu0  ;;  %v421_v16 = vadd.f32 %v798_v5, %v727_v4 }
 0x109   :  { %v800_v53 = vpop.f32.mrf.mxu1 }
 0x10a   :  { %v729_v52 = vpop.f32.mrf.mxu0  ;;  %v801_v15 = vadd.f32 %v800_v53, %v799_v51 }
 0x10b   :  { %v730_v14 = vadd.f32 %v729_v52, %v728_v50 }
 0x10c   :  { %v731_v54 = vpop.f32.mrf.mxu0  ;;  %v802_v55 = vpop.f32.mrf.mxu1 }
 0x10d   :  { %v426_v50 = vadd.f32 %v801_v15, %v730_v14 }
 0x10e   :  { %v732_v56 = vpop.f32.mrf.mxu0  ;;  %v803_v57 = vpop.f32.mrf.mxu1 }
 0x10f   :  { %v733_v47 = vadd.f32 %v732_v56, %v731_v54  ;;  %v804_v48 = vadd.f32 %v803_v57, %v802_v55  ;;  %v396_v54 = vadd.f32 %v783_v46, %v712_v22 }
 0x110   :  { %v734_v58 = vpop.f32.mrf.mxu0  ;;  %v805_v59 = vpop.f32.mrf.mxu1 }
 0x111   :  { %v431_v55 = vadd.f32 %v804_v48, %v733_v47 }
 0x112   :  { %v735_v60 = vpop.f32.mrf.mxu0  ;;  %v806_v61 = vpop.f32.mrf.mxu1 }
 0x113   :  { %v736_v56 = vadd.f32 %v735_v60, %v734_v58  ;;  %v807_v57 = vadd.f32 %v806_v61, %v805_v59  ;;  %v718_v58 = vadd.f32 %v1475_v36, %v1471_v34  ;;  %v789_v59 = vadd.f32 %v1477_v37, %v1473_v35 }
 0x114   :  { %v737_v62 = vpop.f32.mrf.mxu0  ;;  %v401_v34 = vadd.f32 %v786_v28, %v715_v27 }
 0x115   :  { %v808_v63 = vpop.f32.mrf.mxu1  ;;  %v436_v36 = vadd.f32 %v807_v57, %v736_v56  ;;  %v406_v46 = vadd.f32 %v789_v59, %v718_v58 }
 0x116   :  { %v738_v0 = vpop.f32.mrf.mxu0 }
 0x117   :  { %v809_v1 = vpop.f32.mrf.mxu1  ;;  %v739_v60 = vadd.f32 %v738_v0, %v737_v62 }
 0x118   :  { %v810_v61 = vadd.f32 %v809_v1, %v808_v63  ;;  %v721_v1 = vadd.f32 %v1483_v40, %v1479_v38 }
 0x119   :  { %v1497_v8 = vpop.f32.mrf.mxu1 }
 0x11a   :  { %v1495_v6 = vpop.f32.mrf.mxu0  ;;  %v441_v47 = vadd.f32 %v810_v61, %v739_v60 }
 0x11b   :  { %v1501_v10 = vpop.f32.mrf.mxu1 }
 0x11c   :  { %v1499_v9 = vpop.f32.mrf.mxu0 }
 0x11d   :  { %v742_v48 = vadd.f32 %v1499_v9, %v1495_v6 }
 0x11e   :  { %v515_v17 = vpop.f32.mrf.mxu0 }
 0x11f   :  { %v550_v19 = vpop.f32.mrf.mxu1  ;;  %v516_v20 = vadd.f32 %v515_v17, %v386_v12 }
 0x120   :  { %v551_v21 = vadd.f32 %v550_v19, %v421_v16  ;;  %v877_v49 = vpop.f32.mrf.mxu0 }
 0x121   :  { %v898_v23 = vpop.f32.mrf.mxu1  ;;  %v628_v24 = vadd.f32 %v1506_v18, %v516_v20  ;;  %v792_v20 = vadd.f32 %v1485_v41, %v1481_v39  ;;  %v813_v49 = vadd.f32 %v1501_v10, %v1497_v8  ;;  %v724_v8 = vadd.f32 %v1491_v44, %v1487_v42 }
 0x122   :  { %v635_v25 = vadd.f32 %v1506_v18, %v551_v21  ;;  %v520_v51 = vpop.f32.mrf.mxu0 }
 0x123   :  { %v555_v52 = vpop.f32.mrf.mxu1  ;;  %v641_v53 = vmax.f32 %v628_v24, 0.0  ;;  %v521_v3 = vadd.f32 %v520_v51, %v391_v26  ;;  %v411_v26 = vadd.f32 %v792_v20, %v721_v1 }
 0x124   :  { %v648_v2 = vmax.f32 %v635_v25, 0.0  ;;  %v556_v4 = vadd.f32 %v555_v52, %v426_v50  ;;  %v880_v29 = vpop.f32.mrf.mxu0  ;;  %v795_v50 = vadd.f32 %v1493_v45, %v1489_v43 }
 0x125   :  { %v901_v30 = vpop.f32.mrf.mxu1  ;;  %654 = vst [vmem:[%s1583_s3] sm:$0xff] %v641_v53  ;;  %v629_v5 = vadd.f32 %v1506_v18, %v521_v3  ;;  %v446_v53 = vadd.f32 %v813_v49, %v742_v48 }
 0x126   :  { %661 = vst [vmem:[%s1583_s3 + $0x38] sm:$0xff] %v648_v2  ;;  %v636_v7 = vadd.f32 %v1506_v18, %v556_v4  ;;  %v525_v33 = vpop.f32.mrf.mxu0  ;;  %v416_v30 = vadd.f32 %v795_v50, %v724_v8 }
 0x127   :  { %v560_v31 = vpop.f32.mrf.mxu1  ;;  %v642_v32 = vmax.f32 %v629_v5, 0.0  ;;  %v526_v12 = vadd.f32 %v525_v33, %v396_v54 }
 0x128   :  { %v649_v11 = vmax.f32 %v636_v7, 0.0  ;;  %v561_v13 = vadd.f32 %v560_v31, %v431_v55  ;;  %v883_v14 = vpop.f32.mrf.mxu0 }
 0x129   :  { %v904_v15 = vpop.f32.mrf.mxu1  ;;  %655 = vst [vmem:[%s1583_s3 + $0x8] sm:$0xff] %v642_v32  ;;  %v630_v16 = vadd.f32 %v1506_v18, %v526_v12 }
 0x12a   :  { %662 = vst [vmem:[%s1583_s3 + $0x40] sm:$0xff] %v649_v11  ;;  %v637_v17 = vadd.f32 %v1506_v18, %v561_v13  ;;  %v530_v19 = vpop.f32.mrf.mxu0 }
 0x12b   :  { %v565_v35 = vpop.f32.mrf.mxu1  ;;  %v643_v37 = vmax.f32 %v630_v16, 0.0  ;;  %v531_v63 = vadd.f32 %v530_v19, %v401_v34 }
 0x12c   :  { %v650_v62 = vmax.f32 %v637_v17, 0.0  ;;  %v566_v0 = vadd.f32 %v565_v35, %v436_v36  ;;  %v886_v21 = vpop.f32.mrf.mxu0 }
 0x12d   :  { %v907_v22 = vpop.f32.mrf.mxu1  ;;  %656 = vst [vmem:[%s1583_s3 + $0x10] sm:$0xff] %v643_v37  ;;  %v631_v38 = vadd.f32 %v1506_v18, %v531_v63 }
 0x12e   :  { %663 = vst [vmem:[%s1583_s3 + $0x48] sm:$0xff] %v650_v62  ;;  %v638_v39 = vadd.f32 %v1506_v18, %v566_v0  ;;  %v535_v40 = vpop.f32.mrf.mxu0 }
 0x12f   :  { %v570_v41 = vpop.f32.mrf.mxu1  ;;  %v644_v23 = vmax.f32 %v631_v38, 0.0  ;;  %v536_v6 = vadd.f32 %v535_v40, %v406_v46 }
 0x130   :  { %v651_v24 = vmax.f32 %v638_v39, 0.0  ;;  %v571_v9 = vadd.f32 %v570_v41, %v441_v47  ;;  %v889_v10 = vpop.f32.mrf.mxu0 }
 0x131   :  { %v910_v25 = vpop.f32.mrf.mxu1  ;;  %657 = vst [vmem:[%s1583_s3 + $0x18] sm:$0xff] %v644_v23  ;;  %v632_v51 = vadd.f32 %v1506_v18, %v536_v6 }
 0x132   :  { %664 = vst [vmem:[%s1583_s3 + $0x50] sm:$0xff] %v651_v24  ;;  %v639_v52 = vadd.f32 %v1506_v18, %v571_v9  ;;  %v540_v42 = vpop.f32.mrf.mxu0 }
 0x133   :  { %v575_v44 = vpop.f32.mrf.mxu1  ;;  %v645_v2 = vmax.f32 %v632_v51, 0.0  ;;  %v541_v4 = vadd.f32 %v540_v42, %v411_v26 }
 0x134   :  { %v652_v3 = vmax.f32 %v639_v52, 0.0  ;;  %v576_v27 = vadd.f32 %v575_v44, %v446_v53  ;;  %v892_v43 = vpop.f32.mrf.mxu0 }
 0x135   :  { %v913_v45 = vpop.f32.mrf.mxu1  ;;  %658 = vst [vmem:[%s1583_s3 + $0x20] sm:$0xff] %v645_v2  ;;  %v633_v28 = vadd.f32 %v1506_v18, %v541_v4 }
 0x136   :  { %665 = vst [vmem:[%s1583_s3 + $0x58] sm:$0xff] %v652_v3  ;;  %v640_v29 = vadd.f32 %v1506_v18, %v576_v27  ;;  %v545_v54 = vpop.f32.mrf.mxu0 }
 0x137   :  { %v646_v55 = vmax.f32 %v633_v28, 0.0  ;;  %v546_v57 = vadd.f32 %v545_v54, %v416_v30 }
 0x138   :  { %v653_v56 = vmax.f32 %v640_v29, 0.0  ;;  %v895_v5 = vpop.f32.mrf.mxu0 }
 0x139   :  { %659 = vst [vmem:[%s1583_s3 + $0x28] sm:$0xff] %v646_v55  ;;  %v634_v7 = vadd.f32 %v1506_v18, %v546_v57 }
 0x13a   :  { %666 = vst [vmem:[%s1583_s3 + $0x60] sm:$0xff] %v653_v56 }
 0x13b   :  { %v647_v33 = vmax.f32 %v634_v7, 0.0 }
 0x13d   :  { %660 = vst [vmem:[%s1583_s3 + $0x30] sm:$0xff] %v647_v33 }

// kernel: forward.7
= control target key start
LH: loop header
LB: loop body
LE: loop exit
PB: predicated region body
PF: predicated region fallthrough
CT: control target
= control target key end

     0   :  { %s1333_s18 = smov 0   ;;  %s1335_s19 = smov 0   ;;  %s1853_s0 = inlined_call_operand.vmem [shape: f32[8,3584], index: 0, kind: input, shape index: {}]   ;;  %s1854_s1 = inlined_call_operand.vmem [shape: f32[3584,512], index: 1, kind: input, shape index: {}]   ;;  %s1855_s2 = inlined_call_operand.vmem [shape: f32[1,512], index: 2, kind: input, shape index: {}]   ;;  %s1856_s3 = inlined_call_operand.vmem [shape: f32[512,128], index: 3, kind: input, shape index: {}]   ;;  %s1857_s4 = inlined_call_operand.vmem [shape: f32[1,128], index: 4, kind: input, shape index: {}]   ;;  %s1858_s5 = inlined_call_operand.vmem [shape: f32[8,128], index: 5, kind: output, shape index: {}]  }
   0x1   :  { %s1337_s20 = smov 0  }
   0x2 LB: > { %s24_s21 = sadd.s32 1, %s1296_s19  ;;  %p1170_p0 = scmp.ge.s32.totalorder %s1300_s20, 1  ;;  %s1300_s20 = sphi %s1337_s20, %s15_s20   ;;  %s1296_s19 = sphi %s1335_s19, %s1860_s19   ;;  %s1292_s18 = sphi %s1333_s18, %s1859_s18  }
   0x3   : > { %p25_p1 = scmp.ge.s32.totalorder %s24_s21, 7  ;;  %p218_p2 = scmp.lt.s32.totalorder %s1300_s20, 8 }
   0x5   : > { %s1862_s21 = smov (%p25_p1, %s24_s21), 0  ;;  %p219_p3 = pnand %p1170_p0, %p218_p2 }
   0x6   : > { %s1171_s22 = sshll.u32 (!%p219_p3), %s1292_s18, 2  ;;  %s1173_s23 = sshll.u32 (!%p219_p3), %s1292_s18, 6 }
   0x7   : > { %222 = sbr.rel (%p219_p3) target bundleno = 593 (0x251), region = 40  ;;  %p258_p4 = scmp.lt.s32.totalorder (!%p219_p3), %s1171_s22, 27 }
   0x8   : > { %p266_p5 = scmp.lt.s32.totalorder (!%p219_p3), %s1173_s23, 447  ;;  %p1176_p6 = scmp.ne.s32.totalorder (!%p219_p3), %s1292_s18, 0 }
   0xc   : > { %s1864_s22 = smov (!%p258_p4, %s1171_s22), 27  ;;  %s1866_s23 = smov (!%p266_p5, %s1173_s23), 447 }
   0xd   : > { %s1172_s24 = sshll.u32 %s1864_s22, 3  ;;  %s1182_s28 = sshll.u32 %s1866_s23, 5 }
   0xe   : > { %s1358_s27 = scalar_lea.vmem %s1853_s0, %s1172_s24  ;;  %s1363_s6 = scalar_lea.vmem %s1854_s1, %s1182_s28 }
   0xf   : > { %279 = sbr.rel (%p1176_p6) target bundleno = 23 (0x17), region = 44 }
  0x14   : > { %v1302_v0 = vmov 0.0  }
  0x15   : > { %280 = vst [vmem:[#allocation2 + $0x10] sm:$0xff] %v1302_v0  ;;  %281 = vst [vmem:[#allocation2] sm:$0xff] %v1302_v0 }
  0x16   : > { %282 = vst [vmem:[#allocation2 + $0x18] sm:$0xff] %v1302_v0  ;;  %283 = vst [vmem:[#allocation2 + $0x8] sm:$0xff] %v1302_v0 }
  0x17 PF: > { %v353_v1 = vld [vmem:[%s1363_s6 + $0x1e8] sm:$0xff]  ;;  %v352_v3 = vld [vmem:[%s1363_s6 + $0x1e0] sm:$0xff]  ;;  %p1177_p7 = scmp.ne.s32.totalorder %s1292_s18, 6 }
  0x18   : > { %v481_v2 = vld [vmem:[%s1363_s6 + $0x5e8] sm:$0xff]  ;;  %548 = vmatprep.subr.mxu0 %v353_v1  ;;  %v480_v4 = vld [vmem:[%s1363_s6 + $0x5e0] sm:$0xff] }
  0x19   : > { %619 = vmatprep.subr.mxu1 %v481_v2  ;;  %v349_v5 = vld [vmem:[%s1363_s6 + $0x1c8] sm:$0xff]  ;;  %549 = vmatpush1.msra.mxu0 %v352_v3  ;;  %v348_v7 = vld [vmem:[%s1363_s6 + $0x1c0] sm:$0xff] }
  0x1a   : > { %v477_v6 = vld [vmem:[%s1363_s6 + $0x5c8] sm:$0xff]  ;;  %620 = vmatpush1.msra.mxu1 %v480_v4  ;;  %v476_v8 = vld [vmem:[%s1363_s6 + $0x5c0] sm:$0xff]  ;;  %550 = vmatprep.subr.mxu0 %v349_v5 }
  0x1b   : > { %v345_v9 = vld [vmem:[%s1363_s6 + $0x1a8] sm:$0xff]  ;;  %621 = vmatprep.subr.mxu1 %v477_v6  ;;  %v344_v11 = vld [vmem:[%s1363_s6 + $0x1a0] sm:$0xff]  ;;  %551 = vmatpush1.msra.mxu0 %v348_v7 }
  0x1c   : > { %v473_v10 = vld [vmem:[%s1363_s6 + $0x5a8] sm:$0xff]  ;;  %v472_v12 = vld [vmem:[%s1363_s6 + $0x5a0] sm:$0xff]  ;;  %622 = vmatpush1.msra.mxu1 %v476_v8  ;;  %552 = vmatprep.subr.mxu0 %v345_v9 }
  0x1d   : > { %v341_v13 = vld [vmem:[%s1363_s6 + $0x188] sm:$0xff]  ;;  %623 = vmatprep.subr.mxu1 %v473_v10  ;;  %v340_v15 = vld [vmem:[%s1363_s6 + $0x180] sm:$0xff]  ;;  %553 = vmatpush1.msra.mxu0 %v344_v11 }
  0x1e   : > { %v469_v14 = vld [vmem:[%s1363_s6 + $0x588] sm:$0xff]  ;;  %v468_v16 = vld [vmem:[%s1363_s6 + $0x580] sm:$0xff]  ;;  %624 = vmatpush1.msra.mxu1 %v472_v12  ;;  %554 = vmatprep.subr.mxu0 %v341_v13 }
  0x1f   : > { %v337_v17 = vld [vmem:[%s1363_s6 + $0x168] sm:$0xff]  ;;  %625 = vmatprep.subr.mxu1 %v469_v14  ;;  %v336_v19 = vld [vmem:[%s1363_s6 + $0x160] sm:$0xff]  ;;  %555 = vmatpush1.msra.mxu0 %v340_v15 }
  0x20   : > { %v465_v18 = vld [vmem:[%s1363_s6 + $0x568] sm:$0xff]  ;;  %v464_v20 = vld [vmem:[%s1363_s6 + $0x560] sm:$0xff]  ;;  %626 = vmatpush1.msra.mxu1 %v468_v16  ;;  %556 = vmatprep.subr.mxu0 %v337_v17 }
  0x21   : > { %v333_v21 = vld [vmem:[%s1363_s6 + $0x148] sm:$0xff]  ;;  %627 = vmatprep.subr.mxu1 %v465_v18  ;;  %v332_v23 = vld [vmem:[%s1363_s6 + $0x140] sm:$0xff]  ;;  %557 = vmatpush1.msra.mxu0 %v336_v19 }
  0x22   : > { %v461_v22 = vld [vmem:[%s1363_s6 + $0x548] sm:$0xff]  ;;  %v460_v24 = vld [vmem:[%s1363_s6 + $0x540] sm:$0xff]  ;;  %628 = vmatpush1.msra.mxu1 %v464_v20  ;;  %558 = vmatprep.subr.mxu0 %v333_v21 }
  0x23   : > { %v329_v25 = vld [vmem:[%s1363_s6 + $0x128] sm:$0xff]  ;;  %629 = vmatprep.subr.mxu1 %v461_v22  ;;  %v328_v27 = vld [vmem:[%s1363_s6 + $0x120] sm:$0xff]  ;;  %559 = vmatpush1.msra.mxu0 %v332_v23 }
  0x24   : > { %v457_v26 = vld [vmem:[%s1363_s6 + $0x528] sm:$0xff]  ;;  %v456_v28 = vld [vmem:[%s1363_s6 + $0x520] sm:$0xff]  ;;  %630 = vmatpush1.msra.mxu1 %v460_v24  ;;  %560 = vmatprep.subr.mxu0 %v329_v25 }
  0x25   : > { %v325_v29 = vld [vmem:[%s1363_s6 + $0x108] sm:$0xff]  ;;  %631 = vmatprep.subr.mxu1 %v457_v26  ;;  %v324_v31 = vld [vmem:[%s1363_s6 + $0x100] sm:$0xff]  ;;  %561 = vmatpush1.msra.mxu0 %v328_v27 }
  0x26   : > { %v453_v30 = vld [vmem:[%s1363_s6 + $0x508] sm:$0xff]  ;;  %v452_v32 = vld [vmem:[%s1363_s6 + $0x500] sm:$0xff]  ;;  %632 = vmatpush1.msra.mxu1 %v456_v28  ;;  %562 = vmatprep.subr.mxu0 %v325_v29 }
  0x27   : > { %v321_v33 = vld [vmem:[%s1363_s6 + $0xe8] sm:$0xff]  ;;  %633 = vmatprep.subr.mxu1 %v453_v30  ;;  %v320_v35 = vld [vmem:[%s1363_s6 + $0xe0] sm:$0xff]  ;;  %563 = vmatpush1.msra.mxu0 %v324_v31 }
  0x28   : > { %v449_v34 = vld [vmem:[%s1363_s6 + $0x4e8] sm:$0xff]  ;;  %v448_v36 = vld [vmem:[%s1363_s6 + $0x4e0] sm:$0xff]  ;;  %634 = vmatpush1.msra.mxu1 %v452_v32  ;;  %564 = vmatprep.subr.mxu0 %v321_v33 }
  0x29   : > { %v317_v37 = vld [vmem:[%s1363_s6 + $0xc8] sm:$0xff]  ;;  %635 = vmatprep.subr.mxu1 %v449_v34  ;;  %v316_v39 = vld [vmem:[%s1363_s6 + $0xc0] sm:$0xff]  ;;  %565 = vmatpush1.msra.mxu0 %v320_v35 }
  0x2a   : > { %v445_v38 = vld [vmem:[%s1363_s6 + $0x4c8] sm:$0xff]  ;;  %v444_v40 = vld [vmem:[%s1363_s6 + $0x4c0] sm:$0xff]  ;;  %636 = vmatpush1.msra.mxu1 %v448_v36  ;;  %566 = vmatprep.subr.mxu0 %v317_v37 }
  0x2b   : > { %v313_v41 = vld [vmem:[%s1363_s6 + $0xa8] sm:$0xff]  ;;  %637 = vmatprep.subr.mxu1 %v445_v38  ;;  %v312_v43 = vld [vmem:[%s1363_s6 + $0xa0] sm:$0xff]  ;;  %567 = vmatpush1.msra.mxu0 %v316_v39 }
  0x2c   : > { %v441_v42 = vld [vmem:[%s1363_s6 + $0x4a8] sm:$0xff]  ;;  %v440_v44 = vld [vmem:[%s1363_s6 + $0x4a0] sm:$0xff]  ;;  %638 = vmatpush1.msra.mxu1 %v444_v40  ;;  %568 = vmatprep.subr.mxu0 %v313_v41 }
  0x2d   : > { %v309_v45 = vld [vmem:[%s1363_s6 + $0x88] sm:$0xff]  ;;  %639 = vmatprep.subr.mxu1 %v441_v42  ;;  %v308_v47 = vld [vmem:[%s1363_s6 + $0x80] sm:$0xff]  ;;  %569 = vmatpush1.msra.mxu0 %v312_v43 }
  0x2e   : > { %v437_v46 = vld [vmem:[%s1363_s6 + $0x488] sm:$0xff]  ;;  %v436_v48 = vld [vmem:[%s1363_s6 + $0x480] sm:$0xff]  ;;  %640 = vmatpush1.msra.mxu1 %v440_v44  ;;  %570 = vmatprep.subr.mxu0 %v309_v45 }
  0x2f   : > { %v305_v49 = vld [vmem:[%s1363_s6 + $0x68] sm:$0xff]  ;;  %641 = vmatprep.subr.mxu1 %v437_v46  ;;  %v304_v51 = vld [vmem:[%s1363_s6 + $0x60] sm:$0xff]  ;;  %571 = vmatpush1.msra.mxu0 %v308_v47 }
  0x30   : > { %v433_v50 = vld [vmem:[%s1363_s6 + $0x468] sm:$0xff]  ;;  %v432_v52 = vld [vmem:[%s1363_s6 + $0x460] sm:$0xff]  ;;  %642 = vmatpush1.msra.mxu1 %v436_v48  ;;  %572 = vmatprep.subr.mxu0 %v305_v49 }
  0x31   : > { %v301_v53 = vld [vmem:[%s1363_s6 + $0x48] sm:$0xff]  ;;  %643 = vmatprep.subr.mxu1 %v433_v50  ;;  %v300_v55 = vld [vmem:[%s1363_s6 + $0x40] sm:$0xff]  ;;  %573 = vmatpush1.msra.mxu0 %v304_v51 }
  0x32   : > { %v429_v54 = vld [vmem:[%s1363_s6 + $0x448] sm:$0xff]  ;;  %v428_v56 = vld [vmem:[%s1363_s6 + $0x440] sm:$0xff]  ;;  %644 = vmatpush1.msra.mxu1 %v432_v52  ;;  %574 = vmatprep.subr.mxu0 %v301_v53 }
  0x33   : > { %v297_v57 = vld [vmem:[%s1363_s6 + $0x28] sm:$0xff]  ;;  %645 = vmatprep.subr.mxu1 %v429_v54  ;;  %v296_v59 = vld [vmem:[%s1363_s6 + $0x20] sm:$0xff]  ;;  %575 = vmatpush1.msra.mxu0 %v300_v55 }
  0x34   : > { %v425_v58 = vld [vmem:[%s1363_s6 + $0x428] sm:$0xff]  ;;  %v424_v60 = vld [vmem:[%s1363_s6 + $0x420] sm:$0xff]  ;;  %646 = vmatpush1.msra.mxu1 %v428_v56  ;;  %576 = vmatprep.subr.mxu0 %v297_v57 }
  0x35   : > { %v293_v61 = vld [vmem:[%s1363_s6 + $0x8] sm:$0xff]  ;;  %647 = vmatprep.subr.mxu1 %v425_v58  ;;  %v292_v63 = vld [vmem:[%s1363_s6] sm:$0xff]  ;;  %577 = vmatpush1.msra.mxu0 %v296_v59 }
  0x36   : > { %v421_v62 = vld [vmem:[%s1363_s6 + $0x408] sm:$0xff]  ;;  %v420_v0 = vld [vmem:[%s1363_s6 + $0x400] sm:$0xff]  ;;  %648 = vmatpush1.msra.mxu1 %v424_v60  ;;  %578 = vmatprep.subr.mxu0 %v293_v61 }
  0x37   : > { %v417_v1 = vld [vmem:[%s1363_s6 + $0x3e8] sm:$0xff]  ;;  %649 = vmatprep.subr.mxu1 %v421_v62  ;;  %v416_v3 = vld [vmem:[%s1363_s6 + $0x3e0] sm:$0xff]  ;;  %579 = vmatpush1.msra.mxu0 %v292_v63 }
  0x38   : > { %v545_v2 = vld [vmem:[%s1363_s6 + $0x7e8] sm:$0xff]  ;;  %v544_v4 = vld [vmem:[%s1363_s6 + $0x7e0] sm:$0xff]  ;;  %650 = vmatpush1.msra.mxu1 %v420_v0  ;;  %580 = vmatprep.subr.mxu0 %v417_v1 }
  0x39   : > { %v413_v5 = vld [vmem:[%s1363_s6 + $0x3c8] sm:$0xff]  ;;  %651 = vmatprep.subr.mxu1 %v545_v2  ;;  %v412_v7 = vld [vmem:[%s1363_s6 + $0x3c0] sm:$0xff]  ;;  %581 = vmatpush2.msra.mxu0 %v416_v3  ;;  %v1498_v2 = vld [vmem:[%s1358_s27 + $0x18] sm:$0xff] }
  0x3a   : > { %v541_v6 = vld [vmem:[%s1363_s6 + $0x7c8] sm:$0xff]  ;;  %v540_v8 = vld [vmem:[%s1363_s6 + $0x7c0] sm:$0xff]  ;;  %652 = vmatpush2.msra.mxu1 %v544_v4  ;;  %582 = vmatprep.subr.mxu0 %v413_v5  ;;  %v1504_v4 = vld [vmem:[%s1358_s27 + $0x10] sm:$0xff] }
  0x3b   : > { %v409_v9 = vld [vmem:[%s1363_s6 + $0x3a8] sm:$0xff]  ;;  %653 = vmatprep.subr.mxu1 %v541_v6  ;;  %v408_v11 = vld [vmem:[%s1363_s6 + $0x3a0] sm:$0xff]  ;;  %583 = vmatpush2.msra.mxu0 %v412_v7  ;;  %v355_v5 = vld [vmem:[%s1363_s6 + $0x1f8] sm:$0xff] }
  0x3c   : > { %v537_v10 = vld [vmem:[%s1363_s6 + $0x7a8] sm:$0xff]  ;;  %v536_v12 = vld [vmem:[%s1363_s6 + $0x7a0] sm:$0xff]  ;;  %654 = vmatpush2.msra.mxu1 %v540_v8  ;;  %584 = vmatprep.subr.mxu0 %v409_v9  ;;  %v483_v6 = vld [vmem:[%s1363_s6 + $0x5f8] sm:$0xff] }
  0x3d   : > { %v405_v13 = vld [vmem:[%s1363_s6 + $0x388] sm:$0xff]  ;;  %655 = vmatprep.subr.mxu1 %v537_v10  ;;  %v404_v15 = vld [vmem:[%s1363_s6 + $0x380] sm:$0xff]  ;;  %585 = vmatpush2.msra.mxu0 %v408_v11  ;;  %v354_v7 = vld [vmem:[%s1363_s6 + $0x1f0] sm:$0xff] }
  0x3e   : > { %v533_v14 = vld [vmem:[%s1363_s6 + $0x788] sm:$0xff]  ;;  %v532_v16 = vld [vmem:[%s1363_s6 + $0x780] sm:$0xff]  ;;  %656 = vmatpush2.msra.mxu1 %v536_v12  ;;  %586 = vmatprep.subr.mxu0 %v405_v13  ;;  %v482_v8 = vld [vmem:[%s1363_s6 + $0x5f0] sm:$0xff] }
  0x3f   : > { %v401_v17 = vld [vmem:[%s1363_s6 + $0x368] sm:$0xff]  ;;  %657 = vmatprep.subr.mxu1 %v533_v14  ;;  %v400_v19 = vld [vmem:[%s1363_s6 + $0x360] sm:$0xff]  ;;  %587 = vmatpush2.msra.mxu0 %v404_v15  ;;  %v351_v9 = vld [vmem:[%s1363_s6 + $0x1d8] sm:$0xff] }
  0x40   : > { %v529_v18 = vld [vmem:[%s1363_s6 + $0x768] sm:$0xff]  ;;  %v528_v20 = vld [vmem:[%s1363_s6 + $0x760] sm:$0xff]  ;;  %658 = vmatpush2.msra.mxu1 %v532_v16  ;;  %588 = vmatprep.subr.mxu0 %v401_v17  ;;  %v479_v10 = vld [vmem:[%s1363_s6 + $0x5d8] sm:$0xff] }
  0x41   : > { %v397_v21 = vld [vmem:[%s1363_s6 + $0x348] sm:$0xff]  ;;  %659 = vmatprep.subr.mxu1 %v529_v18  ;;  %v396_v23 = vld [vmem:[%s1363_s6 + $0x340] sm:$0xff]  ;;  %589 = vmatpush2.msra.mxu0 %v400_v19  ;;  %v350_v11 = vld [vmem:[%s1363_s6 + $0x1d0] sm:$0xff] }
  0x42   : > { %v525_v22 = vld [vmem:[%s1363_s6 + $0x748] sm:$0xff]  ;;  %v524_v24 = vld [vmem:[%s1363_s6 + $0x740] sm:$0xff]  ;;  %660 = vmatpush2.msra.mxu1 %v528_v20  ;;  %590 = vmatprep.subr.mxu0 %v397_v21  ;;  %v478_v12 = vld [vmem:[%s1363_s6 + $0x5d0] sm:$0xff] }
  0x43   : > { %v393_v25 = vld [vmem:[%s1363_s6 + $0x328] sm:$0xff]  ;;  %661 = vmatprep.subr.mxu1 %v525_v22  ;;  %v392_v27 = vld [vmem:[%s1363_s6 + $0x320] sm:$0xff]  ;;  %591 = vmatpush2.msra.mxu0 %v396_v23  ;;  %v347_v13 = vld [vmem:[%s1363_s6 + $0x1b8] sm:$0xff] }
  0x44   : > { %v521_v26 = vld [vmem:[%s1363_s6 + $0x728] sm:$0xff]  ;;  %v520_v28 = vld [vmem:[%s1363_s6 + $0x720] sm:$0xff]  ;;  %662 = vmatpush2.msra.mxu1 %v524_v24  ;;  %592 = vmatprep.subr.mxu0 %v393_v25  ;;  %v475_v14 = vld [vmem:[%s1363_s6 + $0x5b8] sm:$0xff] }
  0x45   : > { %v389_v29 = vld [vmem:[%s1363_s6 + $0x308] sm:$0xff]  ;;  %663 = vmatprep.subr.mxu1 %v521_v26  ;;  %v388_v31 = vld [vmem:[%s1363_s6 + $0x300] sm:$0xff]  ;;  %593 = vmatpush2.msra.mxu0 %v392_v27  ;;  %v346_v15 = vld [vmem:[%s1363_s6 + $0x1b0] sm:$0xff] }
  0x46   : > { %v517_v30 = vld [vmem:[%s1363_s6 + $0x708] sm:$0xff]  ;;  %v516_v32 = vld [vmem:[%s1363_s6 + $0x700] sm:$0xff]  ;;  %664 = vmatpush2.msra.mxu1 %v520_v28  ;;  %594 = vmatprep.subr.mxu0 %v389_v29  ;;  %v474_v16 = vld [vmem:[%s1363_s6 + $0x5b0] sm:$0xff] }
  0x47   : > { %v385_v33 = vld [vmem:[%s1363_s6 + $0x2e8] sm:$0xff]  ;;  %665 = vmatprep.subr.mxu1 %v517_v30  ;;  %v384_v35 = vld [vmem:[%s1363_s6 + $0x2e0] sm:$0xff]  ;;  %595 = vmatpush2.msra.mxu0 %v388_v31  ;;  %v343_v17 = vld [vmem:[%s1363_s6 + $0x198] sm:$0xff] }
  0x48   : > { %v513_v34 = vld [vmem:[%s1363_s6 + $0x6e8] sm:$0xff]  ;;  %v512_v36 = vld [vmem:[%s1363_s6 + $0x6e0] sm:$0xff]  ;;  %666 = vmatpush2.msra.mxu1 %v516_v32  ;;  %596 = vmatprep.subr.mxu0 %v385_v33  ;;  %v471_v18 = vld [vmem:[%s1363_s6 + $0x598] sm:$0xff] }
  0x49   : > { %v381_v37 = vld [vmem:[%s1363_s6 + $0x2c8] sm:$0xff]  ;;  %667 = vmatprep.subr.mxu1 %v513_v34  ;;  %v380_v39 = vld [vmem:[%s1363_s6 + $0x2c0] sm:$0xff]  ;;  %597 = vmatpush2.msra.mxu0 %v384_v35  ;;  %v342_v19 = vld [vmem:[%s1363_s6 + $0x190] sm:$0xff] }
  0x4a   : > { %v509_v38 = vld [vmem:[%s1363_s6 + $0x6c8] sm:$0xff]  ;;  %v508_v40 = vld [vmem:[%s1363_s6 + $0x6c0] sm:$0xff]  ;;  %668 = vmatpush2.msra.mxu1 %v512_v36  ;;  %598 = vmatprep.subr.mxu0 %v381_v37  ;;  %v470_v20 = vld [vmem:[%s1363_s6 + $0x590] sm:$0xff] }
  0x4b   : > { %v377_v41 = vld [vmem:[%s1363_s6 + $0x2a8] sm:$0xff]  ;;  %669 = vmatprep.subr.mxu1 %v509_v38  ;;  %v376_v43 = vld [vmem:[%s1363_s6 + $0x2a0] sm:$0xff]  ;;  %599 = vmatpush2.msra.mxu0 %v380_v39  ;;  %v339_v21 = vld [vmem:[%s1363_s6 + $0x178] sm:$0xff] }
  0x4c   : > { %v505_v42 = vld [vmem:[%s1363_s6 + $0x6a8] sm:$0xff]  ;;  %v504_v44 = vld [vmem:[%s1363_s6 + $0x6a0] sm:$0xff]  ;;  %670 = vmatpush2.msra.mxu1 %v508_v40  ;;  %600 = vmatprep.subr.mxu0 %v377_v41  ;;  %v467_v22 = vld [vmem:[%s1363_s6 + $0x578] sm:$0xff] }
  0x4d   : > { %v373_v45 = vld [vmem:[%s1363_s6 + $0x288] sm:$0xff]  ;;  %671 = vmatprep.subr.mxu1 %v505_v42  ;;  %v372_v47 = vld [vmem:[%s1363_s6 + $0x280] sm:$0xff]  ;;  %601 = vmatpush2.msra.mxu0 %v376_v43  ;;  %v338_v23 = vld [vmem:[%s1363_s6 + $0x170] sm:$0xff] }
  0x4e   : > { %v501_v46 = vld [vmem:[%s1363_s6 + $0x688] sm:$0xff]  ;;  %v500_v48 = vld [vmem:[%s1363_s6 + $0x680] sm:$0xff]  ;;  %672 = vmatpush2.msra.mxu1 %v504_v44  ;;  %602 = vmatprep.subr.mxu0 %v373_v45  ;;  %v466_v24 = vld [vmem:[%s1363_s6 + $0x570] sm:$0xff] }
  0x4f   : > { %v369_v49 = vld [vmem:[%s1363_s6 + $0x268] sm:$0xff]  ;;  %673 = vmatprep.subr.mxu1 %v501_v46  ;;  %v368_v51 = vld [vmem:[%s1363_s6 + $0x260] sm:$0xff]  ;;  %603 = vmatpush2.msra.mxu0 %v372_v47  ;;  %v335_v25 = vld [vmem:[%s1363_s6 + $0x158] sm:$0xff] }
  0x50   : > { %v497_v50 = vld [vmem:[%s1363_s6 + $0x668] sm:$0xff]  ;;  %v496_v52 = vld [vmem:[%s1363_s6 + $0x660] sm:$0xff]  ;;  %674 = vmatpush2.msra.mxu1 %v500_v48  ;;  %604 = vmatprep.subr.mxu0 %v369_v49  ;;  %v463_v26 = vld [vmem:[%s1363_s6 + $0x558] sm:$0xff] }
  0x51   : > { %v365_v53 = vld [vmem:[%s1363_s6 + $0x248] sm:$0xff]  ;;  %675 = vmatprep.subr.mxu1 %v497_v50  ;;  %v364_v55 = vld [vmem:[%s1363_s6 + $0x240] sm:$0xff]  ;;  %605 = vmatpush2.msra.mxu0 %v368_v51  ;;  %v334_v27 = vld [vmem:[%s1363_s6 + $0x150] sm:$0xff] }
  0x52   : > { %v493_v54 = vld [vmem:[%s1363_s6 + $0x648] sm:$0xff]  ;;  %v492_v56 = vld [vmem:[%s1363_s6 + $0x640] sm:$0xff]  ;;  %676 = vmatpush2.msra.mxu1 %v496_v52  ;;  %606 = vmatprep.subr.mxu0 %v365_v53  ;;  %v462_v28 = vld [vmem:[%s1363_s6 + $0x550] sm:$0xff] }
  0x53   : > { %v361_v57 = vld [vmem:[%s1363_s6 + $0x228] sm:$0xff]  ;;  %677 = vmatprep.subr.mxu1 %v493_v54  ;;  %v360_v59 = vld [vmem:[%s1363_s6 + $0x220] sm:$0xff]  ;;  %607 = vmatpush2.msra.mxu0 %v364_v55  ;;  %v331_v29 = vld [vmem:[%s1363_s6 + $0x138] sm:$0xff] }
  0x54   : > { %v489_v58 = vld [vmem:[%s1363_s6 + $0x628] sm:$0xff]  ;;  %v488_v60 = vld [vmem:[%s1363_s6 + $0x620] sm:$0xff]  ;;  %678 = vmatpush2.msra.mxu1 %v492_v56  ;;  %608 = vmatprep.subr.mxu0 %v361_v57  ;;  %v459_v30 = vld [vmem:[%s1363_s6 + $0x538] sm:$0xff] }
  0x55   : > { %v357_v61 = vld [vmem:[%s1363_s6 + $0x208] sm:$0xff]  ;;  %679 = vmatprep.subr.mxu1 %v489_v58  ;;  %v356_v63 = vld [vmem:[%s1363_s6 + $0x200] sm:$0xff]  ;;  %609 = vmatpush2.msra.mxu0 %v360_v59  ;;  %v330_v31 = vld [vmem:[%s1363_s6 + $0x130] sm:$0xff] }
  0x56   : > { %v485_v62 = vld [vmem:[%s1363_s6 + $0x608] sm:$0xff]  ;;  %680 = vmatpush2.msra.mxu1 %v488_v60  ;;  %v484_v1 = vld [vmem:[%s1363_s6 + $0x600] sm:$0xff]  ;;  %610 = vmatprep.subr.mxu0 %v357_v61  ;;  %v458_v32 = vld [vmem:[%s1363_s6 + $0x530] sm:$0xff] }
  0x57   : > { %v1494_v0 = vld [vmem:[%s1358_s27 + $0x8] sm:$0xff]  ;;  %681 = vmatprep.subr.mxu1 %v485_v62  ;;  %v1501_v3 = vld [vmem:[%s1358_s27] sm:$0xff]  ;;  %611 = vmatpush2.msra.mxu0 %v356_v63  ;;  %v327_v33 = vld [vmem:[%s1363_s6 + $0x118] sm:$0xff] }
  0x58   : > { %612 = vmatprep.mubr.f32.mxu0 %v1494_v0  ;;  %682 = vmatpush2.msra.mxu1 %v484_v1  ;;  %v455_v34 = vld [vmem:[%s1363_s6 + $0x518] sm:$0xff]  ;;  %v326_v35 = vld [vmem:[%s1363_s6 + $0x110] sm:$0xff] }
  0x59   : > { %683 = vmatprep.mubr.f32.mxu1 %v1498_v2  ;;  %613 = vmatmul.mubr.f32.vlgmr.msra.gmra.mxu0 %v1501_v3  ;;  %v454_v36 = vld [vmem:[%s1363_s6 + $0x510] sm:$0xff]  ;;  %v323_v37 = vld [vmem:[%s1363_s6 + $0xf8] sm:$0xff] }
  0x5a   : > { %684 = vmatmul.mubr.f32.vlgmr.msra.gmra.mxu1 %v1504_v4  ;;  %690 = vmatprep.subr.mxu0 %v355_v5  ;;  %v451_v38 = vld [vmem:[%s1363_s6 + $0x4f8] sm:$0xff]  ;;  %v322_v39 = vld [vmem:[%s1363_s6 + $0xf0] sm:$0xff] }
  0x5b   : > { %761 = vmatprep.subr.mxu1 %v483_v6  ;;  %691 = vmatpush1.msra.mxu0 %v354_v7  ;;  %v450_v40 = vld [vmem:[%s1363_s6 + $0x4f0] sm:$0xff]  ;;  %v319_v41 = vld [vmem:[%s1363_s6 + $0xd8] sm:$0xff] }
  0x5c   : > { %762 = vmatpush1.msra.mxu1 %v482_v8  ;;  %692 = vmatprep.subr.mxu0 %v351_v9  ;;  %v447_v42 = vld [vmem:[%s1363_s6 + $0x4d8] sm:$0xff]  ;;  %v318_v43 = vld [vmem:[%s1363_s6 + $0xd0] sm:$0xff] }
  0x5d   : > { %763 = vmatprep.subr.mxu1 %v479_v10  ;;  %693 = vmatpush1.msra.mxu0 %v350_v11  ;;  %v446_v44 = vld [vmem:[%s1363_s6 + $0x4d0] sm:$0xff]  ;;  %v315_v45 = vld [vmem:[%s1363_s6 + $0xb8] sm:$0xff] }
  0x5e   : > { %764 = vmatpush1.msra.mxu1 %v478_v12  ;;  %694 = vmatprep.subr.mxu0 %v347_v13  ;;  %v443_v46 = vld [vmem:[%s1363_s6 + $0x4b8] sm:$0xff]  ;;  %v314_v47 = vld [vmem:[%s1363_s6 + $0xb0] sm:$0xff] }
  0x5f   : > { %765 = vmatprep.subr.mxu1 %v475_v14  ;;  %695 = vmatpush1.msra.mxu0 %v346_v15  ;;  %v442_v48 = vld [vmem:[%s1363_s6 + $0x4b0] sm:$0xff]  ;;  %v311_v49 = vld [vmem:[%s1363_s6 + $0x98] sm:$0xff] }
  0x60   : > { %766 = vmatpush1.msra.mxu1 %v474_v16  ;;  %696 = vmatprep.subr.mxu0 %v343_v17  ;;  %v439_v50 = vld [vmem:[%s1363_s6 + $0x498] sm:$0xff]  ;;  %v310_v51 = vld [vmem:[%s1363_s6 + $0x90] sm:$0xff] }
  0x61   : > { %767 = vmatprep.subr.mxu1 %v471_v18  ;;  %697 = vmatpush1.msra.mxu0 %v342_v19  ;;  %v438_v52 = vld [vmem:[%s1363_s6 + $0x490] sm:$0xff]  ;;  %v307_v53 = vld [vmem:[%s1363_s6 + $0x78] sm:$0xff] }
  0x62   : > { %768 = vmatpush1.msra.mxu1 %v470_v20  ;;  %698 = vmatprep.subr.mxu0 %v339_v21  ;;  %v435_v54 = vld [vmem:[%s1363_s6 + $0x478] sm:$0xff]  ;;  %v306_v55 = vld [vmem:[%s1363_s6 + $0x70] sm:$0xff] }
  0x63   : > { %769 = vmatprep.subr.mxu1 %v467_v22  ;;  %699 = vmatpush1.msra.mxu0 %v338_v23  ;;  %v434_v56 = vld [vmem:[%s1363_s6 + $0x470] sm:$0xff]  ;;  %v303_v57 = vld [vmem:[%s1363_s6 + $0x58] sm:$0xff] }
  0x64   : > { %770 = vmatpush1.msra.mxu1 %v466_v24  ;;  %700 = vmatprep.subr.mxu0 %v335_v25  ;;  %v431_v58 = vld [vmem:[%s1363_s6 + $0x458] sm:$0xff]  ;;  %v302_v59 = vld [vmem:[%s1363_s6 + $0x50] sm:$0xff] }
  0x65   : > { %771 = vmatprep.subr.mxu1 %v463_v26  ;;  %701 = vmatpush1.msra.mxu0 %v334_v27  ;;  %v430_v60 = vld [vmem:[%s1363_s6 + $0x450] sm:$0xff]  ;;  %v299_v61 = vld [vmem:[%s1363_s6 + $0x38] sm:$0xff] }
  0x66   : > { %772 = vmatpush1.msra.mxu1 %v462_v28  ;;  %702 = vmatprep.subr.mxu0 %v331_v29  ;;  %v427_v62 = vld [vmem:[%s1363_s6 + $0x438] sm:$0xff]  ;;  %v298_v63 = vld [vmem:[%s1363_s6 + $0x30] sm:$0xff] }
  0x67   : > { %773 = vmatprep.subr.mxu1 %v459_v30  ;;  %703 = vmatpush1.msra.mxu0 %v330_v31  ;;  %v426_v1 = vld [vmem:[%s1363_s6 + $0x430] sm:$0xff]  ;;  %v295_v5 = vld [vmem:[%s1363_s6 + $0x18] sm:$0xff] }
  0x68   : > { %774 = vmatpush1.msra.mxu1 %v458_v32  ;;  %704 = vmatprep.subr.mxu0 %v327_v33  ;;  %v423_v6 = vld [vmem:[%s1363_s6 + $0x418] sm:$0xff]  ;;  %v294_v7 = vld [vmem:[%s1363_s6 + $0x10] sm:$0xff] }
  0x69   : > { %775 = vmatprep.subr.mxu1 %v455_v34  ;;  %705 = vmatpush1.msra.mxu0 %v326_v35  ;;  %v422_v8 = vld [vmem:[%s1363_s6 + $0x410] sm:$0xff]  ;;  %v419_v9 = vld [vmem:[%s1363_s6 + $0x3f8] sm:$0xff] }
  0x6a   : > { %776 = vmatpush1.msra.mxu1 %v454_v36  ;;  %706 = vmatprep.subr.mxu0 %v323_v37  ;;  %v547_v10 = vld [vmem:[%s1363_s6 + $0x7f8] sm:$0xff]  ;;  %v418_v11 = vld [vmem:[%s1363_s6 + $0x3f0] sm:$0xff] }
  0x6b   : > { %777 = vmatprep.subr.mxu1 %v451_v38  ;;  %707 = vmatpush1.msra.mxu0 %v322_v39  ;;  %v546_v12 = vld [vmem:[%s1363_s6 + $0x7f0] sm:$0xff]  ;;  %v415_v13 = vld [vmem:[%s1363_s6 + $0x3d8] sm:$0xff] }
  0x6c   : > { %778 = vmatpush1.msra.mxu1 %v450_v40  ;;  %708 = vmatprep.subr.mxu0 %v319_v41  ;;  %v543_v14 = vld [vmem:[%s1363_s6 + $0x7d8] sm:$0xff]  ;;  %v414_v15 = vld [vmem:[%s1363_s6 + $0x3d0] sm:$0xff] }
  0x6d   : > { %779 = vmatprep.subr.mxu1 %v447_v42  ;;  %709 = vmatpush1.msra.mxu0 %v318_v43  ;;  %v542_v16 = vld [vmem:[%s1363_s6 + $0x7d0] sm:$0xff]  ;;  %v411_v17 = vld [vmem:[%s1363_s6 + $0x3b8] sm:$0xff] }
  0x6e   : > { %780 = vmatpush1.msra.mxu1 %v446_v44  ;;  %710 = vmatprep.subr.mxu0 %v315_v45  ;;  %v539_v18 = vld [vmem:[%s1363_s6 + $0x7b8] sm:$0xff]  ;;  %v410_v19 = vld [vmem:[%s1363_s6 + $0x3b0] sm:$0xff] }
  0x6f   : > { %781 = vmatprep.subr.mxu1 %v443_v46  ;;  %711 = vmatpush1.msra.mxu0 %v314_v47  ;;  %v538_v20 = vld [vmem:[%s1363_s6 + $0x7b0] sm:$0xff]  ;;  %v407_v21 = vld [vmem:[%s1363_s6 + $0x398] sm:$0xff] }
  0x70   : > { %782 = vmatpush1.msra.mxu1 %v442_v48  ;;  %712 = vmatprep.subr.mxu0 %v311_v49  ;;  %v535_v22 = vld [vmem:[%s1363_s6 + $0x798] sm:$0xff]  ;;  %v406_v23 = vld [vmem:[%s1363_s6 + $0x390] sm:$0xff] }
  0x71   : > { %783 = vmatprep.subr.mxu1 %v439_v50  ;;  %713 = vmatpush1.msra.mxu0 %v310_v51  ;;  %v534_v24 = vld [vmem:[%s1363_s6 + $0x790] sm:$0xff]  ;;  %v403_v25 = vld [vmem:[%s1363_s6 + $0x378] sm:$0xff] }
  0x72   : > { %784 = vmatpush1.msra.mxu1 %v438_v52  ;;  %714 = vmatprep.subr.mxu0 %v307_v53  ;;  %v531_v26 = vld [vmem:[%s1363_s6 + $0x778] sm:$0xff]  ;;  %v402_v27 = vld [vmem:[%s1363_s6 + $0x370] sm:$0xff] }
  0x73   : > { %785 = vmatprep.subr.mxu1 %v435_v54  ;;  %715 = vmatpush1.msra.mxu0 %v306_v55  ;;  %v530_v28 = vld [vmem:[%s1363_s6 + $0x770] sm:$0xff]  ;;  %v399_v29 = vld [vmem:[%s1363_s6 + $0x358] sm:$0xff] }
  0x74   : > { %786 = vmatpush1.msra.mxu1 %v434_v56  ;;  %716 = vmatprep.subr.mxu0 %v303_v57  ;;  %v527_v30 = vld [vmem:[%s1363_s6 + $0x758] sm:$0xff]  ;;  %v398_v31 = vld [vmem:[%s1363_s6 + $0x350] sm:$0xff] }
  0x75   : > { %787 = vmatprep.subr.mxu1 %v431_v58  ;;  %717 = vmatpush1.msra.mxu0 %v302_v59  ;;  %v526_v32 = vld [vmem:[%s1363_s6 + $0x750] sm:$0xff]  ;;  %v395_v33 = vld [vmem:[%s1363_s6 + $0x338] sm:$0xff] }
  0x76   : > { %788 = vmatpush1.msra.mxu1 %v430_v60  ;;  %718 = vmatprep.subr.mxu0 %v299_v61  ;;  %v523_v34 = vld [vmem:[%s1363_s6 + $0x738] sm:$0xff]  ;;  %v394_v35 = vld [vmem:[%s1363_s6 + $0x330] sm:$0xff] }
  0x77   : > { %789 = vmatprep.subr.mxu1 %v427_v62  ;;  %719 = vmatpush1.msra.mxu0 %v298_v63  ;;  %v522_v36 = vld [vmem:[%s1363_s6 + $0x730] sm:$0xff]  ;;  %v391_v37 = vld [vmem:[%s1363_s6 + $0x318] sm:$0xff] }
  0x78   : > { %790 = vmatpush1.msra.mxu1 %v426_v1  ;;  %720 = vmatprep.subr.mxu0 %v295_v5  ;;  %v519_v38 = vld [vmem:[%s1363_s6 + $0x718] sm:$0xff]  ;;  %v390_v39 = vld [vmem:[%s1363_s6 + $0x310] sm:$0xff] }
  0x79   : > { %791 = vmatprep.subr.mxu1 %v423_v6  ;;  %721 = vmatpush1.msra.mxu0 %v294_v7  ;;  %v518_v40 = vld [vmem:[%s1363_s6 + $0x710] sm:$0xff]  ;;  %v387_v41 = vld [vmem:[%s1363_s6 + $0x2f8] sm:$0xff] }
  0x7a   : > { %792 = vmatpush1.msra.mxu1 %v422_v8  ;;  %722 = vmatprep.subr.mxu0 %v419_v9  ;;  %v515_v42 = vld [vmem:[%s1363_s6 + $0x6f8] sm:$0xff]  ;;  %v386_v43 = vld [vmem:[%s1363_s6 + $0x2f0] sm:$0xff] }
  0x7b   : > { %793 = vmatprep.subr.mxu1 %v547_v10  ;;  %723 = vmatpush2.msra.mxu0 %v418_v11  ;;  %v514_v44 = vld [vmem:[%s1363_s6 + $0x6f0] sm:$0xff]  ;;  %v383_v45 = vld [vmem:[%s1363_s6 + $0x2d8] sm:$0xff] }
  0x7c   : > { %794 = vmatpush2.msra.mxu1 %v546_v12  ;;  %724 = vmatprep.subr.mxu0 %v415_v13  ;;  %v511_v46 = vld [vmem:[%s1363_s6 + $0x6d8] sm:$0xff]  ;;  %v382_v47 = vld [vmem:[%s1363_s6 + $0x2d0] sm:$0xff] }
  0x7d   : > { %795 = vmatprep.subr.mxu1 %v543_v14  ;;  %725 = vmatpush2.msra.mxu0 %v414_v15  ;;  %v510_v48 = vld [vmem:[%s1363_s6 + $0x6d0] sm:$0xff]  ;;  %v379_v49 = vld [vmem:[%s1363_s6 + $0x2b8] sm:$0xff] }
  0x7e   : > { %796 = vmatpush2.msra.mxu1 %v542_v16  ;;  %726 = vmatprep.subr.mxu0 %v411_v17  ;;  %v507_v50 = vld [vmem:[%s1363_s6 + $0x6b8] sm:$0xff]  ;;  %v378_v51 = vld [vmem:[%s1363_s6 + $0x2b0] sm:$0xff] }
  0x7f   : > { %797 = vmatprep.subr.mxu1 %v539_v18  ;;  %727 = vmatpush2.msra.mxu0 %v410_v19  ;;  %v506_v52 = vld [vmem:[%s1363_s6 + $0x6b0] sm:$0xff]  ;;  %v375_v53 = vld [vmem:[%s1363_s6 + $0x298] sm:$0xff]  ;;  %v285_v18 = vld [vmem:[#allocation2] sm:$0xff] }
  0x80   : > { %798 = vmatpush2.msra.mxu1 %v538_v20  ;;  %728 = vmatprep.subr.mxu0 %v407_v21  ;;  %v503_v54 = vld [vmem:[%s1363_s6 + $0x698] sm:$0xff]  ;;  %v374_v55 = vld [vmem:[%s1363_s6 + $0x290] sm:$0xff] }
  0x81   : > { %799 = vmatprep.subr.mxu1 %v535_v22  ;;  %729 = vmatpush2.msra.mxu0 %v406_v23  ;;  %v502_v56 = vld [vmem:[%s1363_s6 + $0x690] sm:$0xff]  ;;  %v371_v57 = vld [vmem:[%s1363_s6 + $0x278] sm:$0xff] }
  0x82   : > { %800 = vmatpush2.msra.mxu1 %v534_v24  ;;  %730 = vmatprep.subr.mxu0 %v403_v25  ;;  %v499_v58 = vld [vmem:[%s1363_s6 + $0x678] sm:$0xff]  ;;  %v370_v59 = vld [vmem:[%s1363_s6 + $0x270] sm:$0xff] }
  0x83   : > { %801 = vmatprep.subr.mxu1 %v531_v26  ;;  %731 = vmatpush2.msra.mxu0 %v402_v27  ;;  %v498_v60 = vld [vmem:[%s1363_s6 + $0x670] sm:$0xff]  ;;  %v367_v61 = vld [vmem:[%s1363_s6 + $0x258] sm:$0xff] }
  0x84   : > { %802 = vmatpush2.msra.mxu1 %v530_v28  ;;  %732 = vmatprep.subr.mxu0 %v399_v29  ;;  %v495_v62 = vld [vmem:[%s1363_s6 + $0x658] sm:$0xff]  ;;  %v366_v63 = vld [vmem:[%s1363_s6 + $0x250] sm:$0xff] }
  0x85   : > { %803 = vmatprep.subr.mxu1 %v527_v30  ;;  %733 = vmatpush2.msra.mxu0 %v398_v31  ;;  %v494_v1 = vld [vmem:[%s1363_s6 + $0x650] sm:$0xff]  ;;  %v363_v5 = vld [vmem:[%s1363_s6 + $0x238] sm:$0xff] }
  0x86   : > { %804 = vmatpush2.msra.mxu1 %v526_v32  ;;  %734 = vmatprep.subr.mxu0 %v395_v33  ;;  %v491_v6 = vld [vmem:[%s1363_s6 + $0x638] sm:$0xff]  ;;  %v362_v7 = vld [vmem:[%s1363_s6 + $0x230] sm:$0xff] }
  0x87   : > { %805 = vmatprep.subr.mxu1 %v523_v34  ;;  %735 = vmatpush2.msra.mxu0 %v394_v35  ;;  %v490_v8 = vld [vmem:[%s1363_s6 + $0x630] sm:$0xff]  ;;  %v359_v9 = vld [vmem:[%s1363_s6 + $0x218] sm:$0xff] }
  0x88   : > { %806 = vmatpush2.msra.mxu1 %v522_v36  ;;  %736 = vmatprep.subr.mxu0 %v391_v37  ;;  %v487_v10 = vld [vmem:[%s1363_s6 + $0x618] sm:$0xff]  ;;  %v358_v11 = vld [vmem:[%s1363_s6 + $0x210] sm:$0xff] }
  0x89   : > { %807 = vmatprep.subr.mxu1 %v519_v38  ;;  %737 = vmatpush2.msra.mxu0 %v390_v39  ;;  %v486_v12 = vld [vmem:[%s1363_s6 + $0x610] sm:$0xff]  ;;  %v286_v23 = vld [vmem:[#allocation2 + $0x18] sm:$0xff] }
  0x8a   : > { %808 = vmatpush2.msra.mxu1 %v518_v40  ;;  %738 = vmatprep.subr.mxu0 %v387_v41  ;;  %v284_v14 = vld [vmem:[#allocation2 + $0x10] sm:$0xff] }
  0x8b   : > { %809 = vmatprep.subr.mxu1 %v515_v42  ;;  %739 = vmatpush2.msra.mxu0 %v386_v43 }
  0x8c   : > { %810 = vmatpush2.msra.mxu1 %v514_v44  ;;  %740 = vmatprep.subr.mxu0 %v383_v45 }
  0x8d   : > { %811 = vmatprep.subr.mxu1 %v511_v46  ;;  %741 = vmatpush2.msra.mxu0 %v382_v47 }
  0x8e   : > { %812 = vmatpush2.msra.mxu1 %v510_v48  ;;  %742 = vmatprep.subr.mxu0 %v379_v49 }
  0x8f   : > { %813 = vmatprep.subr.mxu1 %v507_v50  ;;  %743 = vmatpush2.msra.mxu0 %v378_v51 }
  0x90   : > { %814 = vmatpush2.msra.mxu1 %v506_v52  ;;  %744 = vmatprep.subr.mxu0 %v375_v53 }
  0x91   : > { %815 = vmatprep.subr.mxu1 %v503_v54  ;;  %745 = vmatpush2.msra.mxu0 %v374_v55 }
  0x92   : > { %816 = vmatpush2.msra.mxu1 %v502_v56  ;;  %746 = vmatprep.subr.mxu0 %v371_v57 }
  0x93   : > { %817 = vmatprep.subr.mxu1 %v499_v58  ;;  %747 = vmatpush2.msra.mxu0 %v370_v59 }
  0x94   : > { %818 = vmatpush2.msra.mxu1 %v498_v60  ;;  %748 = vmatprep.subr.mxu0 %v367_v61 }
  0x95   : > { %819 = vmatprep.subr.mxu1 %v495_v62  ;;  %749 = vmatpush2.msra.mxu0 %v366_v63 }
  0x96   : > { %820 = vmatpush2.msra.mxu1 %v494_v1  ;;  %750 = vmatprep.subr.mxu0 %v363_v5 }
  0x97   : > { %821 = vmatprep.subr.mxu1 %v491_v6  ;;  %751 = vmatpush2.msra.mxu0 %v362_v7 }
  0x98   : > { %822 = vmatpush2.msra.mxu1 %v490_v8  ;;  %752 = vmatprep.subr.mxu0 %v359_v9 }
  0x99   : > { %823 = vmatprep.subr.mxu1 %v487_v10  ;;  %753 = vmatpush2.msra.mxu0 %v358_v11 }
  0x9a   : > { %754 = vmatprep.mubr.f32.mxu0 %v1494_v0  ;;  %824 = vmatpush2.msra.mxu1 %v486_v12 }
  0x9b   : > { %825 = vmatprep.mubr.f32.mxu1 %v1498_v2  ;;  %755 = vmatmul.mubr.f32.vlgmr.msra.gmra.mxu0 %v1501_v3  ;;  %v287_v3 = vld [vmem:[#allocation2 + $0x8] sm:$0xff] }
  0x9c   : > { %826 = vmatmul.mubr.f32.vlgmr.msra.gmra.mxu1 %v1504_v4 }
 0x119   : > { %v614_v13 = vpop.f32.mrf.mxu0 }
 0x11a   : > { %v685_v15 = vpop.f32.mrf.mxu1 }
 0x11b   : > { %v686_v16 = vadd.f32 %v685_v15, %v614_v13  ;;  %v616_v17 = vpop.f32.mrf.mxu0 }
 0x11c   : > { %v687_v19 = vpop.f32.mrf.mxu1 }
 0x11d   : > { %v832_v20 = vadd.f32 %v686_v16, %v284_v14  ;;  %v688_v21 = vadd.f32 %v687_v19, %v616_v17 }
 0x11f   : > { %836 = vst [vmem:[#allocation2 + $0x10] sm:$0xff] %v832_v20  ;;  %v833_v22 = vadd.f32 %v688_v21, %v285_v18 }
 0x121   : > { %837 = vst [vmem:[#allocation2] sm:$0xff] %v833_v22 }
 0x15b   : > { %v756_v0 = vpop.f32.mrf.mxu0 }
 0x15c   : > { %v827_v24 = vpop.f32.mrf.mxu1 }
 0x15d   : > { %v828_v2 = vadd.f32 %v827_v24, %v756_v0  ;;  %v758_v25 = vpop.f32.mrf.mxu0 }
 0x15e   : > { %v829_v26 = vpop.f32.mrf.mxu1 }
 0x15f   : > { %v834_v4 = vadd.f32 %v828_v2, %v286_v23  ;;  %v830_v27 = vadd.f32 %v829_v26, %v758_v25  ;;  %843 = sbr.rel (%p1177_p7) target bundleno = 593 (0x251), region = 48 }
 0x161   : > { %838 = vst [vmem:[#allocation2 + $0x18] sm:$0xff] %v834_v4  ;;  %v835_v28 = vadd.f32 %v830_v27, %v287_v3 }
 0x163   : > { %839 = vst [vmem:[#allocation2 + $0x8] sm:$0xff] %v835_v28 }
 0x164   : > { %v909_v29 = vld [vmem:[%s1856_s3 + $0xf8] sm:$0xff]  ;;  %v908_v33 = vld [vmem:[%s1856_s3 + $0xf0] sm:$0xff]  ;;  %v907_v37 = vld [vmem:[%s1856_s3 + $0xe8] sm:$0xff]  ;;  %v850_v55 = vlaneseq }
 0x165   : > { %v941_v30 = vld [vmem:[%s1856_s3 + $0x1f8] sm:$0xff]  ;;  %1183 = vmatprep.subr.mxu0 %v909_v29  ;;  %v940_v34 = vld [vmem:[%s1856_s3 + $0x1f0] sm:$0xff]  ;;  %v939_v38 = vld [vmem:[%s1856_s3 + $0x1e8] sm:$0xff] }
 0x166   : > { %v893_v31 = vld [vmem:[%s1856_s3 + $0x78] sm:$0xff]  ;;  %1218 = vmatprep.subr.mxu1 %v941_v30  ;;  %v892_v35 = vld [vmem:[%s1856_s3 + $0x70] sm:$0xff]  ;;  %v891_v39 = vld [vmem:[%s1856_s3 + $0x68] sm:$0xff]  ;;  %v851_v1 = vshrl.u32 %v850_v55, 7 }
 0x167   : > { %v925_v32 = vld [vmem:[%s1856_s3 + $0x178] sm:$0xff]  ;;  %1184 = vmatpush3.msra.mxu0 %v893_v31  ;;  %v924_v36 = vld [vmem:[%s1856_s3 + $0x170] sm:$0xff]  ;;  %v923_v40 = vld [vmem:[%s1856_s3 + $0x168] sm:$0xff] }
 0x168   : > { %1219 = vmatpush3.msra.mxu1 %v925_v32  ;;  %1185 = vmatprep.subr.mxu0 %v908_v33  ;;  %v906_v41 = vld [vmem:[%s1856_s3 + $0xe0] sm:$0xff]  ;;  %v905_v45 = vld [vmem:[%s1856_s3 + $0xd8] sm:$0xff]  ;;  %v904_v49 = vld [vmem:[%s1856_s3 + $0xd0] sm:$0xff]  ;;  %v856_v13 = vsub.s32 1, %v851_v1  ;;  %v864_v14 = vsub.s32 3, %v851_v1  ;;  %v852_v15 = vsub.s32 0, %v851_v1 }
 0x169   : > { %1220 = vmatprep.subr.mxu1 %v940_v34  ;;  %1186 = vmatpush3.msra.mxu0 %v892_v35  ;;  %v938_v42 = vld [vmem:[%s1856_s3 + $0x1e0] sm:$0xff]  ;;  %v937_v46 = vld [vmem:[%s1856_s3 + $0x1d8] sm:$0xff]  ;;  %v936_v50 = vld [vmem:[%s1856_s3 + $0x1d0] sm:$0xff]  ;;  %v860_v19 = vsub.s32 2, %v851_v1 }
 0x16a   : > { %1221 = vmatpush3.msra.mxu1 %v924_v36  ;;  %1187 = vmatprep.subr.mxu0 %v907_v37  ;;  %v890_v43 = vld [vmem:[%s1856_s3 + $0x60] sm:$0xff]  ;;  %v889_v47 = vld [vmem:[%s1856_s3 + $0x58] sm:$0xff]  ;;  %v888_v51 = vld [vmem:[%s1856_s3 + $0x50] sm:$0xff] }
 0x16b   : > { %1222 = vmatprep.subr.mxu1 %v939_v38  ;;  %v922_v44 = vld [vmem:[%s1856_s3 + $0x160] sm:$0xff]  ;;  %1188 = vmatpush3.msra.mxu0 %v891_v39  ;;  %v921_v48 = vld [vmem:[%s1856_s3 + $0x158] sm:$0xff]  ;;  %v920_v52 = vld [vmem:[%s1856_s3 + $0x150] sm:$0xff] }
 0x16c   : > { %1223 = vmatpush3.msra.mxu1 %v923_v40  ;;  %1189 = vmatprep.subr.mxu0 %v906_v41  ;;  %v903_v53 = vld [vmem:[%s1856_s3 + $0xc8] sm:$0xff]  ;;  %v902_v58 = vld [vmem:[%s1856_s3 + $0xc0] sm:$0xff]  ;;  %v901_v62 = vld [vmem:[%s1856_s3 + $0xb8] sm:$0xff] }
 0x16d   : > { %1224 = vmatprep.subr.mxu1 %v938_v42  ;;  %1190 = vmatpush3.msra.mxu0 %v890_v43  ;;  %v935_v54 = vld [vmem:[%s1856_s3 + $0x1c8] sm:$0xff]  ;;  %v934_v59 = vld [vmem:[%s1856_s3 + $0x1c0] sm:$0xff]  ;;  %v933_v63 = vld [vmem:[%s1856_s3 + $0x1b8] sm:$0xff] }
 0x16e   : > { %1225 = vmatpush3.msra.mxu1 %v922_v44  ;;  %1191 = vmatprep.subr.mxu0 %v905_v45  ;;  %v887_v56 = vld [vmem:[%s1856_s3 + $0x48] sm:$0xff]  ;;  %v886_v60 = vld [vmem:[%s1856_s3 + $0x40] sm:$0xff]  ;;  %v885_v5 = vld [vmem:[%s1856_s3 + $0x38] sm:$0xff] }
 0x16f   : > { %1226 = vmatprep.subr.mxu1 %v937_v46  ;;  %1192 = vmatpush3.msra.mxu0 %v889_v47  ;;  %v919_v57 = vld [vmem:[%s1856_s3 + $0x148] sm:$0xff]  ;;  %v918_v61 = vld [vmem:[%s1856_s3 + $0x140] sm:$0xff]  ;;  %v917_v6 = vld [vmem:[%s1856_s3 + $0x138] sm:$0xff] }
 0x170   : > { %1227 = vmatpush3.msra.mxu1 %v921_v48  ;;  %1193 = vmatprep.subr.mxu0 %v904_v49  ;;  %v900_v7 = vld [vmem:[%s1856_s3 + $0xb0] sm:$0xff]  ;;  %v899_v11 = vld [vmem:[%s1856_s3 + $0xa8] sm:$0xff]  ;;  %v898_v18 = vld [vmem:[%s1856_s3 + $0xa0] sm:$0xff] }
 0x171   : > { %1228 = vmatprep.subr.mxu1 %v936_v50  ;;  %1194 = vmatpush3.msra.mxu0 %v888_v51  ;;  %v932_v8 = vld [vmem:[%s1856_s3 + $0x1b0] sm:$0xff]  ;;  %v931_v12 = vld [vmem:[%s1856_s3 + $0x1a8] sm:$0xff]  ;;  %v930_v20 = vld [vmem:[%s1856_s3 + $0x1a0] sm:$0xff] }
 0x172   : > { %1229 = vmatpush3.msra.mxu1 %v920_v52  ;;  %1195 = vmatprep.subr.mxu0 %v903_v53  ;;  %v884_v9 = vld [vmem:[%s1856_s3 + $0x30] sm:$0xff]  ;;  %v883_v16 = vld [vmem:[%s1856_s3 + $0x28] sm:$0xff]  ;;  %v882_v21 = vld [vmem:[%s1856_s3 + $0x20] sm:$0xff] }
 0x173   : > { %1230 = vmatprep.subr.mxu1 %v935_v54  ;;  %1196 = vmatpush3.msra.mxu0 %v887_v56  ;;  %v916_v10 = vld [vmem:[%s1856_s3 + $0x130] sm:$0xff]  ;;  %v915_v17 = vld [vmem:[%s1856_s3 + $0x128] sm:$0xff]  ;;  %v914_v22 = vld [vmem:[%s1856_s3 + $0x120] sm:$0xff] }
 0x174   : > { %1231 = vmatpush3.msra.mxu1 %v919_v57  ;;  %1197 = vmatprep.subr.mxu0 %v902_v58  ;;  %v897_v0 = vld [vmem:[%s1856_s3 + $0x98] sm:$0xff]  ;;  %v845_v23 = vld [vmem:[#allocation2] sm:$0xff]  ;;  %v847_v26 = vld [vmem:[#allocation2 + $0x8] sm:$0xff] }
 0x175   : > { %1232 = vmatprep.subr.mxu1 %v934_v59  ;;  %1198 = vmatpush3.msra.mxu0 %v886_v60  ;;  %v848_v24 = vld [vmem:[%s1855_s2] sm:$0xf]  ;;  %v929_v2 = vld [vmem:[%s1856_s3 + $0x198] sm:$0xff]  ;;  %v844_v29 = vld [vmem:[#allocation2 + $0x10] sm:$0xff] }
 0x176   : > { %1233 = vmatpush3.msra.mxu1 %v918_v61  ;;  %1199 = vmatprep.subr.mxu0 %v901_v62  ;;  %v881_v25 = vld [vmem:[%s1856_s3 + $0x18] sm:$0xff]  ;;  %v857_v3 = vrot.slane %v848_v24, %v856_v13  ;;  %v865_v4 = vrot.slane %v848_v24, %v864_v14  ;;  %v853_v27 = vrot.slane %v848_v24, %v852_v15  ;;  %v896_v32 = vld [vmem:[%s1856_s3 + $0x90] sm:$0xff]  ;;  %v895_v38 = vld [vmem:[%s1856_s3 + $0x88] sm:$0xff] }
 0x177   : > { %1234 = vmatprep.subr.mxu1 %v933_v63  ;;  %1200 = vmatpush3.msra.mxu0 %v885_v5  ;;  %v913_v28 = vld [vmem:[%s1856_s3 + $0x118] sm:$0xff]  ;;  %v861_v31 = vrot.slane %v848_v24, %v860_v19  ;;  %v928_v33 = vld [vmem:[%s1856_s3 + $0x190] sm:$0xff]  ;;  %v927_v39 = vld [vmem:[%s1856_s3 + $0x188] sm:$0xff] }
 0x178   : > { %1235 = vmatpush3.msra.mxu1 %v917_v6  ;;  %1201 = vmatprep.subr.mxu0 %v900_v7  ;;  %v846_v30 = vld [vmem:[#allocation2 + $0x18] sm:$0xff]  ;;  %v871_v34 = vadd.f32 %v857_v3, %v845_v23  ;;  %v880_v35 = vld [vmem:[%s1856_s3 + $0x10] sm:$0xff]  ;;  %v873_v37 = vadd.f32 %v865_v4, %v847_v26  ;;  %v870_v40 = vadd.f32 %v853_v27, %v844_v29  ;;  %v879_v42 = vld [vmem:[%s1856_s3 + $0x8] sm:$0xff] }
 0x179   : > { %1236 = vmatprep.subr.mxu1 %v932_v8  ;;  %1202 = vmatpush3.msra.mxu0 %v884_v9  ;;  %v912_v36 = vld [vmem:[%s1856_s3 + $0x110] sm:$0xff]  ;;  %v872_v41 = vadd.f32 %v861_v31, %v846_v30  ;;  %v911_v43 = vld [vmem:[%s1856_s3 + $0x108] sm:$0xff]  ;;  %v894_v44 = vld [vmem:[%s1856_s3 + $0x80] sm:$0xff] }
 0x17a   : > { %1237 = vmatpush3.msra.mxu1 %v916_v10  ;;  %1203 = vmatprep.subr.mxu0 %v899_v11  ;;  %v926_v45 = vld [vmem:[%s1856_s3 + $0x180] sm:$0xff]  ;;  %v875_v46 = vmax.f32 %v871_v34, 0.0  ;;  %v877_v48 = vmax.f32 %v873_v37, 0.0  ;;  %v874_v50 = vmax.f32 %v870_v40, 0.0 }
 0x17b   : > { %1238 = vmatprep.subr.mxu1 %v931_v12  ;;  %1204 = vmatpush3.msra.mxu0 %v883_v16  ;;  %v878_v47 = vld [vmem:[%s1856_s3] sm:$0xff]  ;;  %v876_v51 = vmax.f32 %v872_v41, 0.0 }
 0x17c   : > { %1239 = vmatpush3.msra.mxu1 %v915_v17  ;;  %1205 = vmatprep.subr.mxu0 %v898_v18  ;;  %v910_v49 = vld [vmem:[%s1856_s3 + $0x100] sm:$0xff] }
 0x17d   : > { %1240 = vmatprep.subr.mxu1 %v930_v20  ;;  %1206 = vmatpush3.msra.mxu0 %v882_v21  ;;  %v1178_v54 = vld [vmem:[%s1857_s4] ss:$0 sm:$0xff] }
 0x17e   : > { %1241 = vmatpush3.msra.mxu1 %v914_v22  ;;  %1207 = vmatprep.subr.mxu0 %v897_v0 }
 0x17f   : > { %1242 = vmatprep.subr.mxu1 %v929_v2  ;;  %1208 = vmatpush3.msra.mxu0 %v881_v25 }
 0x180   : > { %1243 = vmatpush3.msra.mxu1 %v913_v28  ;;  %1209 = vmatprep.subr.mxu0 %v896_v32 }
 0x181   : > { %1244 = vmatprep.subr.mxu1 %v928_v33  ;;  %1210 = vmatpush3.msra.mxu0 %v880_v35 }
 0x182   : > { %1245 = vmatpush3.msra.mxu1 %v912_v36  ;;  %1211 = vmatprep.subr.mxu0 %v895_v38 }
 0x183   : > { %1246 = vmatprep.subr.mxu1 %v927_v39  ;;  %1212 = vmatpush3.msra.mxu0 %v879_v42 }
 0x184   : > { %1247 = vmatpush3.msra.mxu1 %v911_v43  ;;  %1213 = vmatprep.subr.mxu0 %v894_v44 }
 0x185   : > { %1248 = vmatprep.subr.mxu1 %v926_v45  ;;  %1214 = vmatpush3.msra.mxu0 %v878_v47 }
 0x186   : > { %1013 = vmatprep.mubr.f32.mxu0 %v875_v46  ;;  %1249 = vmatpush3.msra.mxu1 %v910_v49 }
 0x187   : > { %1083 = vmatprep.mubr.f32.mxu1 %v877_v48  ;;  %1014 = vmatmul.mubr.f32.vlgmr.msra.gmra.mxu0 %v874_v50 }
 0x188   : > { %1084 = vmatmul.mubr.f32.vlgmr.msra.gmra.mxu1 %v876_v51 }
 0x247   : > { %v1215_v52 = vpop.f32.mrf.mxu0 }
 0x248   : > { %v1250_v53 = vpop.f32.mrf.mxu1 }
 0x249   : > { %v1216_v55 = vpop.f32.mrf.mxu0 }
 0x24a   : > { %v1251_v56 = vpop.f32.mrf.mxu1  ;;  %v1217_v57 = vadd.f32 %v1216_v55, %v1215_v52 }
 0x24b   : > { %v1252_v59 = vadd.f32 %v1251_v56, %v1250_v53 }
 0x24c   : > { %v1016_v58 = vadd.f32 %v1217_v57, %v1178_v54 }
 0x24e   : > { %v1086_v60 = vadd.f32 %v1252_v59, %v1016_v58 }
 0x250   : > { %1089 = vst [vmem:[%s1858_s5] sm:$0xff] %v1086_v60 }
 0x251 PF: > { %s15_s20 = sadd.s32 1, %s1300_s20   ;;  %s1859_s18 = smov %s1296_s19 }
 0x252   : > { %p12_p8 = scmp.ge.s32.totalorder %s15_s20, 9   ;;  %s1860_s19 = smov %s1862_s21 }
 0x254   :  { %14 = sbr.rel (!%p12_p8) target bundleno = 2 (0x2), region = 81 }

</bundles_post_ra>
